<compile_context>
chip_gen: v6e
topology: v6e:2x2x1
jax: 0.10.0
libtpu: 0.0.40
codegen_flags: <defaults>
</compile_context>

<pallas_src>
import math

import jax
import jax.numpy as jnp
from jax.experimental import pallas as pl
from jax.experimental.pallas import tpu as pltpu

BITS = 4
N_PACK = 8                      # 32-bit container / 4-bit values
NIB_MASK = (1 << BITS) - 1


def _woq_linear_kernel(x_ref, qw_ref, sc_ref, xg_ref, nzs_ref, bias_ref, o_ref):
    # x_ref:    (tb, tk)      bf16  activation tile (natural in-feature order)
    # qw_ref:   (tk8, tn)     int32 packed 4-bit weights
    # sc_ref:   (gpt, 1, tn)  f32   per-group scales for the groups in this K-tile
    # xg_ref:   (tb, G)       f32   per-group activation sums over the whole K (resident)
    # nzs_ref:  (G, tn)       f32   -(zero_point * scale), all groups of this N-tile (resident)
    # bias_ref: (1, tn)       f32
    # o_ref:    (tb, tn)      f32   output tile, accumulated in place across the K axis
    k = pl.program_id(2)

    # Seed the output tile once per (b, n): bias + full zero-point correction as one tiny
    # MXU dot.  sum_k x*(nib - zp)*s == sum_g s*dot(x_g, nib_g) + xg_sum @ (-(zp*s)).
    @pl.when(k == 0)
    def _init():
        o_ref[...] = bias_ref[...] + jnp.dot(
            xg_ref[...], nzs_ref[...], preferred_element_type=jnp.float32)

    tk8, tn = qw_ref.shape
    tk = tk8 * N_PACK
    gpt = sc_ref.shape[0]              # quantization groups covered by this K-tile
    gsz = tk // gpt                    # in-features per group (== groupsize)

    # ---- unpack all 8 nibbles into a (tk, tn) int32 slab in natural in-feature order ----
    qw = pltpu.bitcast(qw_ref[...], jnp.uint32)                           # (tk8, tn)
    qw3 = jax.lax.broadcast_in_dim(qw, (tk8, N_PACK, tn), (0, 2))         # sublane-replicate
    # 8-element constant shift vector; the >> broadcasts it (no full-size iota / multiply).
    shifts = (BITS * jax.lax.broadcasted_iota(jnp.int32, (1, N_PACK, 1), 1)
              ).astype(jnp.uint32)
    nib_u = (qw3 >> shifts) & jnp.uint32(NIB_MASK)                        # uint32 in [0, 15]
    # 32-bit (8,128) tiling => this reshape is a pure relabeling (free).
    nib = pltpu.bitcast(nib_u, jnp.int32).reshape(tk, tn)

    # ---- group-post-scaling: raw-nibble dot per group, scale applied on (tb, tn) ----
    # Nibbles 0..15 are exact in bf16; scales stay f32; accumulation is f32.
    x_t = x_ref[...]                                                      # (tb, tk) bf16
    acc = None
    for g in range(gpt):                                                  # static unroll
        lo = g * gsz
        wg = nib[lo:lo + gsz, :].astype(jnp.float32).astype(jnp.bfloat16)  # (gsz, tn)
        pg = jnp.dot(x_t[:, lo:lo + gsz], wg,
                     preferred_element_type=jnp.float32)                  # (tb, tn) MXU
        contrib = pg * sc_ref[g]                                          # (1, tn) broadcast
        acc = contrib if acc is None else acc + contrib
    o_ref[...] += acc


def _pick_tile(total, quantum, preferred):
    """Largest tile <= preferred that is a multiple of `quantum` and divides `total`.
    Falls back to the full extent (exempt from the (8,128) rule) if no such tile exists."""
    if total % quantum != 0:
        return total
    t = min(preferred, total)
    t = max(quantum, (t // quantum) * quantum)
    while total % t:
        t -= quantum
    return t


def weight_only_linear(x, qweight, qzeros, scales, bias, *, groupsize,
                       tb_pref=128, tn_pref=512, tk8_pref=128):
    B, K = x.shape
    K8, N = qweight.shape
    assert K8 * N_PACK == K, "qweight rows must equal in_features // 8"
    assert groupsize % N_PACK == 0 and K % groupsize == 0, \
        "groupsize must be a multiple of 8 and divide in_features"
    gs8 = groupsize // N_PACK
    G = K // groupsize
    assert scales.shape == (G, N)
    assert qzeros.shape == (G, N // N_PACK)

    # ---- tiny per-call glue on (G, N): unpack zero points, fold into -(zp * scale) ----
    qz_u = jax.lax.bitcast_convert_type(qzeros, jnp.uint32)               # (G, N//8)
    o_idx = jnp.arange(N)
    zp_shift = (BITS * (o_idx % N_PACK)).astype(jnp.uint32)
    zp_nib = (qz_u[:, o_idx // N_PACK] >> zp_shift[None, :]) & NIB_MASK   # (G, N)
    # optimum-format semantics: zp += 1; zp = where(zp > 2**bits - 1, 0, zp)
    zp_eff = ((zp_nib + 1) & NIB_MASK).astype(jnp.float32)                # (G, N)

    sc_f32 = scales.astype(jnp.float32)                                   # (G, N)
    nzs = -(zp_eff * sc_f32)                                              # (G, N)
    sc3 = sc_f32.reshape(G, 1, N)        # leading dim is unconstrained -> per-K-tile blocks
    bias2d = bias.astype(jnp.float32).reshape(1, N)
    x_bf = x.astype(jnp.bfloat16)                                         # bf16 MXU path
    xg_sum = x.astype(jnp.float32).reshape(B, G, groupsize).sum(axis=-1)  # (B, G) f32

    # ---- tile selection ----
    tb = _pick_tile(B, 8, tb_pref)                         # batch tile (v7x VMEM safety)
    tn = _pick_tile(N, 128, tn_pref)                       # lane-dense output tile; N/tn >= 2
    tk8 = _pick_tile(K8, math.lcm(16, gs8), tk8_pref)      # 8*tk8 % 128 == 0, whole groups
    assert tk8 % gs8 == 0, "K tile must cover whole quantization groups"
    gpt = tk8 // gs8
    tk = tk8 * N_PACK

    grid = (B // tb, N // tn, K8 // tk8)      # K innermost (reduction), B/N parallel

    return pl.pallas_call(
        _woq_linear_kernel,
        out_shape=jax.ShapeDtypeStruct((B, N), jnp.float32),
        grid_spec=pltpu.PrefetchScalarGridSpec(
            num_scalar_prefetch=0,
            grid=grid,
            in_specs=[
                pl.BlockSpec((tb, tk), lambda b, n, k: (b, k)),          # x (bf16)
                pl.BlockSpec((tk8, tn), lambda b, n, k: (k, n)),         # packed weights
                pl.BlockSpec((gpt, 1, tn), lambda b, n, k: (k, 0, n)),   # group scales
                pl.BlockSpec((tb, G), lambda b, n, k: (b, 0)),           # xg_sum (resident)
                pl.BlockSpec((G, tn), lambda b, n, k: (0, n)),           # -(zp*scale) (resident per n)
                pl.BlockSpec((1, tn), lambda b, n, k: (0, n)),           # bias
            ],
            out_specs=pl.BlockSpec((tb, tn), lambda b, n, k: (b, n)),
        ),
        compiler_params=pltpu.CompilerParams(
            dimension_semantics=("parallel", "parallel", "arbitrary"),
            vmem_limit_bytes=32 * 1024 * 1024,
        ),
    )(x_bf, qweight, sc3, xg_sum, nzs, bias2d)


def reference(x, qweight, qzeros, scales, bias, groupsize):
    """Pure-JAX mirror of WeightOnlyLinear.recover() + F.linear in exact f32 math."""
    K8, N = qweight.shape
    K = K8 * N_PACK
    qw_u = jax.lax.bitcast_convert_type(qweight, jnp.uint32)
    e = jnp.arange(N_PACK, dtype=jnp.uint32)
    w_nib = ((qw_u[:, None, :] >> (BITS * e)[None, :, None]) & NIB_MASK).reshape(K, N)
    qz_u = jax.lax.bitcast_convert_type(qzeros, jnp.uint32)
    o_idx = jnp.arange(N)
    zp_shift = (BITS * (o_idx % N_PACK)).astype(jnp.uint32)
    zp_nib = (qz_u[:, o_idx // N_PACK] >> zp_shift[None, :]) & NIB_MASK
    zp_eff = ((zp_nib + 1) & NIB_MASK).astype(jnp.float32)
    g = jnp.arange(K) // groupsize
    w_t = (w_nib.astype(jnp.float32) - zp_eff[g]) * scales.astype(jnp.float32)[g]   # (K, N)
    return x.astype(jnp.float32) @ w_t + bias.astype(jnp.float32)[None, :]


if __name__ == "__main__":
    B, K, N = 8, 2048, 1024       # batch, in_features, out_features
    groupsize = 64
    G = K // groupsize
    K8 = K // N_PACK

    key = jax.random.PRNGKey(0)
    k1, k2, k3, k4, k5 = jax.random.split(key, 5)
    x = jax.random.normal(k1, (B, K), dtype=jnp.float32)
    w_nib = jax.random.randint(k2, (K, N), 0, 16, dtype=jnp.int32).astype(jnp.uint32)
    zp_nib = jax.random.randint(k3, (G, N), 0, 16, dtype=jnp.int32).astype(jnp.uint32)
    scales = jax.random.uniform(k4, (G, N), minval=0.01, maxval=0.1).astype(jnp.float16)
    bias = (0.1 * jax.random.normal(k5, (N,))).astype(jnp.float16)

    shifts = BITS * jnp.arange(N_PACK, dtype=jnp.uint32)
    # pack qweight along in_features (axis 0): (K, N) -> (K//8, N) int32
    qw_u32 = jnp.sum(w_nib.reshape(K8, N_PACK, N) << shifts[None, :, None],
                     axis=1, dtype=jnp.uint32)
    qweight = jax.lax.bitcast_convert_type(qw_u32, jnp.int32)
    # pack qzeros along out_features (axis 1): (G, N) -> (G, N//8) int32
    qz_u32 = jnp.sum(zp_nib.reshape(G, N // N_PACK, N_PACK) << shifts[None, None, :],
                     axis=2, dtype=jnp.uint32)
    qzeros = jax.lax.bitcast_convert_type(qz_u32, jnp.int32)

    out = weight_only_linear(x, qweight, qzeros, scales, bias, groupsize=groupsize)
    out = jax.block_until_ready(out)

    ref = reference(x, qweight, qzeros, scales, bias, groupsize)
    # Activations go through bf16 on the MXU (the torch module itself rounds the
    # dequantized weights through float16); semantic bugs would produce O(10) errors.
    max_err = float(jnp.max(jnp.abs(out - ref)))
    assert bool(jnp.allclose(out, ref, rtol=3e-2, atol=0.3)), \
        f"mismatch vs reference (max abs err {max_err})"
    print("KERNEL_OK")
</pallas_src>

<mosaic_0001>
module attributes {stable_mosaic.version = 11 : i64} {
  func.func @_woq_linear_kernel(%arg0: i32, %arg1: i32, %arg2: i32, %arg3: memref<8x1024xbf16, #tpu.memory_space<vmem>>, %arg4: memref<128x512xi32, #tpu.memory_space<vmem>>, %arg5: memref<16x1x512xf32, #tpu.memory_space<vmem>>, %arg6: memref<8x32xf32, #tpu.memory_space<vmem>>, %arg7: memref<32x512xf32, #tpu.memory_space<vmem>>, %arg8: memref<1x512xf32, #tpu.memory_space<vmem>>, %arg9: memref<8x512xf32, #tpu.memory_space<vmem>>) attributes {dimension_semantics = [#tpu.dimension_semantics<parallel>, #tpu.dimension_semantics<parallel>, #tpu.dimension_semantics<arbitrary>], iteration_bounds = array<i64: 1, 2, 2>, scalar_prefetch = 0 : i64, scratch_operands = 0 : i64, tpu.core_type = #tpu.core_type<tc>, window_params = [{transform_indices = @transform_0, window_bounds = array<i64: 8, 1024>}, {transform_indices = @transform_1, window_bounds = array<i64: 128, 512>}, {transform_indices = @transform_2, window_bounds = array<i64: 16, 1, 512>}, {transform_indices = @transform_3, window_bounds = array<i64: 8, 32>}, {transform_indices = @transform_4, window_bounds = array<i64: 32, 512>}, {transform_indices = @transform_5, window_bounds = array<i64: 1, 512>}, {transform_indices = @transform_6, window_bounds = array<i64: 8, 512>}]} {
    %c0_i32 = arith.constant 0 : i32
    %0 = arith.cmpi eq, %arg2, %c0_i32 : i32
    %1 = arith.extui %0 : i1 to i32
    %c0_i32_0 = arith.constant 0 : i32
    %2 = arith.cmpi ne, %1, %c0_i32_0 : i32
    scf.if %2 {
      %c0_56 = arith.constant 0 : index
      %c0_57 = arith.constant 0 : index
      %179 = vector.load %arg8[%c0_56, %c0_57] : memref<1x512xf32, #tpu.memory_space<vmem>>, vector<1x512xf32>
      %c0_58 = arith.constant 0 : index
      %c0_59 = arith.constant 0 : index
      %180 = vector.load %arg6[%c0_58, %c0_59] : memref<8x32xf32, #tpu.memory_space<vmem>>, vector<8x32xf32>
      %c0_60 = arith.constant 0 : index
      %c0_61 = arith.constant 0 : index
      %181 = vector.load %arg7[%c0_60, %c0_61] : memref<32x512xf32, #tpu.memory_space<vmem>>, vector<32x512xf32>
      %cst_62 = arith.constant dense<0.000000e+00> : vector<8x512xf32>
      %182 = tpu.matmul %180, %181, %cst_62 {dimension_numbers = #tpu.dot_dimension_numbers<[1], [0], [0], [1], [0, 0, 1, 1], [], []>} : vector<8x32xf32>, vector<32x512xf32>, vector<8x512xf32> -> vector<8x512xf32>
      %183 = vector.broadcast %179 : vector<1x512xf32> to vector<8x512xf32>
      %184 = arith.addf %183, %182 : vector<8x512xf32>
      %c0_63 = arith.constant 0 : index
      %c0_64 = arith.constant 0 : index
      %185 = vector.load %arg9[%c0_63, %c0_64] : memref<8x512xf32, #tpu.memory_space<vmem>>, vector<8x512xf32>
      tpu.vector_store %arg9[%c0_63, %c0_64], %184 {strides = array<i32>} : memref<8x512xf32, #tpu.memory_space<vmem>>, vector<8x512xf32>,
    } else {
    }
    %c0 = arith.constant 0 : index
    %c0_1 = arith.constant 0 : index
    %3 = vector.load %arg4[%c0, %c0_1] : memref<128x512xi32, #tpu.memory_space<vmem>>, vector<128x512xi32>
    %4 = tpu.bitcast %3 : vector<128x512xi32> -> vector<128x512xi32>
    %5 = vector.shape_cast %4 : vector<128x512xi32> to vector<128x1x512xi32>
    %6 = vector.broadcast %5 : vector<128x1x512xi32> to vector<128x8x512xi32>
    %7 = tpu.iota {dimensions = array<i32: 1>} : vector<1x8x1xi32>
    %c4_i32 = arith.constant 4 : i32
    %8 = vector.broadcast %c4_i32 : i32 to vector<1x8x1xi32>
    %9 = arith.muli %8, %7 : vector<1x8x1xi32>
    %10 = vector.broadcast %9 : vector<1x8x1xi32> to vector<128x8x512xi32>
    %11 = arith.shrui %6, %10 : vector<128x8x512xi32>
    %c15_i32 = arith.constant 15 : i32
    %12 = vector.broadcast %c15_i32 : i32 to vector<128x8x512xi32>
    %13 = arith.andi %11, %12 : vector<128x8x512xi32>
    %14 = tpu.bitcast %13 : vector<128x8x512xi32> -> vector<128x8x512xi32>
    %15 = vector.shape_cast %14 : vector<128x8x512xi32> to vector<1024x512xi32>
    %c0_2 = arith.constant 0 : index
    %c0_3 = arith.constant 0 : index
    %16 = vector.load %arg3[%c0_2, %c0_3] : memref<8x1024xbf16, #tpu.memory_space<vmem>>, vector<8x1024xbf16>
    %17 = vector.extract_strided_slice %15 {offsets = [0, 0], sizes = [64, 512], strides = [1, 1]} : vector<1024x512xi32> to vector<64x512xi32>
    %18 = arith.sitofp %17 : vector<64x512xi32> to vector<64x512xf32>
    %19 = arith.truncf %18 : vector<64x512xf32> to vector<64x512xbf16>
    %20 = vector.extract_strided_slice %16 {offsets = [0, 0], sizes = [8, 64], strides = [1, 1]} : vector<8x1024xbf16> to vector<8x64xbf16>
    %cst = arith.constant dense<0.000000e+00> : vector<8x512xf32>
    %21 = tpu.matmul %20, %19, %cst {dimension_numbers = #tpu.dot_dimension_numbers<[1], [0], [0], [1], [0, 0, 1, 1], [], []>} : vector<8x64xbf16>, vector<64x512xbf16>, vector<8x512xf32> -> vector<8x512xf32>
    %c0_4 = arith.constant 0 : index
    %c0_5 = arith.constant 0 : index
    %c0_6 = arith.constant 0 : index
    %22 = vector.load %arg5[%c0_4, %c0_5, %c0_6] : memref<16x1x512xf32, #tpu.memory_space<vmem>>, vector<1x1x512xf32>
    %23 = vector.shape_cast %22 : vector<1x1x512xf32> to vector<1x512xf32>
    %24 = vector.broadcast %23 : vector<1x512xf32> to vector<8x512xf32>
    %25 = arith.mulf %21, %24 : vector<8x512xf32>
    %26 = vector.extract_strided_slice %15 {offsets = [64, 0], sizes = [64, 512], strides = [1, 1]} : vector<1024x512xi32> to vector<64x512xi32>
    %27 = arith.sitofp %26 : vector<64x512xi32> to vector<64x512xf32>
    %28 = arith.truncf %27 : vector<64x512xf32> to vector<64x512xbf16>
    %29 = vector.extract_strided_slice %16 {offsets = [0, 64], sizes = [8, 64], strides = [1, 1]} : vector<8x1024xbf16> to vector<8x64xbf16>
    %cst_7 = arith.constant dense<0.000000e+00> : vector<8x512xf32>
    %30 = tpu.matmul %29, %28, %cst_7 {dimension_numbers = #tpu.dot_dimension_numbers<[1], [0], [0], [1], [0, 0, 1, 1], [], []>} : vector<8x64xbf16>, vector<64x512xbf16>, vector<8x512xf32> -> vector<8x512xf32>
    %c1 = arith.constant 1 : index
    %c0_8 = arith.constant 0 : index
    %c0_9 = arith.constant 0 : index
    %31 = vector.load %arg5[%c1, %c0_8, %c0_9] : memref<16x1x512xf32, #tpu.memory_space<vmem>>, vector<1x1x512xf32>
    %32 = vector.shape_cast %31 : vector<1x1x512xf32> to vector<1x512xf32>
    %33 = vector.broadcast %32 : vector<1x512xf32> to vector<8x512xf32>
    %34 = arith.mulf %30, %33 : vector<8x512xf32>
    %35 = arith.addf %25, %34 : vector<8x512xf32>
    %36 = vector.extract_strided_slice %15 {offsets = [128, 0], sizes = [64, 512], strides = [1, 1]} : vector<1024x512xi32> to vector<64x512xi32>
    %37 = arith.sitofp %36 : vector<64x512xi32> to vector<64x512xf32>
    %38 = arith.truncf %37 : vector<64x512xf32> to vector<64x512xbf16>
    %39 = vector.extract_strided_slice %16 {offsets = [0, 128], sizes = [8, 64], strides = [1, 1]} : vector<8x1024xbf16> to vector<8x64xbf16>
    %cst_10 = arith.constant dense<0.000000e+00> : vector<8x512xf32>
    %40 = tpu.matmul %39, %38, %cst_10 {dimension_numbers = #tpu.dot_dimension_numbers<[1], [0], [0], [1], [0, 0, 1, 1], [], []>} : vector<8x64xbf16>, vector<64x512xbf16>, vector<8x512xf32> -> vector<8x512xf32>
    %c2 = arith.constant 2 : index
    %c0_11 = arith.constant 0 : index
    %c0_12 = arith.constant 0 : index
    %41 = vector.load %arg5[%c2, %c0_11, %c0_12] : memref<16x1x512xf32, #tpu.memory_space<vmem>>, vector<1x1x512xf32>
    %42 = vector.shape_cast %41 : vector<1x1x512xf32> to vector<1x512xf32>
    %43 = vector.broadcast %42 : vector<1x512xf32> to vector<8x512xf32>
    %44 = arith.mulf %40, %43 : vector<8x512xf32>
    %45 = arith.addf %35, %44 : vector<8x512xf32>
    %46 = vector.extract_strided_slice %15 {offsets = [192, 0], sizes = [64, 512], strides = [1, 1]} : vector<1024x512xi32> to vector<64x512xi32>
    %47 = arith.sitofp %46 : vector<64x512xi32> to vector<64x512xf32>
    %48 = arith.truncf %47 : vector<64x512xf32> to vector<64x512xbf16>
    %49 = vector.extract_strided_slice %16 {offsets = [0, 192], sizes = [8, 64], strides = [1, 1]} : vector<8x1024xbf16> to vector<8x64xbf16>
    %cst_13 = arith.constant dense<0.000000e+00> : vector<8x512xf32>
    %50 = tpu.matmul %49, %48, %cst_13 {dimension_numbers = #tpu.dot_dimension_numbers<[1], [0], [0], [1], [0, 0, 1, 1], [], []>} : vector<8x64xbf16>, vector<64x512xbf16>, vector<8x512xf32> -> vector<8x512xf32>
    %c3 = arith.constant 3 : index
    %c0_14 = arith.constant 0 : index
    %c0_15 = arith.constant 0 : index
    %51 = vector.load %arg5[%c3, %c0_14, %c0_15] : memref<16x1x512xf32, #tpu.memory_space<vmem>>, vector<1x1x512xf32>
    %52 = vector.shape_cast %51 : vector<1x1x512xf32> to vector<1x512xf32>
    %53 = vector.broadcast %52 : vector<1x512xf32> to vector<8x512xf32>
    %54 = arith.mulf %50, %53 : vector<8x512xf32>
    %55 = arith.addf %45, %54 : vector<8x512xf32>
    %56 = vector.extract_strided_slice %15 {offsets = [256, 0], sizes = [64, 512], strides = [1, 1]} : vector<1024x512xi32> to vector<64x512xi32>
    %57 = arith.sitofp %56 : vector<64x512xi32> to vector<64x512xf32>
    %58 = arith.truncf %57 : vector<64x512xf32> to vector<64x512xbf16>
    %59 = vector.extract_strided_slice %16 {offsets = [0, 256], sizes = [8, 64], strides = [1, 1]} : vector<8x1024xbf16> to vector<8x64xbf16>
    %cst_16 = arith.constant dense<0.000000e+00> : vector<8x512xf32>
    %60 = tpu.matmul %59, %58, %cst_16 {dimension_numbers = #tpu.dot_dimension_numbers<[1], [0], [0], [1], [0, 0, 1, 1], [], []>} : vector<8x64xbf16>, vector<64x512xbf16>, vector<8x512xf32> -> vector<8x512xf32>
    %c4 = arith.constant 4 : index
    %c0_17 = arith.constant 0 : index
    %c0_18 = arith.constant 0 : index
    %61 = vector.load %arg5[%c4, %c0_17, %c0_18] : memref<16x1x512xf32, #tpu.memory_space<vmem>>, vector<1x1x512xf32>
    %62 = vector.shape_cast %61 : vector<1x1x512xf32> to vector<1x512xf32>
    %63 = vector.broadcast %62 : vector<1x512xf32> to vector<8x512xf32>
    %64 = arith.mulf %60, %63 : vector<8x512xf32>
    %65 = arith.addf %55, %64 : vector<8x512xf32>
    %66 = vector.extract_strided_slice %15 {offsets = [320, 0], sizes = [64, 512], strides = [1, 1]} : vector<1024x512xi32> to vector<64x512xi32>
    %67 = arith.sitofp %66 : vector<64x512xi32> to vector<64x512xf32>
    %68 = arith.truncf %67 : vector<64x512xf32> to vector<64x512xbf16>
    %69 = vector.extract_strided_slice %16 {offsets = [0, 320], sizes = [8, 64], strides = [1, 1]} : vector<8x1024xbf16> to vector<8x64xbf16>
    %cst_19 = arith.constant dense<0.000000e+00> : vector<8x512xf32>
    %70 = tpu.matmul %69, %68, %cst_19 {dimension_numbers = #tpu.dot_dimension_numbers<[1], [0], [0], [1], [0, 0, 1, 1], [], []>} : vector<8x64xbf16>, vector<64x512xbf16>, vector<8x512xf32> -> vector<8x512xf32>
    %c5 = arith.constant 5 : index
    %c0_20 = arith.constant 0 : index
    %c0_21 = arith.constant 0 : index
    %71 = vector.load %arg5[%c5, %c0_20, %c0_21] : memref<16x1x512xf32, #tpu.memory_space<vmem>>, vector<1x1x512xf32>
    %72 = vector.shape_cast %71 : vector<1x1x512xf32> to vector<1x512xf32>
    %73 = vector.broadcast %72 : vector<1x512xf32> to vector<8x512xf32>
    %74 = arith.mulf %70, %73 : vector<8x512xf32>
    %75 = arith.addf %65, %74 : vector<8x512xf32>
    %76 = vector.extract_strided_slice %15 {offsets = [384, 0], sizes = [64, 512], strides = [1, 1]} : vector<1024x512xi32> to vector<64x512xi32>
    %77 = arith.sitofp %76 : vector<64x512xi32> to vector<64x512xf32>
    %78 = arith.truncf %77 : vector<64x512xf32> to vector<64x512xbf16>
    %79 = vector.extract_strided_slice %16 {offsets = [0, 384], sizes = [8, 64], strides = [1, 1]} : vector<8x1024xbf16> to vector<8x64xbf16>
    %cst_22 = arith.constant dense<0.000000e+00> : vector<8x512xf32>
    %80 = tpu.matmul %79, %78, %cst_22 {dimension_numbers = #tpu.dot_dimension_numbers<[1], [0], [0], [1], [0, 0, 1, 1], [], []>} : vector<8x64xbf16>, vector<64x512xbf16>, vector<8x512xf32> -> vector<8x512xf32>
    %c6 = arith.constant 6 : index
    %c0_23 = arith.constant 0 : index
    %c0_24 = arith.constant 0 : index
    %81 = vector.load %arg5[%c6, %c0_23, %c0_24] : memref<16x1x512xf32, #tpu.memory_space<vmem>>, vector<1x1x512xf32>
    %82 = vector.shape_cast %81 : vector<1x1x512xf32> to vector<1x512xf32>
    %83 = vector.broadcast %82 : vector<1x512xf32> to vector<8x512xf32>
    %84 = arith.mulf %80, %83 : vector<8x512xf32>
    %85 = arith.addf %75, %84 : vector<8x512xf32>
    %86 = vector.extract_strided_slice %15 {offsets = [448, 0], sizes = [64, 512], strides = [1, 1]} : vector<1024x512xi32> to vector<64x512xi32>
    %87 = arith.sitofp %86 : vector<64x512xi32> to vector<64x512xf32>
    %88 = arith.truncf %87 : vector<64x512xf32> to vector<64x512xbf16>
    %89 = vector.extract_strided_slice %16 {offsets = [0, 448], sizes = [8, 64], strides = [1, 1]} : vector<8x1024xbf16> to vector<8x64xbf16>
    %cst_25 = arith.constant dense<0.000000e+00> : vector<8x512xf32>
    %90 = tpu.matmul %89, %88, %cst_25 {dimension_numbers = #tpu.dot_dimension_numbers<[1], [0], [0], [1], [0, 0, 1, 1], [], []>} : vector<8x64xbf16>, vector<64x512xbf16>, vector<8x512xf32> -> vector<8x512xf32>
    %c7 = arith.constant 7 : index
    %c0_26 = arith.constant 0 : index
    %c0_27 = arith.constant 0 : index
    %91 = vector.load %arg5[%c7, %c0_26, %c0_27] : memref<16x1x512xf32, #tpu.memory_space<vmem>>, vector<1x1x512xf32>
    %92 = vector.shape_cast %91 : vector<1x1x512xf32> to vector<1x512xf32>
    %93 = vector.broadcast %92 : vector<1x512xf32> to vector<8x512xf32>
    %94 = arith.mulf %90, %93 : vector<8x512xf32>
    %95 = arith.addf %85, %94 : vector<8x512xf32>
    %96 = vector.extract_strided_slice %15 {offsets = [512, 0], sizes = [64, 512], strides = [1, 1]} : vector<1024x512xi32> to vector<64x512xi32>
    %97 = arith.sitofp %96 : vector<64x512xi32> to vector<64x512xf32>
    %98 = arith.truncf %97 : vector<64x512xf32> to vector<64x512xbf16>
    %99 = vector.extract_strided_slice %16 {offsets = [0, 512], sizes = [8, 64], strides = [1, 1]} : vector<8x1024xbf16> to vector<8x64xbf16>
    %cst_28 = arith.constant dense<0.000000e+00> : vector<8x512xf32>
    %100 = tpu.matmul %99, %98, %cst_28 {dimension_numbers = #tpu.dot_dimension_numbers<[1], [0], [0], [1], [0, 0, 1, 1], [], []>} : vector<8x64xbf16>, vector<64x512xbf16>, vector<8x512xf32> -> vector<8x512xf32>
    %c8 = arith.constant 8 : index
    %c0_29 = arith.constant 0 : index
    %c0_30 = arith.constant 0 : index
    %101 = vector.load %arg5[%c8, %c0_29, %c0_30] : memref<16x1x512xf32, #tpu.memory_space<vmem>>, vector<1x1x512xf32>
    %102 = vector.shape_cast %101 : vector<1x1x512xf32> to vector<1x512xf32>
    %103 = vector.broadcast %102 : vector<1x512xf32> to vector<8x512xf32>
    %104 = arith.mulf %100, %103 : vector<8x512xf32>
    %105 = arith.addf %95, %104 : vector<8x512xf32>
    %106 = vector.extract_strided_slice %15 {offsets = [576, 0], sizes = [64, 512], strides = [1, 1]} : vector<1024x512xi32> to vector<64x512xi32>
    %107 = arith.sitofp %106 : vector<64x512xi32> to vector<64x512xf32>
    %108 = arith.truncf %107 : vector<64x512xf32> to vector<64x512xbf16>
    %109 = vector.extract_strided_slice %16 {offsets = [0, 576], sizes = [8, 64], strides = [1, 1]} : vector<8x1024xbf16> to vector<8x64xbf16>
    %cst_31 = arith.constant dense<0.000000e+00> : vector<8x512xf32>
    %110 = tpu.matmul %109, %108, %cst_31 {dimension_numbers = #tpu.dot_dimension_numbers<[1], [0], [0], [1], [0, 0, 1, 1], [], []>} : vector<8x64xbf16>, vector<64x512xbf16>, vector<8x512xf32> -> vector<8x512xf32>
    %c9 = arith.constant 9 : index
    %c0_32 = arith.constant 0 : index
    %c0_33 = arith.constant 0 : index
    %111 = vector.load %arg5[%c9, %c0_32, %c0_33] : memref<16x1x512xf32, #tpu.memory_space<vmem>>, vector<1x1x512xf32>
    %112 = vector.shape_cast %111 : vector<1x1x512xf32> to vector<1x512xf32>
    %113 = vector.broadcast %112 : vector<1x512xf32> to vector<8x512xf32>
    %114 = arith.mulf %110, %113 : vector<8x512xf32>
    %115 = arith.addf %105, %114 : vector<8x512xf32>
    %116 = vector.extract_strided_slice %15 {offsets = [640, 0], sizes = [64, 512], strides = [1, 1]} : vector<1024x512xi32> to vector<64x512xi32>
    %117 = arith.sitofp %116 : vector<64x512xi32> to vector<64x512xf32>
    %118 = arith.truncf %117 : vector<64x512xf32> to vector<64x512xbf16>
    %119 = vector.extract_strided_slice %16 {offsets = [0, 640], sizes = [8, 64], strides = [1, 1]} : vector<8x1024xbf16> to vector<8x64xbf16>
    %cst_34 = arith.constant dense<0.000000e+00> : vector<8x512xf32>
    %120 = tpu.matmul %119, %118, %cst_34 {dimension_numbers = #tpu.dot_dimension_numbers<[1], [0], [0], [1], [0, 0, 1, 1], [], []>} : vector<8x64xbf16>, vector<64x512xbf16>, vector<8x512xf32> -> vector<8x512xf32>
    %c10 = arith.constant 10 : index
    %c0_35 = arith.constant 0 : index
    %c0_36 = arith.constant 0 : index
    %121 = vector.load %arg5[%c10, %c0_35, %c0_36] : memref<16x1x512xf32, #tpu.memory_space<vmem>>, vector<1x1x512xf32>
    %122 = vector.shape_cast %121 : vector<1x1x512xf32> to vector<1x512xf32>
    %123 = vector.broadcast %122 : vector<1x512xf32> to vector<8x512xf32>
    %124 = arith.mulf %120, %123 : vector<8x512xf32>
    %125 = arith.addf %115, %124 : vector<8x512xf32>
    %126 = vector.extract_strided_slice %15 {offsets = [704, 0], sizes = [64, 512], strides = [1, 1]} : vector<1024x512xi32> to vector<64x512xi32>
    %127 = arith.sitofp %126 : vector<64x512xi32> to vector<64x512xf32>
    %128 = arith.truncf %127 : vector<64x512xf32> to vector<64x512xbf16>
    %129 = vector.extract_strided_slice %16 {offsets = [0, 704], sizes = [8, 64], strides = [1, 1]} : vector<8x1024xbf16> to vector<8x64xbf16>
    %cst_37 = arith.constant dense<0.000000e+00> : vector<8x512xf32>
    %130 = tpu.matmul %129, %128, %cst_37 {dimension_numbers = #tpu.dot_dimension_numbers<[1], [0], [0], [1], [0, 0, 1, 1], [], []>} : vector<8x64xbf16>, vector<64x512xbf16>, vector<8x512xf32> -> vector<8x512xf32>
    %c11 = arith.constant 11 : index
    %c0_38 = arith.constant 0 : index
    %c0_39 = arith.constant 0 : index
    %131 = vector.load %arg5[%c11, %c0_38, %c0_39] : memref<16x1x512xf32, #tpu.memory_space<vmem>>, vector<1x1x512xf32>
    %132 = vector.shape_cast %131 : vector<1x1x512xf32> to vector<1x512xf32>
    %133 = vector.broadcast %132 : vector<1x512xf32> to vector<8x512xf32>
    %134 = arith.mulf %130, %133 : vector<8x512xf32>
    %135 = arith.addf %125, %134 : vector<8x512xf32>
    %136 = vector.extract_strided_slice %15 {offsets = [768, 0], sizes = [64, 512], strides = [1, 1]} : vector<1024x512xi32> to vector<64x512xi32>
    %137 = arith.sitofp %136 : vector<64x512xi32> to vector<64x512xf32>
    %138 = arith.truncf %137 : vector<64x512xf32> to vector<64x512xbf16>
    %139 = vector.extract_strided_slice %16 {offsets = [0, 768], sizes = [8, 64], strides = [1, 1]} : vector<8x1024xbf16> to vector<8x64xbf16>
    %cst_40 = arith.constant dense<0.000000e+00> : vector<8x512xf32>
    %140 = tpu.matmul %139, %138, %cst_40 {dimension_numbers = #tpu.dot_dimension_numbers<[1], [0], [0], [1], [0, 0, 1, 1], [], []>} : vector<8x64xbf16>, vector<64x512xbf16>, vector<8x512xf32> -> vector<8x512xf32>
    %c12 = arith.constant 12 : index
    %c0_41 = arith.constant 0 : index
    %c0_42 = arith.constant 0 : index
    %141 = vector.load %arg5[%c12, %c0_41, %c0_42] : memref<16x1x512xf32, #tpu.memory_space<vmem>>, vector<1x1x512xf32>
    %142 = vector.shape_cast %141 : vector<1x1x512xf32> to vector<1x512xf32>
    %143 = vector.broadcast %142 : vector<1x512xf32> to vector<8x512xf32>
    %144 = arith.mulf %140, %143 : vector<8x512xf32>
    %145 = arith.addf %135, %144 : vector<8x512xf32>
    %146 = vector.extract_strided_slice %15 {offsets = [832, 0], sizes = [64, 512], strides = [1, 1]} : vector<1024x512xi32> to vector<64x512xi32>
    %147 = arith.sitofp %146 : vector<64x512xi32> to vector<64x512xf32>
    %148 = arith.truncf %147 : vector<64x512xf32> to vector<64x512xbf16>
    %149 = vector.extract_strided_slice %16 {offsets = [0, 832], sizes = [8, 64], strides = [1, 1]} : vector<8x1024xbf16> to vector<8x64xbf16>
    %cst_43 = arith.constant dense<0.000000e+00> : vector<8x512xf32>
    %150 = tpu.matmul %149, %148, %cst_43 {dimension_numbers = #tpu.dot_dimension_numbers<[1], [0], [0], [1], [0, 0, 1, 1], [], []>} : vector<8x64xbf16>, vector<64x512xbf16>, vector<8x512xf32> -> vector<8x512xf32>
    %c13 = arith.constant 13 : index
    %c0_44 = arith.constant 0 : index
    %c0_45 = arith.constant 0 : index
    %151 = vector.load %arg5[%c13, %c0_44, %c0_45] : memref<16x1x512xf32, #tpu.memory_space<vmem>>, vector<1x1x512xf32>
    %152 = vector.shape_cast %151 : vector<1x1x512xf32> to vector<1x512xf32>
    %153 = vector.broadcast %152 : vector<1x512xf32> to vector<8x512xf32>
    %154 = arith.mulf %150, %153 : vector<8x512xf32>
    %155 = arith.addf %145, %154 : vector<8x512xf32>
    %156 = vector.extract_strided_slice %15 {offsets = [896, 0], sizes = [64, 512], strides = [1, 1]} : vector<1024x512xi32> to vector<64x512xi32>
    %157 = arith.sitofp %156 : vector<64x512xi32> to vector<64x512xf32>
    %158 = arith.truncf %157 : vector<64x512xf32> to vector<64x512xbf16>
    %159 = vector.extract_strided_slice %16 {offsets = [0, 896], sizes = [8, 64], strides = [1, 1]} : vector<8x1024xbf16> to vector<8x64xbf16>
    %cst_46 = arith.constant dense<0.000000e+00> : vector<8x512xf32>
    %160 = tpu.matmul %159, %158, %cst_46 {dimension_numbers = #tpu.dot_dimension_numbers<[1], [0], [0], [1], [0, 0, 1, 1], [], []>} : vector<8x64xbf16>, vector<64x512xbf16>, vector<8x512xf32> -> vector<8x512xf32>
    %c14 = arith.constant 14 : index
    %c0_47 = arith.constant 0 : index
    %c0_48 = arith.constant 0 : index
    %161 = vector.load %arg5[%c14, %c0_47, %c0_48] : memref<16x1x512xf32, #tpu.memory_space<vmem>>, vector<1x1x512xf32>
    %162 = vector.shape_cast %161 : vector<1x1x512xf32> to vector<1x512xf32>
    %163 = vector.broadcast %162 : vector<1x512xf32> to vector<8x512xf32>
    %164 = arith.mulf %160, %163 : vector<8x512xf32>
    %165 = arith.addf %155, %164 : vector<8x512xf32>
    %166 = vector.extract_strided_slice %15 {offsets = [960, 0], sizes = [64, 512], strides = [1, 1]} : vector<1024x512xi32> to vector<64x512xi32>
    %167 = arith.sitofp %166 : vector<64x512xi32> to vector<64x512xf32>
    %168 = arith.truncf %167 : vector<64x512xf32> to vector<64x512xbf16>
    %169 = vector.extract_strided_slice %16 {offsets = [0, 960], sizes = [8, 64], strides = [1, 1]} : vector<8x1024xbf16> to vector<8x64xbf16>
    %cst_49 = arith.constant dense<0.000000e+00> : vector<8x512xf32>
    %170 = tpu.matmul %169, %168, %cst_49 {dimension_numbers = #tpu.dot_dimension_numbers<[1], [0], [0], [1], [0, 0, 1, 1], [], []>} : vector<8x64xbf16>, vector<64x512xbf16>, vector<8x512xf32> -> vector<8x512xf32>
    %c15 = arith.constant 15 : index
    %c0_50 = arith.constant 0 : index
    %c0_51 = arith.constant 0 : index
    %171 = vector.load %arg5[%c15, %c0_50, %c0_51] : memref<16x1x512xf32, #tpu.memory_space<vmem>>, vector<1x1x512xf32>
    %172 = vector.shape_cast %171 : vector<1x1x512xf32> to vector<1x512xf32>
    %173 = vector.broadcast %172 : vector<1x512xf32> to vector<8x512xf32>
    %174 = arith.mulf %170, %173 : vector<8x512xf32>
    %175 = arith.addf %165, %174 : vector<8x512xf32>
    %c0_52 = arith.constant 0 : index
    %c0_53 = arith.constant 0 : index
    %176 = vector.load %arg9[%c0_52, %c0_53] : memref<8x512xf32, #tpu.memory_space<vmem>>, vector<8x512xf32>
    %177 = arith.addf %176, %175 : vector<8x512xf32>
    %c0_54 = arith.constant 0 : index
    %c0_55 = arith.constant 0 : index
    %178 = vector.load %arg9[%c0_54, %c0_55] : memref<8x512xf32, #tpu.memory_space<vmem>>, vector<8x512xf32>
    tpu.vector_store %arg9[%c0_54, %c0_55], %177 {strides = array<i32>} : memref<8x512xf32, #tpu.memory_space<vmem>>, vector<8x512xf32>,
    return
  }
  func.func @transform_0(%arg0: i32, %arg1: i32, %arg2: i32) -> (i32, i32) {
    %c0_i32 = arith.constant 0 : i32
    return %arg0, %arg2 : i32, i32
  }
  func.func @transform_1(%arg0: i32, %arg1: i32, %arg2: i32) -> (i32, i32) {
    %c0_i32 = arith.constant 0 : i32
    return %arg2, %arg1 : i32, i32
  }
  func.func @transform_2(%arg0: i32, %arg1: i32, %arg2: i32) -> (i32, i32, i32) {
    %c0_i32 = arith.constant 0 : i32
    %c0_i32_0 = arith.constant 0 : i32
    return %arg2, %c0_i32, %arg1 : i32, i32, i32
  }
  func.func @transform_3(%arg0: i32, %arg1: i32, %arg2: i32) -> (i32, i32) {
    %c0_i32 = arith.constant 0 : i32
    %c0_i32_0 = arith.constant 0 : i32
    return %arg0, %c0_i32 : i32, i32
  }
  func.func @transform_4(%arg0: i32, %arg1: i32, %arg2: i32) -> (i32, i32) {
    %c0_i32 = arith.constant 0 : i32
    %c0_i32_0 = arith.constant 0 : i32
    return %c0_i32, %arg1 : i32, i32
  }
  func.func @transform_5(%arg0: i32, %arg1: i32, %arg2: i32) -> (i32, i32) {
    %c0_i32 = arith.constant 0 : i32
    %c0_i32_0 = arith.constant 0 : i32
    return %c0_i32, %arg1 : i32, i32
  }
  func.func @transform_6(%arg0: i32, %arg1: i32, %arg2: i32) -> (i32, i32) {
    %c0_i32 = arith.constant 0 : i32
    return %arg0, %arg1 : i32, i32
  }
}

</mosaic_0001>

<bundles_post_ra>
// kernel: tpu_custom_call.1
= control target key start
LH: loop header
LB: loop body
LE: loop exit
PB: predicated region body
PF: predicated region fallthrough
CT: control target
= control target key end

     0   :  { %s11285_s0 = inlined_call_operand.hbm [shape: bf16[8,2048], index: 0, kind: input, shape index: {}]   ;;  %s11286_s1 = inlined_call_operand.hbm [shape: s32[256,1024], index: 1, kind: input, shape index: {}]   ;;  %s11287_s2 = inlined_call_operand.hbm [shape: f32[32,1,1024], index: 2, kind: input, shape index: {}]   ;;  %s11288_s3 = inlined_call_operand.hbm [shape: f32[8,32], index: 3, kind: input, shape index: {}]   ;;  %s11289_s4 = inlined_call_operand.hbm [shape: f32[32,1024], index: 4, kind: input, shape index: {}]   ;;  %s11290_s5 = inlined_call_operand.vmem [shape: f32[1,1024], index: 5, kind: input, shape index: {}]   ;;  %s11291_s6 = inlined_call_operand.hbm [shape: f32[8,1024], index: 6, kind: output, shape index: {}]  }
   0x1   :  { %11309 = sst [smem:[#allocation45_spill]] %s11285_s0 }
   0x2   :  { %11310 = sst [smem:[#allocation46_spill]] %s11286_s1 }
   0x3   :  { %11311 = sst [smem:[#allocation47_spill]] %s11287_s2 }
   0x4   :  { %11312 = sst [smem:[#allocation48_spill]] %s11289_s4 }
   0x5   :  { %11313 = sst [smem:[#allocation49_spill]] %s11290_s5 }
   0x6   :  { %11314 = sst [smem:[#allocation50_spill]] %s11291_s6 }
   0x7   :  { %11 = vsyncpa [#allocation3], 0 }
   0x8   :  { %13 = vsyncpa [#allocation3 + $0x1], 0 }
   0x9   :  { %14 = vsyncpa [#allocation6], 0 }
   0xa   :  { %16 = vsyncpa [#allocation6 + $0x1], 0 }
   0xb   :  { %17 = vsyncpa [#allocation9], 0 }
   0xc   :  { %18 = vsyncpa [#allocation4], 0 }
   0xd   :  { %20 = vsyncpa [#allocation4 + $0x1], 0  ;;  %s8470_s21 = smov 0   ;;  %s8472_s22 = smov 0  }
   0xe   :  { %s8474_s23 = smov 0   ;;  %s8476_s24 = smov 0  }
   0xf   :  { %s8478_s25 = smov 0   ;;  %s8480_s26 = smov 0  }
  0x10   :  { %s8482_s27 = smov 0   ;;  %s8484_s28 = smov 0  }
  0x11   :  { %s8486_s29 = smov 0   ;;  %s8488_s30 = smov 0  }
  0x12   :  { %s8490_s7 = smov 0   ;;  %s8492_s8 = smov 0  }
  0x13   :  { %s8494_s9 = smov 0   ;;  %s8496_s10 = smov 0  }
  0x14 LB: > { %11315 = sst [smem:[#allocation17_spill]] %s8397_s29  ;;  %s38_s11 = sadd.s32 1, %s8409_s8  ;;  %s8417_s10 = sphi %s8496_s10, %s26_s10   ;;  %s8413_s9 = sphi %s8494_s9, %s11420_s9   ;;  %s8409_s8 = sphi %s8492_s8, %s11409_s8   ;;  %s8405_s7 = sphi %s8490_s7, %s11419_s7   ;;  %s8401_s30 = sphi %s8488_s30, %s11408_s30   ;;  %s8397_s29 = sphi %s8486_s29, %s11407_s29   ;;  %s8393_s28 = sphi %s8484_s28, %s11418_s28   ;;  %s8389_s27 = sphi %s8482_s27, %s11417_s27   ;;  %s8385_s26 = sphi %s8480_s26, %s11416_s26   ;;  %s8381_s25 = sphi %s8478_s25, %s11415_s25   ;;  %s8377_s24 = sphi %s8476_s24, %s11414_s24   ;;  %s8373_s23 = sphi %s8474_s23, %s11413_s23   ;;  %s8369_s22 = sphi %s8472_s22, %s11412_s22   ;;  %s8365_s21 = sphi %s8470_s21, %s11411_s21  }
  0x15   : > { %11316 = sst [smem:[#allocation18_spill]] %s8401_s30  ;;  %s41_s12 = sadd.s32 1, %s8413_s9 }
  0x16   : > { %11317 = sst [smem:[#allocation19_spill]] %s8405_s7  ;;  %p39_p0 = scmp.ge.s32.totalorder %s38_s11, 2 }
  0x17   : > { %11318 = sst [smem:[#allocation20_spill]] %s8409_s8  ;;  %s54_s13 = sadd.s32 1, %s8397_s29 }
  0x18   : > { %p61_p1 = scmp.ne.s32.totalorder %s8397_s29, %s8393_s28  ;;  %p62_p2 = scmp.eq.s32.totalorder %s8417_s10, 0 }
  0x19   : > { %s11422_s11 = smov (%p39_p0, %s38_s11), 0  ;;  %s11424_s12 = smov (!%p39_p0, %s41_s12), %s8413_s9 }
  0x1a   : > { %11319 = sst [smem:[#allocation21_spill]] %s11422_s11  ;;  %s50_s14 = ssub.s32 %s8409_s8, %s11422_s11 }
  0x1b   : > { %p8553_p3 = por %p62_p2, %p61_p1  ;;  %p43_p4 = scmp.ge.s32.totalorder %s11424_s12, 2 }
  0x1c   : > { %p52_p5 = scmp.eq.s32.totalorder %s50_s14, 0  ;;  %p67_p6 = scmp.ne.s32.totalorder %s8393_s28, %s8389_s27 }
  0x1d   : > { %s82_s16 = sadd.s32 1, %s8385_s26  ;;  %s11426_s12 = smov (%p43_p4, %s11424_s12), 0 }
  0x1e   : > { %11321 = sst [smem:[#allocation22_spill]] %s11426_s12  ;;  %s78_s18 = ssub.s32 %s8413_s9, %s11426_s12 }
  0x1f   : > { %s8563_s17 = scalar_select %p52_p5, %s8397_s29, %s54_s13  }
  0x20   : > { %p89_p7 = scmp.ne.s32.totalorder %s8385_s26, %s8381_s25  ;;  %s79_s19 = sor.u32 %s78_s18, %s50_s14 }
  0x21   : > { %11322 = sst [smem:[#allocation23_spill]] %s8563_s17  ;;  %p160_p8 = scmp.eq.s32.totalorder %s78_s18, 0 }
  0x22   : > { %p80_p9 = scmp.eq.s32.totalorder %s79_s19, 0  ;;  %p8571_p10 = por %p89_p7, %p62_p2 }
  0x23   : > { %s162_s11 = sadd.s32 1, %s8373_s23  ;;  %p169_p11 = scmp.ne.s32.totalorder %s8373_s23, %s8369_s22 }
  0x24   : > { %s8579_s6 = scalar_select %p80_p9, %s8385_s26, %s82_s16  }
  0x25   : > { %s8582_s13 = scalar_select %p160_p8, %s8373_s23, %s162_s11  }
  0x26   : > { %11324 = sst [smem:[#allocation24_spill]] %s8579_s6  ;;  %p8589_p12 = por %p169_p11, %p62_p2 }
  0x27   : > { %11325 = sst [smem:[#allocation25_spill]] %s8582_s13  ;;  %p7890_p13 = scmp.lt.s32.totalorder %s8417_s10, 4 }
  0x28   : > { %s11295_s18 = sand.u32 1, %s8417_s10   ;;  %s268_s19 = sand.u32 1, %s8397_s29  }
  0x29   : > { %s7762_s12 = sshll.u32 %s268_s19, 5  ;;  %s7849_s17 = sshll.u32 %s8409_s8, 9 }
  0x2a   : > { %s11327_s0 = sld [smem:[#allocation45_spill]]  ;;  %s270_s4 = scalar_lea.vmem [#allocation2], %s7762_s12 }
  0x2b   : > { %s280_s16 = sshll.u32 %s270_s4, 4  ;;  %p8604_p0 = pnand %p7890_p13, %p8553_p3  ;;  %s281_s16 = int_to_ptr.vmem [resolvable:$true] %s280_s16 }
  0x2c   : > { %s7767_s6 = sshll.u32 %s8413_s9, 2  ;;  %s8611_s13 = scalar_lea.sflag [#allocation3], %s11295_s18 }
  0x2d   : > { %11329 = sst [smem:[#allocation26_spill]] %s8611_s13  ;;  %p8125_p1 = pneg %p8604_p0 }
  0x2e   : > { %s8136_s19 = scalar_lea.vmem %s281_s16, 512  ;;  %s8419_s5 = smov [#allocation2]  }
  0x2f   : > { %p8137_p2 = scmp.ne.s32.totalorder %s281_s16, %s8136_s19  ;;  %s8141_s4 = sshll.u32 %s8419_s5, 4  ;;  %s8142_s4 = int_to_ptr.vmem [resolvable:$false] %s8141_s4 }
  0x30   : > { %s278_s7 = scalar_lea.hbm %s11327_s0, %s7849_s17  ;;  %s8143_s30 = scalar_lea.vmem %s8142_s4, 1024 }
  0x31   : > { %p8139_p4 = pnand %p8137_p2, %p8125_p1  ;;  %p8144_p3 = scmp.lt.s32.totalorder %s281_s16, %s8142_s4 }
  0x32   : > { %p8145_p7 = scmp.lt.s32.totalorder %s8143_s30, %s8136_s19 }
  0x33   : > { %p8140_p5 = pneg %p8139_p4 }
  0x34   : > { %p8146_p8 = por %p8145_p7, %p8144_p3 }
  0x36   : > { %p8147_p9 = pnand %p8146_p8, %p8140_p5 }
  0x38   : > { %8150 = shalt.err (!%p8147_p9)
}
  0x39   : > { %7875 = dma.hbm_to_vmem [thread:$0]  (!%p8604_p0), %s278_s7, 512, %s281_s16, %s8611_s13  }
  0x3a   : > { %s7850_s12 = sshll.u32 %s8409_s8, 7  ;;  %p8623_p1 = pnand %p7890_p13, %p8571_p10 }
  0x3b   : > { %s298_s17 = sadd.s32 %s7850_s12, %s7767_s6  ;;  %p8631_p2 = pnand %p7890_p13, %p8589_p12 }
  0x3c   : > { %s7774_s19 = sshll.u32 %s298_s17, 4  ;;  %s11332_s2 = sld [smem:[#allocation47_spill]] }
  0x3d   : > { %s289_s20 = sand.u32 1, %s8385_s26   ;;  %s7769_s16 = sshll.u32 %s298_s17, 7 }
  0x3e   : > { %s7765_s30 = sshll.u32 %s289_s20, 9  ;;  %s11333_s1 = sld [smem:[#allocation46_spill]] }
  0x3f   : > { %s291_s14 = scalar_lea.vmem [#allocation5], %s7765_s30  ;;  %s11334_s8 = sand.u32 1, %s8417_s10  }
  0x40   : > { %s301_s12 = sshll.u32 %s291_s14, 4  ;;  %s8648_s29 = scalar_lea.sflag [#allocation6], %s11334_s8  ;;  %s302_s12 = int_to_ptr.vmem [resolvable:$true] %s301_s12 }
  0x41   : > { %p11299_p10 = pneg %p8623_p1  ;;  %s8164_s13 = scalar_lea.vmem %s302_s12, 8192 }
  0x42   : > { %s8638_s7 = scalar_lea.hbm %s11332_s2, %s7774_s19  ;;  %p8165_p12 = scmp.ne.s32.totalorder %s302_s12, %s8164_s13 }
  0x43   : > { %s8420_s17 = smov [#allocation5]  }
  0x44   : > { %s300_s6 = scalar_lea.hbm %s11333_s1, %s7769_s16  ;;  %p8167_p13 = pnand %p8165_p12, %p11299_p10 }
  0x45   : > { %s8169_s19 = sshll.u32 %s8420_s17, 4  ;;  %s8170_s19 = int_to_ptr.vmem [resolvable:$false] %s8169_s19 }
  0x46   : > { %p8168_p0 = pneg %p8167_p13  ;;  %s8171_s5 = scalar_lea.vmem %s8170_s19, 16384 }
  0x47   : > { %p8172_p4 = scmp.lt.s32.totalorder %s302_s12, %s8170_s19  ;;  %p8173_p5 = scmp.lt.s32.totalorder %s8171_s5, %s8164_s13 }
  0x49   : > { %p8174_p3 = por %p8173_p5, %p8172_p4 }
  0x4b   : > { %p8175_p7 = pnand %p8174_p3, %p8168_p0 }
  0x4d   : > { %8178 = shalt.err (!%p8175_p7)
}
  0x4e   : > { %s11301_s0 = smov 1024   ;;  %s11302_s8 = smov 512  }
  0x4f   : > { %s11303_s18 = smov 32   ;;  %s7770_s13 = sshll.u32 %s289_s20, 6 }
  0x50   : > { %7878 = dma.hbm_to_vmem [thread:$0]  (!%p8623_p1), %s300_s6, 8192, %s302_s12, %s8648_s29, %s11301_s0, %s11302_s8, %s11303_s18  }
  0x51   : > { %s315_s4 = scalar_lea.vmem [#allocation7], %s7770_s13  ;;  %s8666_s30 = sadd.s32 4294967295, %s8417_s10  }
  0x52   : > { %s325_s16 = sshll.u32 %s315_s4, 4  ;;  %s7758_s14 = sadd.s32 4294967294, %s8417_s10   ;;  %s8663_s16 = int_to_ptr.vmem [resolvable:$true] %s325_s16 }
  0x53   : > { %p68_p8 = scmp.eq.s32.totalorder %s8666_s30, 0  ;;  %p95_p9 = scmp.ne.s32.totalorder %s8381_s25, %s8377_s24 }
  0x54   : > { %p175_p12 = scmp.ne.s32.totalorder %s8369_s22, %s8365_s21  ;;  %p227_p13 = scmp.eq.s32.totalorder %s8666_s30, 3 }
  0x55   : > { %p8680_p0 = por %p68_p8, %p67_p6  ;;  %p8686_p4 = por %p95_p9, %p68_p8 }
  0x56   : > { %p8692_p5 = por %p175_p12, %p68_p8  ;;  %p8699_p3 = por %p227_p13, %p169_p11 }
  0x57   : > { %s11335_s20 = scalar_select %p8680_p0, 1, 0 }
  0x58   : > { %s11336_s6 = scalar_select %p8686_p4, 1, 0 }
  0x59   : > { %s11337_s24 = scalar_select %p8692_p5, 1, 0 }
  0x5a   : > { %s11338_s27 = scalar_select %p8699_p3, 1, 0 }
  0x5b   : > { %p233_p6 = scmp.eq.s32.totalorder %s7758_s14, 3  ;;  %p7759_p7 = scmp.ge.s32.totalorder %s8417_s10, 1 }
  0x5c   : > { %p240_p10 = scmp.lt.s32.totalorder %s8417_s10, 5  ;;  %s8424_s19 = smov [#allocation8]  }
  0x5d   : > { %p8705_p0 = por %p233_p6, %p175_p12  ;;  %s255_s5 = sshll.u32 %s8424_s19, 4  ;;  %s8713_s5 = int_to_ptr.vmem [resolvable:$true] %s255_s5 }
  0x5e   : > { %p8709_p9 = pnand %p7759_p7, %p240_p10  ;;  %s337_s13 = sand.u32 1, %s8373_s23  }
  0x5f   : > { %s11339_s12 = scalar_select %p8705_p0, 1, 0 }
  0x60   : > { %p7868_p11 = pneg %p8709_p9  ;;  %s8724_s14 = sshll.u32 %s337_s13, 7 }
  0x61   : > { %s8192_s0 = scalar_lea.vmem %s8663_s16, 1024  ;;  %p11342_p12 = pneg %p8623_p1 }
  0x62   : > { %p8720_p13 = pnand %p7868_p11, %p68_p8  ;;  %p8193_p10 = scmp.ne.s32.totalorder %s8663_s16, %s8192_s0 }
  0x63   : > { %s8425_s8 = smov [#allocation7]  }
  0x64   : > { %p8195_p6 = pnand %p8193_p10, %p11342_p12  ;;  %s8197_s19 = sshll.u32 %s8425_s8, 4  ;;  %s8198_s19 = int_to_ptr.vmem [resolvable:$false] %s8197_s19 }
  0x65   : > { %s8199_s18 = scalar_lea.vmem %s8198_s19, 2048  ;;  %p8200_p0 = scmp.lt.s32.totalorder %s8663_s16, %s8198_s19 }
  0x66   : > { %p8196_p7 = pneg %p8195_p6  ;;  %p8201_p3 = scmp.lt.s32.totalorder %s8199_s18, %s8192_s0 }
  0x68   : > { %p8202_p5 = por %p8201_p3, %p8200_p0 }
  0x6a   : > { %p8203_p4 = pnand %p8202_p5, %p8196_p7 }
  0x6c   : > { %8206 = shalt.err (!%p8203_p4)
}
  0x6d   : > { %s8426_s1 = smov 128   ;;  %s8427_s13 = smov 64  }
  0x6e   : > { %s8428_s2 = smov 4   ;;  %p8209_p11 = pneg %p8720_p13 }
  0x6f   : > { %7881 = dma.hbm_to_vmem [thread:$0]  (!%p8623_p1), %s8638_s7, 1024, %s8663_s16, %s8648_s29, %s8426_s1, %s8427_s13, %s8428_s2  }
  0x70   : > { %s8218_s8 = scalar_lea.vmem %s8713_s5, 128  ;;  %p8226_p4 = scmp.lt.s32.totalorder %s8713_s5, %s8713_s5 }
  0x71   : > { %p8219_p10 = scmp.ne.s32.totalorder %s8713_s5, %s8218_s8  ;;  %p8227_p3 = scmp.lt.s32.totalorder %s8218_s8, %s8218_s8 }
  0x73   : > { %p8221_p0 = pnand %p8219_p10, %p8209_p11  ;;  %p8228_p12 = por %p8227_p3, %p8226_p4 }
  0x75   : > { %p8222_p5 = pneg %p8221_p0 }
  0x77   : > { %p8229_p6 = pnand %p8228_p12, %p8222_p5 }
  0x79   : > { %8232 = shalt.err (!%p8229_p6)
}
  0x7a   : > { %7871 = dma.hbm_to_vmem [thread:$0]  (!%p8720_p13), %s11288_s3, 128, %s8713_s5, [#allocation9]  }
  0x7b   : > { %s7852_s1 = sshll.u32 %s8413_s9, 9  ;;  %s339_s2 = scalar_lea.vmem [#allocation10], %s8724_s14 }
  0x7c   : > { %s346_s29 = sshll.u32 %s339_s2, 4  ;;  %s11343_s16 = sld [smem:[#allocation48_spill]]  ;;  %s347_s29 = int_to_ptr.vmem [resolvable:$true] %s346_s29 }
  0x7d   : > { %p8235_p1 = pneg %p8631_p2  ;;  %s8246_s13 = scalar_lea.vmem %s347_s29, 2048 }
  0x7e   : > { %p8247_p7 = scmp.ne.s32.totalorder %s347_s29, %s8246_s13  ;;  %s8429_s4 = smov [#allocation10]  }
  0x7f   : > { %s8251_s8 = sshll.u32 %s8429_s4, 4  ;;  %s8252_s8 = int_to_ptr.vmem [resolvable:$false] %s8251_s8 }
  0x80   : > { %p8249_p11 = pnand %p8247_p7, %p8235_p1  ;;  %s8253_s0 = scalar_lea.vmem %s8252_s8, 4096 }
  0x81   : > { %p8254_p0 = scmp.lt.s32.totalorder %s347_s29, %s8252_s8  ;;  %p8255_p13 = scmp.lt.s32.totalorder %s8253_s0, %s8246_s13 }
  0x82   : > { %s345_s19 = scalar_lea.hbm %s11343_s16, %s7852_s1  ;;  %p8250_p10 = pneg %p8249_p11 }
  0x83   : > { %p8256_p5 = por %p8255_p13, %p8254_p0 }
  0x85   : > { %p8257_p4 = pnand %p8256_p5, %p8250_p10 }
  0x87   : > { %8260 = shalt.err (!%p8257_p4)
}
  0x88   : > { %s11344_s5 = smov 32   ;;  %s11345_s14 = smov 512  }
  0x89   : > { %s11346_s18 = smov 1024   ;;  %s11347_s1 = sld [smem:[#allocation26_spill]] }
  0x8b   : > { %366 = sbr.rel (%p8709_p9) target bundleno = 1267 (0x4f3), region = 44 }
  0x8f   : > { %7884 = dma.hbm_to_vmem [thread:$0]  (!%p8631_p2), %s345_s19, 2048, %s347_s29, %s11347_s1, %s11346_s18, %s11345_s14, %s11344_s5  }
  0x90   : > { %s368_s2 = sand.u32 1, %s8666_s30   ;;  %s370_s15 = sand.u32 1, %s8393_s28  }
  0x91   : > { %s7779_s7 = sshll.u32 %s370_s15, 5  ;;  %s369_s16 = scalar_lea.sflag [#allocation3], %s368_s2 }
  0x92   : > { %s8766_s13 = scalar_lea.vmem [#allocation2], %s7779_s7  ;;  %p11348_p3 = scmp.ne.s32.totalorder %s11335_s20, 0 }
  0x94   : > { %8344 = dma.done.wait (%p11348_p3), %s369_s16, 512  }
  0x95   : > { %8346 = vsyncadd (%p11348_p3), %s369_s16, 4294966784  ;;  %s379_s11 = sand.u32 1, %s8381_s25   ;;  %s378_s17 = scalar_lea.sflag [#allocation6], %s368_s2 }
  0x96   : > { %s7780_s29 = sshll.u32 %s379_s11, 9  ;;  %p11349_p2 = scmp.ne.s32.totalorder %s11336_s6, 0 }
  0x97   : > { %s8773_s19 = scalar_lea.vmem [#allocation5], %s7780_s29 }
  0x98   : > { %8348 = dma.done.wait (%p11349_p2), %s378_s17, 9216  }
  0x99   : > { %8350 = vsyncadd (%p11349_p2), %s378_s17, 4294958080  ;;  %s7781_s4 = sshll.u32 %s379_s11, 6 }
  0x9a   : > { %s8779_s8 = scalar_lea.vmem [#allocation7], %s7781_s4 }
  0x9b   : > { %8352 = dma.done.wait (%p68_p8), [#allocation9], 128  }
  0x9c   : > { %8354 = vsyncadd (%p68_p8), [#allocation9], 4294967168  ;;  %s8786_s20 = sand.u32 1, %s8369_s22   ;;  %p11350_p9 = scmp.ne.s32.totalorder %s11337_s24, 0 }
  0x9d   : > { %s7783_s0 = sshll.u32 %s8786_s20, 7 }
  0x9e   : > { %s8789_s5 = scalar_lea.vmem [#allocation10], %s7783_s0 }
  0x9f   : > { %8356 = dma.done.wait (%p11350_p9), %s369_s16, 2048  }
  0xa0   : > { %8358 = vsyncadd (%p11350_p9), %s369_s16, 4294965248  ;;  %s11351_s6 = sld [smem:[#allocation19_spill]]  ;;  %s7784_s14 = sshll.u32 %s8786_s20, 5 }
  0xa1   : > { %s11352_s2 = sld [smem:[#allocation49_spill]]  ;;  %s8803_s7 = scalar_lea.vmem [#allocation11], %s7784_s14 }
  0xa2   : > { %s11353_s11 = sld [smem:[#allocation18_spill]] }
  0xa6   : > { %s7785_s18 = sshll.u32 %s11351_s6, 2 }
  0xa7   : > { %p458_p12 = scmp.lt.s32.totalorder %s7785_s18, 7 }
  0xa8   : > { %p7786_p8 = scmp.ne.s32.totalorder %s11353_s11, 0 }
  0xa9   : > { %s11428_s18 = smov (!%p458_p12, %s7785_s18), 7 }
  0xaa   : > { %s460_s15 = scalar_lea.vmem %s11352_s2, %s11428_s18  ;;  %467 = sbr.rel (%p7786_p8) target bundleno = 383 (0x17f), region = 68 }
  0xaf   : > { %v483_v0 = vld [vmem:[%s8789_s5 + $0x68] sm:$0xff]  ;;  %v485_v1 = vld [vmem:[%s8789_s5 + $0x78] sm:$0xff]  ;;  %v482_v2 = vld [vmem:[%s8789_s5 + $0x60] sm:$0xff]  ;;  %vm486_vm0 = vcmask 261120   ;;  %v8430_v17 = vmov 0.0   ;;  %v633_v18 = vlaneseq }
  0xb0   : > { %514 = vmatprep.subr.mxu0 %v483_v0  ;;  %585 = vmatprep.subr.mxu1 %v485_v1  ;;  %v484_v3 = vld [vmem:[%s8789_s5 + $0x70] sm:$0xff]  ;;  %v479_v4 = vld [vmem:[%s8789_s5 + $0x48] sm:$0xff]  ;;  %v481_v5 = vld [vmem:[%s8789_s5 + $0x58] sm:$0xff] }
  0xb1   : > { %515 = vmatpush1.msra.mxu0 %v482_v2  ;;  %586 = vmatpush1.msra.mxu1 %v484_v3  ;;  %v478_v6 = vld [vmem:[%s8789_s5 + $0x40] sm:$0xff]  ;;  %v480_v7 = vld [vmem:[%s8789_s5 + $0x50] sm:$0xff]  ;;  %v475_v8 = vld [vmem:[%s8789_s5 + $0x28] sm:$0xff]  ;;  %v634_v19 = vshrl.u32 %v633_v18, 7 }
  0xb2   : > { %516 = vmatprep.subr.mxu0 %v479_v4  ;;  %587 = vmatprep.subr.mxu1 %v481_v5  ;;  %v477_v9 = vld [vmem:[%s8789_s5 + $0x38] sm:$0xff]  ;;  %v474_v10 = vld [vmem:[%s8789_s5 + $0x20] sm:$0xff]  ;;  %v476_v11 = vld [vmem:[%s8789_s5 + $0x30] sm:$0xff] }
  0xb3   : > { %517 = vmatpush1.msra.mxu0 %v478_v6  ;;  %588 = vmatpush1.msra.mxu1 %v480_v7  ;;  %v471_v12 = vld [vmem:[%s8789_s5 + $0x8] sm:$0xff]  ;;  %v473_v13 = vld [vmem:[%s8789_s5 + $0x18] sm:$0xff]  ;;  %v470_v14 = vld [vmem:[%s8789_s5] sm:$0xff]  ;;  %v635_v20 = vsub.s32 0, %v634_v19  ;;  %v643_v21 = vsub.s32 2, %v634_v19  ;;  %v639_v23 = vsub.s32 1, %v634_v19 }
  0xb4   : > { %518 = vmatprep.subr.mxu0 %v475_v8  ;;  %589 = vmatprep.subr.mxu1 %v477_v9  ;;  %v472_v15 = vld [vmem:[%s8789_s5 + $0x10] sm:$0xff]  ;;  %v469_v16 = vld [vmem:[#allocation8] sm:$0xff]  ;;  %v647_v24 = vsub.s32 3, %v634_v19 }
  0xb5   : > { %519 = vmatpush1.msra.mxu0 %v474_v10  ;;  %590 = vmatpush1.msra.mxu1 %v476_v11  ;;  %v468_v22 = vld [vmem:[%s460_s15] sm:$0xf] }
  0xb6   : > { %520 = vmatprep.subr.mxu0 %v471_v12  ;;  %591 = vmatprep.subr.mxu1 %v473_v13  ;;  %v636_v25 = vrot.slane %v468_v22, %v635_v20  ;;  %v644_v26 = vrot.slane %v468_v22, %v643_v21  ;;  %v640_v27 = vrot.slane %v468_v22, %v639_v23 }
  0xb7   : > { %521 = vmatpush1.msra.mxu0 %v470_v14  ;;  %554 = vmatprep.mubr.f32.mxu0 %v8430_v17  ;;  %v648_v28 = vrot.slane %v468_v22, %v647_v24 }
  0xb8   : > { %592 = vmatpush1.msra.mxu1 %v472_v15  ;;  %625 = vmatprep.mubr.f32.mxu1 %v8430_v17 }
  0xb9   : > { %7787 = vmatmul.mubr.msk.f32.vlgmr.msra.gmra.mxu0 %vm486_vm0, %v469_v16  ;;  %7788 = vmatmul.mubr.msk.f32.vlgmr.msra.gmra.mxu1 %vm486_vm0, %v469_v16 }
 0x179   : > { %v556_v29 = vpop.f32.mrf.mxu0  ;;  %v627_v30 = vpop.f32.mrf.mxu1 }
 0x17a   : > { %v653_v31 = vadd.f32 %v636_v25, %v556_v29  ;;  %v655_v32 = vadd.f32 %v644_v26, %v627_v30 }
 0x17b   : > { %v558_v33 = vpop.f32.mrf.mxu0  ;;  %v629_v34 = vpop.f32.mrf.mxu1 }
 0x17c   : > { %657 = vst [vmem:[%s8803_s7] sm:$0xff] %v653_v31  ;;  %659 = vst [vmem:[%s8803_s7 + $0x10] sm:$0xff] %v655_v32  ;;  %v654_v35 = vadd.f32 %v640_v27, %v558_v33  ;;  %v656_v36 = vadd.f32 %v648_v28, %v629_v34 }
 0x17e   : > { %658 = vst [vmem:[%s8803_s7 + $0x8] sm:$0xff] %v654_v35  ;;  %660 = vst [vmem:[%s8803_s7 + $0x18] sm:$0xff] %v656_v36 }
 0x17f PF: > { %v8832_v37 = vld [vmem:[%s8766_s13] sm:$0xff]  ;;  %v4889_v38 = vld [vmem:[%s8766_s13 + $0x8] sm:$0xff]  ;;  %v732_v39 = vlaneseq  ;;  %v8431_v42 = vmov 1966171168   ;;  %v8022_v46 = vld [vmem:[%s8773_s19 + $0x10] ss:$8 sps:$4 sm:$0xff]  }
 0x180   : > { %v7791_v40 = vcombine.low %v8832_v37, %v8832_v37  ;;  %v7805_v41 = vcombine.low %v4889_v38, %v4889_v38  ;;  %v730_v43 = vunpack.c.l.s4 %v8431_v42  ;;  %v8019_v44 = vld [vmem:[%s8773_s19] ss:$8 sps:$4 sm:$0xff]   ;;  %v8021_v45 = vld [vmem:[%s8773_s19 + $0x4] ss:$8 sps:$4 sm:$0xff]   ;;  %s8432_s17 = smov 64   ;;  %v8843_v47 = vcombine.high %v8832_v37, %v8832_v37  ;;  %s7577_s4 = sshll.u32 %s8803_s7, 4  ;;  %s7578_s4 = int_to_ptr.vmem [resolvable:$true] %s7577_s4 }
 0x181   : > { %v8024_v48 = vld [vmem:[%s8773_s19 + $0x14] ss:$8 sps:$4 sm:$0xff]   ;;  %v733_v50 = vshrl.u32 %v732_v39, 7  ;;  %v11307_v51 = vmov 0   ;;  %v8849_v52 = vcombine.high %v4889_v38, %v4889_v38  ;;  %v8026_v56 = vld [vmem:[%s8773_s19 + $0x24] ss:$8 sps:$4 sm:$0xff]  }
 0x182   : > { %5103 = vrot.lane.b32.xlu0 %v7791_v40, %s8432_s17  ;;  %5768 = vrot.lane.b32.xlu1 %v7805_v41, %s8432_s17  ;;  %v731_v49 = vunpack.c.0.s8 %v730_v43  ;;  %v8028_v59 = vld [vmem:[%s8773_s19 + $0x34] ss:$8 sps:$4 sm:$0xff]   ;;  %v8030_v60 = vld [vmem:[%s8773_s19 + $0x20] ss:$8 sps:$4 sm:$0xff]   ;;  %vm4940_vm1 = vcmask 523264   ;;  %s11400_s5 = sld [smem:[#allocation50_spill]] }
 0x183   : > { %4976 = vmatprep.mubr.bf16.mxu0 %v11307_v51  ;;  %5017 = vmatprep.mubr.bf16.mxu1 %v11307_v51  ;;  %v8853_v54 = vsub.s32 0, %v733_v50  ;;  %v8855_v55 = vsub.s32 1, %v733_v50  ;;  %v8858_v57 = vsub.s32 2, %v733_v50  ;;  %v8860_v58 = vsub.s32 3, %v733_v50  ;;  %v8031_v1 = vld [vmem:[%s8773_s19 + $0x30] ss:$8 sps:$4 sm:$0xff]  }
 0x184   : > { %v8851_v53 = vsub.s32 %v731_v49, %v733_v50  ;;  %v8871_v2 = vmul.u32 4, %v733_v50  ;;  %v8032_v6 = vld [vmem:[%s8773_s19 + $0x44] ss:$8 sps:$4 sm:$0xff]   ;;  %s7561_s14 = scalar_lea.sflag [#allocation4], %s8786_s20  ;;  %s8261_s18 = scalar_lea.vmem %s7578_s4, 512 }
 0x185   : > { %p8262_p6 = scmp.ne.s32.totalorder %s7578_s4, %s8261_s18  ;;  %p11401_p1 = scmp.ne.s32.totalorder %s11338_s27, 0 }
 0x186   : > { %5435 = vrot.lane.b32.xlu0 %v8843_v47, %s8432_s17  ;;  %v742_v61 = vrot.slane %v8021_v45, %v8851_v53  ;;  %v756_v62 = vrot.slane %v8024_v48, %v8851_v53  ;;  %v735_v63 = vrot.slane %v8019_v44, %v8851_v53  ;;  %v749_v0 = vrot.slane %v8022_v46, %v8851_v53  ;;  %s8434_s30 = smov [#allocation11]  }
 0x187   : > { %6100 = vrot.lane.b32.xlu1 %v8849_v52, %s8432_s17  ;;  %v810_v3 = vrot.slane %v8026_v56, %v8851_v53  ;;  %v824_v4 = vrot.slane %v8028_v59, %v8851_v53  ;;  %v8878_v5 = vrot.slane %v8030_v60, %v8851_v53  ;;  %v8882_v13 = vrot.slane %v8031_v1, %v8851_v53  ;;  %p8263_p7 = pnand %p8262_p6, %p11401_p1  ;;  %s8265_s1 = sshll.u32 %s8434_s30, 4  ;;  %s8266_s1 = int_to_ptr.vmem [resolvable:$false] %s8265_s1 }
 0x188   : > { %v759_v7 = vcombine.low %v742_v61, %v756_v62  ;;  %v760_v8 = vcombine.high %v742_v61, %v756_v62  ;;  %v757_v9 = vcombine.low %v735_v63, %v749_v0  ;;  %v758_v10 = vcombine.high %v735_v63, %v749_v0  ;;  %s8267_s2 = scalar_lea.vmem %s8266_s1, 1024  ;;  %p8268_p10 = scmp.lt.s32.totalorder %s7578_s4, %s8266_s1 }
 0x189   : > { %v827_v11 = vcombine.low %v810_v3, %v824_v4  ;;  %v828_v12 = vcombine.high %v810_v3, %v824_v4  ;;  %v8885_v14 = vrot.slane %v8032_v6, %v8851_v53  ;;  %v825_v21 = vcombine.low %v8878_v5, %v8882_v13  ;;  %p8264_p11 = pneg %p8263_p7  ;;  %p8269_p0 = scmp.lt.s32.totalorder %s8267_s2, %s8261_s18 }
 0x18a   : > { %v8888_v15 = vrot.slane %v759_v7, %v8851_v53  ;;  %v8891_v16 = vrot.slane %v760_v8, %v8851_v53  ;;  %v8894_v17 = vrot.slane %v757_v9, %v8851_v53  ;;  %v8897_v18 = vrot.slane %v758_v10, %v8851_v53 }
 0x18b   : > { %v8900_v19 = vrot.slane %v827_v11, %v8851_v53  ;;  %v8903_v20 = vrot.slane %v828_v12, %v8851_v53  ;;  %v826_v22 = vcombine.high %v8878_v5, %v8882_v13  ;;  %p8270_p13 = por %p8269_p0, %p8268_p10 }
 0x18c   : > { %v790_v23 = vcombine.high %v8888_v15, %v8888_v15  ;;  %v792_v24 = vcombine.high %v8891_v16, %v8891_v16  ;;  %v1884_v25 = vrot.slane %v8888_v15, %v8855_v55  ;;  %v1900_v26 = vrot.slane %v8891_v16, %v8855_v55 }
 0x18d   : > { %v1892_v27 = vrot.slane %v8888_v15, %v8860_v58  ;;  %v1908_v28 = vrot.slane %v8891_v16, %v8860_v58  ;;  %v1880_v29 = vrot.slane %v8888_v15, %v8853_v54  ;;  %v1896_v30 = vrot.slane %v8891_v16, %v8853_v54  ;;  %p8271_p5 = pnand %p8270_p13, %p8264_p11 }
 0x18e   : > { %v1916_v31 = vrot.slane %v790_v23, %v8855_v55  ;;  %v1932_v32 = vrot.slane %v792_v24, %v8855_v55  ;;  %v1924_v33 = vrot.slane %v790_v23, %v8860_v58  ;;  %v1940_v34 = vrot.slane %v792_v24, %v8860_v58 }
 0x18f   : > { %v1912_v35 = vrot.slane %v790_v23, %v8853_v54  ;;  %v1928_v36 = vrot.slane %v792_v24, %v8853_v54  ;;  %v1920_v38 = vrot.slane %v790_v23, %v8858_v57  ;;  %v1936_v39 = vrot.slane %v792_v24, %v8858_v57 }
 0x190   : > { %v3889_v40 = vshrl.u32 %v1916_v31, %v8871_v2  ;;  %v3893_v41 = vshrl.u32 %v1932_v32, %v8871_v2  ;;  %v3891_v42 = vshrl.u32 %v1924_v33, %v8871_v2  ;;  %v3895_v43 = vshrl.u32 %v1940_v34, %v8871_v2 }
 0x191   : > { %v3888_v44 = vshrl.u32 %v1912_v35, %v8871_v2  ;;  %v3892_v45 = vshrl.u32 %v1928_v36, %v8871_v2  ;;  %v3890_v46 = vshrl.u32 %v1920_v38, %v8871_v2  ;;  %v3894_v48 = vshrl.u32 %v1936_v39, %v8871_v2 }
 0x192   : > { %v4401_v49 = vand.u32 15, %v3889_v40  ;;  %v4405_v50 = vand.u32 15, %v3893_v41  ;;  %v4403_v56 = vand.u32 15, %v3891_v42  ;;  %v4407_v59 = vand.u32 15, %v3895_v43 }
 0x193   : > { %v4400_v60 = vand.u32 15, %v3888_v44  ;;  %v4404_v61 = vand.u32 15, %v3892_v45  ;;  %v4402_v62 = vand.u32 15, %v3890_v46  ;;  %v4406_v63 = vand.u32 15, %v3894_v48 }
 0x194   : > { %v4917_v0 = vcvt.s32.f32 %v4401_v49  ;;  %v4921_v1 = vcvt.s32.f32 %v4405_v50  ;;  %v4919_v3 = vcvt.s32.f32 %v4403_v56  ;;  %v4923_v4 = vcvt.s32.f32 %v4407_v59 }
 0x195   : > { %v4916_v6 = vcvt.s32.f32 %v4400_v60  ;;  %v4920_v7 = vcvt.s32.f32 %v4404_v61  ;;  %v4918_v8 = vcvt.s32.f32 %v4402_v62  ;;  %v4922_v9 = vcvt.s32.f32 %v4406_v63 }
 0x196   : > { %v4937_v10 = vpack.c.bf16 %v4921_v1, %v4917_v0  ;;  %v4939_v11 = vpack.c.bf16 %v4923_v4, %v4919_v3  ;;  %v3881_v12 = vshrl.u32 %v1884_v25, %v8871_v2  ;;  %v3885_v23 = vshrl.u32 %v1900_v26, %v8871_v2 }
 0x197   : > { %v4936_v24 = vpack.c.bf16 %v4920_v7, %v4916_v6  ;;  %v4938_v31 = vpack.c.bf16 %v4922_v9, %v4918_v8  ;;  %v3883_v32 = vshrl.u32 %v1892_v27, %v8871_v2  ;;  %v3887_v33 = vshrl.u32 %v1908_v28, %v8871_v2 }
 0x198   : > { %4952 = vmatprep.subr.bf16.mxu0 %v4937_v10  ;;  %4993 = vmatprep.subr.bf16.mxu1 %v4939_v11  ;;  %v4393_v34 = vand.u32 15, %v3881_v12  ;;  %v4397_v35 = vand.u32 15, %v3885_v23  ;;  %v3880_v36 = vshrl.u32 %v1880_v29, %v8871_v2  ;;  %v3884_v38 = vshrl.u32 %v1896_v30, %v8871_v2 }
 0x199   : > { %4953 = vmatpush1.bf16.msra.mxu0 %v4936_v24  ;;  %4994 = vmatpush1.bf16.msra.mxu1 %v4938_v31  ;;  %v4395_v39 = vand.u32 15, %v3883_v32  ;;  %v4399_v25 = vand.u32 15, %v3887_v33  ;;  %v1888_v26 = vrot.slane %v8888_v15, %v8858_v57  ;;  %v1904_v27 = vrot.slane %v8891_v16, %v8858_v57 }
 0x19a   : > { %v4909_v40 = vcvt.s32.f32 %v4393_v34  ;;  %v4913_v28 = vcvt.s32.f32 %v4397_v35  ;;  %v4392_v41 = vand.u32 15, %v3880_v36  ;;  %v4396_v42 = vand.u32 15, %v3884_v38 }
 0x19b   : > { %v4911_v43 = vcvt.s32.f32 %v4395_v39  ;;  %v4915_v44 = vcvt.s32.f32 %v4399_v25  ;;  %v3882_v29 = vshrl.u32 %v1888_v26, %v8871_v2  ;;  %v3886_v30 = vshrl.u32 %v1904_v27, %v8871_v2 }
 0x19c   : > { %v4933_v45 = vpack.c.bf16 %v4913_v28, %v4909_v40  ;;  %v4908_v46 = vcvt.s32.f32 %v4392_v41  ;;  %v4912_v48 = vcvt.s32.f32 %v4396_v42  ;;  %v789_v49 = vcombine.high %v8894_v17, %v8894_v17 }
 0x19d   : > { %v4935_v15 = vpack.c.bf16 %v4915_v44, %v4911_v43  ;;  %v4394_v50 = vand.u32 15, %v3882_v29  ;;  %v4398_v56 = vand.u32 15, %v3886_v30  ;;  %v791_v16 = vcombine.high %v8897_v18, %v8897_v18 }
 0x19e   : > { %4954 = vmatprep.subr.bf16.mxu0 %v4933_v45  ;;  %v4932_v59 = vpack.c.bf16 %v4912_v48, %v4908_v46  ;;  %v1852_v60 = vrot.slane %v789_v49, %v8855_v55  ;;  %v1860_v61 = vrot.slane %v789_v49, %v8860_v58  ;;  %v1848_v62 = vrot.slane %v789_v49, %v8853_v54 }
 0x19f   : > { %4995 = vmatprep.subr.bf16.mxu1 %v4935_v15  ;;  %v4910_v63 = vcvt.s32.f32 %v4394_v50  ;;  %v4914_v0 = vcvt.s32.f32 %v4398_v56  ;;  %v1868_v1 = vrot.slane %v791_v16, %v8855_v55  ;;  %v1876_v3 = vrot.slane %v791_v16, %v8860_v58 }
 0x1a0   : > { %4955 = vmatpush1.bf16.msra.mxu0 %v4932_v59  ;;  %v3873_v4 = vshrl.u32 %v1852_v60, %v8871_v2  ;;  %v3875_v6 = vshrl.u32 %v1860_v61, %v8871_v2  ;;  %v1864_v7 = vrot.slane %v791_v16, %v8853_v54  ;;  %v3872_v8 = vshrl.u32 %v1848_v62, %v8871_v2 }
 0x1a1   : > { %v4934_v9 = vpack.c.bf16 %v4914_v0, %v4910_v63  ;;  %v3877_v10 = vshrl.u32 %v1868_v1, %v8871_v2  ;;  %v3879_v11 = vshrl.u32 %v1876_v3, %v8871_v2  ;;  %v1856_v12 = vrot.slane %v789_v49, %v8858_v57 }
 0x1a2   : > { %v4385_v23 = vand.u32 15, %v3873_v4  ;;  %v4387_v24 = vand.u32 15, %v3875_v6  ;;  %v3876_v31 = vshrl.u32 %v1864_v7, %v8871_v2  ;;  %v4384_v32 = vand.u32 15, %v3872_v8 }
 0x1a3   : > { %4996 = vmatpush1.bf16.msra.mxu1 %v4934_v9  ;;  %v4389_v33 = vand.u32 15, %v3877_v10  ;;  %v4391_v34 = vand.u32 15, %v3879_v11  ;;  %v1872_v35 = vrot.slane %v791_v16, %v8858_v57  ;;  %v3874_v36 = vshrl.u32 %v1856_v12, %v8871_v2 }
 0x1a4   : > { %v4901_v38 = vcvt.s32.f32 %v4385_v23  ;;  %v4903_v39 = vcvt.s32.f32 %v4387_v24  ;;  %v4388_v25 = vand.u32 15, %v3876_v31  ;;  %v4900_v26 = vcvt.s32.f32 %v4384_v32 }
 0x1a5   : > { %v4905_v27 = vcvt.s32.f32 %v4389_v33  ;;  %v4907_v40 = vcvt.s32.f32 %v4391_v34  ;;  %v3878_v28 = vshrl.u32 %v1872_v35, %v8871_v2  ;;  %v4386_v41 = vand.u32 15, %v3874_v36 }
 0x1a6   : > { %v4904_v42 = vcvt.s32.f32 %v4388_v25  ;;  %v1820_v43 = vrot.slane %v8894_v17, %v8855_v55  ;;  %v1836_v44 = vrot.slane %v8897_v18, %v8855_v55  ;;  %v1828_v29 = vrot.slane %v8894_v17, %v8860_v58 }
 0x1a7   : > { %v4929_v30 = vpack.c.bf16 %v4905_v27, %v4901_v38  ;;  %v4931_v45 = vpack.c.bf16 %v4907_v40, %v4903_v39  ;;  %v4390_v46 = vand.u32 15, %v3878_v28  ;;  %v4902_v48 = vcvt.s32.f32 %v4386_v41 }
 0x1a8   : > { %v4928_v49 = vpack.c.bf16 %v4904_v42, %v4900_v26  ;;  %v3865_v15 = vshrl.u32 %v1820_v43, %v8871_v2  ;;  %v3869_v50 = vshrl.u32 %v1836_v44, %v8871_v2  ;;  %v1844_v56 = vrot.slane %v8897_v18, %v8860_v58 }
 0x1a9   : > { %4956 = vmatprep.subr.bf16.mxu0 %v4929_v30  ;;  %4997 = vmatprep.subr.bf16.mxu1 %v4931_v45  ;;  %v4906_v16 = vcvt.s32.f32 %v4390_v46  ;;  %v3867_v59 = vshrl.u32 %v1828_v29, %v8871_v2  ;;  %v1816_v60 = vrot.slane %v8894_v17, %v8853_v54  ;;  %v1832_v61 = vrot.slane %v8897_v18, %v8853_v54 }
 0x1aa   : > { %4957 = vmatpush1.bf16.msra.mxu0 %v4928_v49  ;;  %v4377_v62 = vand.u32 15, %v3865_v15  ;;  %v4381_v63 = vand.u32 15, %v3869_v50  ;;  %v3871_v0 = vshrl.u32 %v1844_v56, %v8871_v2  ;;  %v1824_v1 = vrot.slane %v8894_v17, %v8858_v57 }
 0x1ab   : > { %v4930_v3 = vpack.c.bf16 %v4906_v16, %v4902_v48  ;;  %v4379_v4 = vand.u32 15, %v3867_v59  ;;  %v3864_v6 = vshrl.u32 %v1816_v60, %v8871_v2  ;;  %v3868_v7 = vshrl.u32 %v1832_v61, %v8871_v2 }
 0x1ac   : > { %v4893_v8 = vcvt.s32.f32 %v4377_v62  ;;  %v4897_v9 = vcvt.s32.f32 %v4381_v63  ;;  %v4383_v10 = vand.u32 15, %v3871_v0  ;;  %v1840_v11 = vrot.slane %v8897_v18, %v8858_v57 }
 0x1ad   : > { %4998 = vmatpush1.bf16.msra.mxu1 %v4930_v3  ;;  %v4895_v12 = vcvt.s32.f32 %v4379_v4  ;;  %v4376_v23 = vand.u32 15, %v3864_v6  ;;  %v4380_v24 = vand.u32 15, %v3868_v7  ;;  %v3866_v31 = vshrl.u32 %v1824_v1, %v8871_v2 }
 0x1ae   : > { %v4925_v17 = vpack.c.bf16 %v4897_v9, %v4893_v8  ;;  %v4899_v32 = vcvt.s32.f32 %v4383_v10  ;;  %v3870_v33 = vshrl.u32 %v1840_v11, %v8871_v2  ;;  %v858_v34 = vcombine.high %v8900_v19, %v8900_v19 }
 0x1af   : > { %v4892_v35 = vcvt.s32.f32 %v4376_v23  ;;  %v4896_v36 = vcvt.s32.f32 %v4380_v24  ;;  %v4378_v38 = vand.u32 15, %v3866_v31  ;;  %v860_v39 = vcombine.high %v8903_v20, %v8903_v20 }
 0x1b0   : > { %4958 = vmatprep.subr.bf16.mxu0 %v4925_v17  ;;  %v4927_v18 = vpack.c.bf16 %v4899_v32, %v4895_v12  ;;  %v4382_v25 = vand.u32 15, %v3870_v33  ;;  %v2044_v26 = vrot.slane %v858_v34, %v8855_v55  ;;  %v2052_v27 = vrot.slane %v858_v34, %v8860_v58 }
 0x1b1   : > { %v4924_v40 = vpack.c.bf16 %v4896_v36, %v4892_v35  ;;  %v4894_v28 = vcvt.s32.f32 %v4378_v38  ;;  %v2060_v41 = vrot.slane %v860_v39, %v8855_v55  ;;  %v2068_v42 = vrot.slane %v860_v39, %v8860_v58 }
 0x1b2   : > { %4999 = vmatprep.subr.bf16.mxu1 %v4927_v18  ;;  %v4898_v43 = vcvt.s32.f32 %v4382_v25  ;;  %v3921_v44 = vshrl.u32 %v2044_v26, %v8871_v2  ;;  %v3923_v29 = vshrl.u32 %v2052_v27, %v8871_v2  ;;  %v2040_v30 = vrot.slane %v858_v34, %v8853_v54 }
 0x1b3   : > { %4959 = vmatpush1.bf16.msra.mxu0 %v4924_v40  ;;  %v3925_v45 = vshrl.u32 %v2060_v41, %v8871_v2  ;;  %v3927_v46 = vshrl.u32 %v2068_v42, %v8871_v2  ;;  %v2056_v48 = vrot.slane %v860_v39, %v8853_v54  ;;  %v2048_v49 = vrot.slane %v858_v34, %v8858_v57 }
 0x1b4   : > { %v4926_v15 = vpack.c.bf16 %v4898_v43, %v4894_v28  ;;  %v4433_v50 = vand.u32 15, %v3921_v44  ;;  %v4435_v56 = vand.u32 15, %v3923_v29  ;;  %v3920_v16 = vshrl.u32 %v2040_v30, %v8871_v2 }
 0x1b5   : > { %v4437_v59 = vand.u32 15, %v3925_v45  ;;  %v4439_v60 = vand.u32 15, %v3927_v46  ;;  %v3924_v61 = vshrl.u32 %v2056_v48, %v8871_v2  ;;  %v2064_v62 = vrot.slane %v860_v39, %v8858_v57 }
 0x1b6   : > { %5000 = vmatpush1.bf16.msra.mxu1 %v4926_v15  ;;  %7789 = vmatmul.mubr.msk.bf16.vlgmr.msra.gmra.mxu0 %vm4940_vm1, %v8832_v37  ;;  %v5077_v63 = vcvt.s32.f32 %v4433_v50  ;;  %v5079_v0 = vcvt.s32.f32 %v4435_v56  ;;  %v4432_v1 = vand.u32 15, %v3920_v16  ;;  %v3922_v3 = vshrl.u32 %v2048_v49, %v8871_v2 }
 0x1b7   : > { %v5081_v4 = vcvt.s32.f32 %v4437_v59  ;;  %v5083_v6 = vcvt.s32.f32 %v4439_v60  ;;  %v4436_v7 = vand.u32 15, %v3924_v61  ;;  %v3926_v8 = vshrl.u32 %v2064_v62, %v8871_v2  ;;  %5140 = vmatprep.mubr.bf16.mxu0 %v11307_v51 }
 0x1b8   : > { %v5076_v9 = vcvt.s32.f32 %v4432_v1  ;;  %v4434_v10 = vand.u32 15, %v3922_v3  ;;  %v2012_v11 = vrot.slane %v8900_v19, %v8855_v55  ;;  %v2028_v12 = vrot.slane %v8903_v20, %v8855_v55 }
 0x1b9   : > { %7790 = vmatmul.mubr.msk.bf16.vlgmr.msra.gmra.mxu1 %vm4940_vm1, %v8832_v37  ;;  %v5097_v23 = vpack.c.bf16 %v5081_v4, %v5077_v63  ;;  %v5099_v24 = vpack.c.bf16 %v5083_v6, %v5079_v0  ;;  %v5080_v31 = vcvt.s32.f32 %v4436_v7  ;;  %v4438_v17 = vand.u32 15, %v3926_v8 }
 0x1ba   : > { %v5078_v32 = vcvt.s32.f32 %v4434_v10  ;;  %v3913_v33 = vshrl.u32 %v2012_v11, %v8871_v2  ;;  %v3917_v34 = vshrl.u32 %v2028_v12, %v8871_v2  ;;  %v2020_v35 = vrot.slane %v8900_v19, %v8860_v58  ;;  %5181 = vmatprep.mubr.bf16.mxu1 %v11307_v51 }
 0x1bb   : > { %5116 = vmatprep.subr.bf16.mxu0 %v5097_v23  ;;  %5157 = vmatprep.subr.bf16.mxu1 %v5099_v24  ;;  %v5096_v36 = vpack.c.bf16 %v5080_v31, %v5076_v9  ;;  %v5082_v38 = vcvt.s32.f32 %v4438_v17  ;;  %v2036_v37 = vrot.slane %v8903_v20, %v8860_v58  ;;  %v2008_v39 = vrot.slane %v8900_v19, %v8853_v54 }
 0x1bc   : > { %v4425_v18 = vand.u32 15, %v3913_v33  ;;  %v4429_v25 = vand.u32 15, %v3917_v34  ;;  %v3915_v26 = vshrl.u32 %v2020_v35, %v8871_v2  ;;  %v2024_v27 = vrot.slane %v8903_v20, %v8853_v54 }
 0x1bd   : > { %5117 = vmatpush1.bf16.msra.mxu0 %v5096_v36  ;;  %v5098_v40 = vpack.c.bf16 %v5082_v38, %v5078_v32  ;;  %v3919_v28 = vshrl.u32 %v2036_v37, %v8871_v2  ;;  %v3912_v41 = vshrl.u32 %v2008_v39, %v8871_v2  ;;  %v2016_v42 = vrot.slane %v8900_v19, %v8858_v57 }
 0x1be   : > { %v5069_v43 = vcvt.s32.f32 %v4425_v18  ;;  %v5073_v44 = vcvt.s32.f32 %v4429_v25  ;;  %v4427_v29 = vand.u32 15, %v3915_v26  ;;  %v3916_v30 = vshrl.u32 %v2024_v27, %v8871_v2 }
 0x1bf   : > { %5158 = vmatpush1.bf16.msra.mxu1 %v5098_v40  ;;  %v4431_v45 = vand.u32 15, %v3919_v28  ;;  %v4424_v46 = vand.u32 15, %v3912_v41  ;;  %v2032_v48 = vrot.slane %v8903_v20, %v8858_v57  ;;  %v3914_v49 = vshrl.u32 %v2016_v42, %v8871_v2 }
 0x1c0   : > { %v5093_v15 = vpack.c.bf16 %v5073_v44, %v5069_v43  ;;  %v5071_v50 = vcvt.s32.f32 %v4427_v29  ;;  %v4428_v56 = vand.u32 15, %v3916_v30  ;;  %v9050_v19 = vrot.slane %v825_v21, %v8851_v53 }
 0x1c1   : > { %v5075_v16 = vcvt.s32.f32 %v4431_v45  ;;  %v5068_v59 = vcvt.s32.f32 %v4424_v46  ;;  %v3918_v60 = vshrl.u32 %v2032_v48, %v8871_v2  ;;  %v4426_v61 = vand.u32 15, %v3914_v49 }
 0x1c2   : > { %5118 = vmatprep.subr.bf16.mxu0 %v5093_v15  ;;  %v5072_v62 = vcvt.s32.f32 %v4428_v56  ;;  %v9057_v20 = vrot.slane %v826_v22, %v8851_v53  ;;  %v857_v63 = vcombine.high %v9050_v19, %v9050_v19  ;;  %v1948_v21 = vrot.slane %v9050_v19, %v8855_v55 }
 0x1c3   : > { %v5095_v0 = vpack.c.bf16 %v5075_v16, %v5071_v50  ;;  %v4430_v1 = vand.u32 15, %v3918_v60  ;;  %v5070_v3 = vcvt.s32.f32 %v4426_v61  ;;  %v1956_v4 = vrot.slane %v9050_v19, %v8860_v58  ;;  %v8034_v61 = vld [vmem:[%s8773_s19 + $0x54] ss:$8 sps:$4 sm:$0xff]  }
 0x1c4   : > { %v5092_v6 = vpack.c.bf16 %v5072_v62, %v5068_v59  ;;  %v859_v7 = vcombine.high %v9057_v20, %v9057_v20  ;;  %v1980_v5 = vrot.slane %v857_v63, %v8855_v55  ;;  %v1988_v13 = vrot.slane %v857_v63, %v8860_v58 }
 0x1c5   : > { %5159 = vmatprep.subr.bf16.mxu1 %v5095_v0  ;;  %v5074_v22 = vcvt.s32.f32 %v4430_v1  ;;  %v1976_v8 = vrot.slane %v857_v63, %v8853_v54  ;;  %v1984_v9 = vrot.slane %v857_v63, %v8858_v57  ;;  %v1964_v10 = vrot.slane %v9057_v20, %v8855_v55 }
 0x1c6   : > { %5119 = vmatpush1.bf16.msra.mxu0 %v5092_v6  ;;  %v1996_v11 = vrot.slane %v859_v7, %v8855_v55  ;;  %v3905_v12 = vshrl.u32 %v1980_v5, %v8871_v2  ;;  %v2004_v23 = vrot.slane %v859_v7, %v8860_v58  ;;  %v3907_v24 = vshrl.u32 %v1988_v13, %v8871_v2 }
 0x1c7   : > { %v5094_v31 = vpack.c.bf16 %v5074_v22, %v5070_v3  ;;  %v1992_v17 = vrot.slane %v859_v7, %v8853_v54  ;;  %v3904_v32 = vshrl.u32 %v1976_v8, %v8871_v2  ;;  %v2000_v33 = vrot.slane %v859_v7, %v8858_v57  ;;  %v8036_v8 = vld [vmem:[%s8773_s19 + $0x40] ss:$8 sps:$4 sm:$0xff]  }
 0x1c8   : > { %v3909_v34 = vshrl.u32 %v1996_v11, %v8871_v2  ;;  %v4417_v35 = vand.u32 15, %v3905_v12  ;;  %v3911_v36 = vshrl.u32 %v2004_v23, %v8871_v2  ;;  %v4419_v38 = vand.u32 15, %v3907_v24 }
 0x1c9   : > { %5160 = vmatpush1.bf16.msra.mxu1 %v5094_v31  ;;  %v3908_v37 = vshrl.u32 %v1992_v17, %v8871_v2  ;;  %v4416_v39 = vand.u32 15, %v3904_v32  ;;  %v3906_v18 = vshrl.u32 %v1984_v9, %v8871_v2  ;;  %v3910_v25 = vshrl.u32 %v2000_v33, %v8871_v2  ;;  %v8037_v32 = vld [vmem:[%s8773_s19 + $0x50] ss:$8 sps:$4 sm:$0xff]  }
 0x1ca   : > { %v4421_v26 = vand.u32 15, %v3909_v34  ;;  %v5061_v27 = vcvt.s32.f32 %v4417_v35  ;;  %v4423_v40 = vand.u32 15, %v3911_v36  ;;  %v5063_v28 = vcvt.s32.f32 %v4419_v38  ;;  %v9110_v35 = vld [vmem:[%s8766_s13 + $0x10] sm:$0xff] }
 0x1cb   : > { %v4420_v41 = vand.u32 15, %v3908_v37  ;;  %v5060_v42 = vcvt.s32.f32 %v4416_v39  ;;  %v4418_v43 = vand.u32 15, %v3906_v18  ;;  %v4422_v44 = vand.u32 15, %v3910_v25 }
 0x1cc   : > { %v5065_v29 = vcvt.s32.f32 %v4421_v26  ;;  %v5067_v30 = vcvt.s32.f32 %v4423_v40  ;;  %v3897_v45 = vshrl.u32 %v1948_v21, %v8871_v2  ;;  %v3901_v46 = vshrl.u32 %v1964_v10, %v8871_v2 }
 0x1cd   : > { %v5064_v48 = vcvt.s32.f32 %v4420_v41  ;;  %v5062_v49 = vcvt.s32.f32 %v4418_v43  ;;  %v5066_v15 = vcvt.s32.f32 %v4422_v44  ;;  %v1972_v50 = vrot.slane %v9057_v20, %v8860_v58 }
 0x1ce   : > { %v5089_v56 = vpack.c.bf16 %v5065_v29, %v5061_v27  ;;  %v5091_v16 = vpack.c.bf16 %v5067_v30, %v5063_v28  ;;  %v4409_v59 = vand.u32 15, %v3897_v45  ;;  %v4413_v60 = vand.u32 15, %v3901_v46 }
 0x1cf   : > { %v5088_v62 = vpack.c.bf16 %v5064_v48, %v5060_v42  ;;  %v5090_v63 = vpack.c.bf16 %v5066_v15, %v5062_v49  ;;  %v3899_v0 = vshrl.u32 %v1956_v4, %v8871_v2  ;;  %v3903_v21 = vshrl.u32 %v1972_v50, %v8871_v2 }
 0x1d0   : > { %5120 = vmatprep.subr.bf16.mxu0 %v5089_v56  ;;  %5161 = vmatprep.subr.bf16.mxu1 %v5091_v16  ;;  %v5053_v1 = vcvt.s32.f32 %v4409_v59  ;;  %v5057_v3 = vcvt.s32.f32 %v4413_v60  ;;  %v1944_v6 = vrot.slane %v9050_v19, %v8853_v54  ;;  %v1960_v7 = vrot.slane %v9057_v20, %v8853_v54 }
 0x1d1   : > { %5121 = vmatpush1.bf16.msra.mxu0 %v5088_v62  ;;  %5162 = vmatpush1.bf16.msra.mxu1 %v5090_v63  ;;  %v4411_v5 = vand.u32 15, %v3899_v0  ;;  %v4415_v13 = vand.u32 15, %v3903_v21  ;;  %v1952_v4 = vrot.slane %v9050_v19, %v8858_v57  ;;  %v1968_v22 = vrot.slane %v9057_v20, %v8858_v57 }
 0x1d2   : > { %v5085_v9 = vpack.c.bf16 %v5057_v3, %v5053_v1  ;;  %v3896_v10 = vshrl.u32 %v1944_v6, %v8871_v2  ;;  %v3900_v11 = vshrl.u32 %v1960_v7, %v8871_v2  ;;  %v892_v12 = vrot.slane %v8034_v61, %v8851_v53 }
 0x1d3   : > { %v5055_v23 = vcvt.s32.f32 %v4411_v5  ;;  %v5059_v24 = vcvt.s32.f32 %v4415_v13  ;;  %v3898_v31 = vshrl.u32 %v1952_v4, %v8871_v2  ;;  %v3902_v17 = vshrl.u32 %v1968_v22, %v8871_v2 }
 0x1d4   : > { %5122 = vmatprep.subr.bf16.mxu0 %v5085_v9  ;;  %v4408_v19 = vand.u32 15, %v3896_v10  ;;  %v4412_v33 = vand.u32 15, %v3900_v11  ;;  %v895_v20 = vcombine.low %v8885_v14, %v892_v12  ;;  %v896_v34 = vcombine.high %v8885_v14, %v892_v12 }
 0x1d5   : > { %v5087_v36 = vpack.c.bf16 %v5059_v24, %v5055_v23  ;;  %v4410_v38 = vand.u32 15, %v3898_v31  ;;  %v4414_v37 = vand.u32 15, %v3902_v17  ;;  %v9113_v39 = vrot.slane %v8036_v8, %v8851_v53 }
 0x1d6   : > { %v5052_v18 = vcvt.s32.f32 %v4408_v19  ;;  %v5056_v25 = vcvt.s32.f32 %v4412_v33  ;;  %v9116_v26 = vrot.slane %v895_v20, %v8851_v53  ;;  %v9119_v27 = vrot.slane %v896_v34, %v8851_v53 }
 0x1d7   : > { %5163 = vmatprep.subr.bf16.mxu1 %v5087_v36  ;;  %v5054_v40 = vcvt.s32.f32 %v4410_v38  ;;  %v5058_v28 = vcvt.s32.f32 %v4414_v37  ;;  %v9122_v14 = vrot.slane %v8037_v32, %v8851_v53  ;;  %v7819_v41 = vcombine.low %v9110_v35, %v9110_v35 }
 0x1d8   : > { %v5084_v42 = vpack.c.bf16 %v5056_v25, %v5052_v18  ;;  %v926_v43 = vcombine.high %v9116_v26, %v9116_v26  ;;  %v928_v44 = vcombine.high %v9119_v27, %v9119_v27  ;;  %v2140_v29 = vrot.slane %v9116_v26, %v8855_v55 }
 0x1d9   : > { %v5086_v30 = vpack.c.bf16 %v5058_v28, %v5054_v40  ;;  %v2156_v45 = vrot.slane %v9119_v27, %v8855_v55  ;;  %v2148_v46 = vrot.slane %v9116_v26, %v8860_v58  ;;  %v2164_v48 = vrot.slane %v9119_v27, %v8860_v58  ;;  %6433 = vrot.lane.b32.xlu0 %v7819_v41, %s8432_s17 }
 0x1da   : > { %5123 = vmatpush1.bf16.msra.mxu0 %v5084_v42  ;;  %v2172_v49 = vrot.slane %v926_v43, %v8855_v55  ;;  %v2188_v15 = vrot.slane %v928_v44, %v8855_v55  ;;  %v2180_v50 = vrot.slane %v926_v43, %v8860_v58  ;;  %v2196_v56 = vrot.slane %v928_v44, %v8860_v58 }
 0x1db   : > { %5164 = vmatpush1.bf16.msra.mxu1 %v5086_v30  ;;  %v2168_v16 = vrot.slane %v926_v43, %v8853_v54  ;;  %v2184_v59 = vrot.slane %v928_v44, %v8853_v54  ;;  %v2176_v60 = vrot.slane %v926_v43, %v8858_v57  ;;  %v2192_v61 = vrot.slane %v928_v44, %v8858_v57 }
 0x1dc   : > { %v3953_v62 = vshrl.u32 %v2172_v49, %v8871_v2  ;;  %v3957_v63 = vshrl.u32 %v2188_v15, %v8871_v2  ;;  %v3955_v0 = vshrl.u32 %v2180_v50, %v8871_v2  ;;  %v3959_v21 = vshrl.u32 %v2196_v56, %v8871_v2  ;;  %v8039_v50 = vld [vmem:[%s8773_s19 + $0x64] ss:$8 sps:$4 sm:$0xff]  }
 0x1dd   : > { %v3952_v1 = vshrl.u32 %v2168_v16, %v8871_v2  ;;  %v3956_v3 = vshrl.u32 %v2184_v59, %v8871_v2  ;;  %v3954_v6 = vshrl.u32 %v2176_v60, %v8871_v2  ;;  %v3958_v7 = vshrl.u32 %v2192_v61, %v8871_v2  ;;  %v8041_v60 = vld [vmem:[%s8773_s19 + $0x74] ss:$8 sps:$4 sm:$0xff]  }
 0x1de   : > { %v4465_v5 = vand.u32 15, %v3953_v62  ;;  %v4469_v13 = vand.u32 15, %v3957_v63  ;;  %v4467_v4 = vand.u32 15, %v3955_v0  ;;  %v4471_v22 = vand.u32 15, %v3959_v21 }
 0x1df   : > { %v4464_v8 = vand.u32 15, %v3952_v1  ;;  %v4468_v9 = vand.u32 15, %v3956_v3  ;;  %v4466_v10 = vand.u32 15, %v3954_v6  ;;  %v4470_v11 = vand.u32 15, %v3958_v7 }
 0x1e0   : > { %v5246_v12 = vcvt.s32.f32 %v4465_v5  ;;  %v5250_v23 = vcvt.s32.f32 %v4469_v13  ;;  %v5248_v24 = vcvt.s32.f32 %v4467_v4  ;;  %v5252_v31 = vcvt.s32.f32 %v4471_v22 }
 0x1e1   : > { %v9155_v17 = vcvt.s32.f32 %v4464_v8  ;;  %v9157_v32 = vcvt.s32.f32 %v4468_v9  ;;  %v9159_v19 = vcvt.s32.f32 %v4466_v10  ;;  %v9161_v33 = vcvt.s32.f32 %v4470_v11 }
 0x1e2   : > { %v5266_v20 = vpack.c.bf16 %v5250_v23, %v5246_v12  ;;  %v5268_v34 = vpack.c.bf16 %v5252_v31, %v5248_v24  ;;  %v3945_v36 = vshrl.u32 %v2140_v29, %v8871_v2  ;;  %v3949_v38 = vshrl.u32 %v2156_v45, %v8871_v2 }
 0x1e3   : > { %v5265_v37 = vpack.c.bf16 %v9157_v32, %v9155_v17  ;;  %v5267_v18 = vpack.c.bf16 %v9161_v33, %v9159_v19  ;;  %v3947_v25 = vshrl.u32 %v2148_v46, %v8871_v2  ;;  %v3951_v40 = vshrl.u32 %v2164_v48, %v8871_v2 }
 0x1e4   : > { %5282 = vmatprep.subr.bf16.mxu0 %v5266_v20  ;;  %5323 = vmatprep.subr.bf16.mxu1 %v5268_v34  ;;  %v4457_v28 = vand.u32 15, %v3945_v36  ;;  %v4461_v41 = vand.u32 15, %v3949_v38  ;;  %v2136_v42 = vrot.slane %v9116_v26, %v8853_v54  ;;  %v2152_v43 = vrot.slane %v9119_v27, %v8853_v54 }
 0x1e5   : > { %v4459_v44 = vand.u32 15, %v3947_v25  ;;  %v4463_v29 = vand.u32 15, %v3951_v40  ;;  %v2144_v30 = vrot.slane %v9116_v26, %v8858_v57  ;;  %v2160_v45 = vrot.slane %v9119_v27, %v8858_v57 }
 0x1e6   : > { %v9179_v46 = vcvt.s32.f32 %v4457_v28  ;;  %v9181_v48 = vcvt.s32.f32 %v4461_v41  ;;  %v3944_v49 = vshrl.u32 %v2136_v42, %v8871_v2  ;;  %v3948_v15 = vshrl.u32 %v2152_v43, %v8871_v2 }
 0x1e7   : > { %v9186_v56 = vcvt.s32.f32 %v4459_v44  ;;  %v9188_v16 = vcvt.s32.f32 %v4463_v29  ;;  %v3946_v59 = vshrl.u32 %v2144_v30, %v8871_v2  ;;  %v3950_v26 = vshrl.u32 %v2160_v45, %v8871_v2 }
 0x1e8   : > { %v5262_v27 = vpack.c.bf16 %v9181_v48, %v9179_v46  ;;  %v4456_v61 = vand.u32 15, %v3944_v49  ;;  %v4460_v62 = vand.u32 15, %v3948_v15  ;;  %v893_v63 = vcombine.low %v9113_v39, %v9122_v14 }
 0x1e9   : > { %v5264_v0 = vpack.c.bf16 %v9188_v16, %v9186_v56  ;;  %v4458_v21 = vand.u32 15, %v3946_v59  ;;  %v4462_v1 = vand.u32 15, %v3950_v26  ;;  %v894_v3 = vcombine.high %v9113_v39, %v9122_v14 }
 0x1ea   : > { %v9201_v6 = vcvt.s32.f32 %v4456_v61  ;;  %v9203_v7 = vcvt.s32.f32 %v4460_v62  ;;  %v9206_v5 = vrot.slane %v893_v63, %v8851_v53  ;;  %v9209_v13 = vrot.slane %v8039_v50, %v8851_v53 }
 0x1eb   : > { %v9211_v4 = vcvt.s32.f32 %v4458_v21  ;;  %v9213_v22 = vcvt.s32.f32 %v4462_v1  ;;  %v9216_v8 = vrot.slane %v894_v3, %v8851_v53  ;;  %v9219_v9 = vrot.slane %v8041_v60, %v8851_v53 }
 0x1ec   : > { %v5261_v39 = vpack.c.bf16 %v9203_v7, %v9201_v6  ;;  %v925_v14 = vcombine.high %v9206_v5, %v9206_v5  ;;  %v2076_v10 = vrot.slane %v9206_v5, %v8855_v55  ;;  %v2084_v11 = vrot.slane %v9206_v5, %v8860_v58 }
 0x1ed   : > { %v5263_v12 = vpack.c.bf16 %v9213_v22, %v9211_v4  ;;  %v927_v23 = vcombine.high %v9216_v8, %v9216_v8  ;;  %v2092_v24 = vrot.slane %v9216_v8, %v8855_v55  ;;  %v2100_v31 = vrot.slane %v9216_v8, %v8860_v58 }
 0x1ee   : > { %v2108_v20 = vrot.slane %v925_v14, %v8855_v55  ;;  %v2116_v34 = vrot.slane %v925_v14, %v8860_v58  ;;  %v2104_v36 = vrot.slane %v925_v14, %v8853_v54  ;;  %v2112_v38 = vrot.slane %v925_v14, %v8858_v57 }
 0x1ef   : > { %v2124_v25 = vrot.slane %v927_v23, %v8855_v55  ;;  %v2132_v40 = vrot.slane %v927_v23, %v8860_v58  ;;  %v2120_v28 = vrot.slane %v927_v23, %v8853_v54  ;;  %v2128_v41 = vrot.slane %v927_v23, %v8858_v57 }
 0x1f0   : > { %v3937_v42 = vshrl.u32 %v2108_v20, %v8871_v2  ;;  %v3939_v43 = vshrl.u32 %v2116_v34, %v8871_v2  ;;  %v3936_v44 = vshrl.u32 %v2104_v36, %v8871_v2  ;;  %v3938_v29 = vshrl.u32 %v2112_v38, %v8871_v2 }
 0x1f1   : > { %v3941_v30 = vshrl.u32 %v2124_v25, %v8871_v2  ;;  %v3943_v45 = vshrl.u32 %v2132_v40, %v8871_v2  ;;  %v3940_v49 = vshrl.u32 %v2120_v28, %v8871_v2  ;;  %v3942_v15 = vshrl.u32 %v2128_v41, %v8871_v2 }
 0x1f2   : > { %v4449_v50 = vand.u32 15, %v3937_v42  ;;  %v4451_v56 = vand.u32 15, %v3939_v43  ;;  %v4448_v16 = vand.u32 15, %v3936_v44  ;;  %v4450_v59 = vand.u32 15, %v3938_v29 }
 0x1f3   : > { %v4453_v26 = vand.u32 15, %v3941_v30  ;;  %v4455_v60 = vand.u32 15, %v3943_v45  ;;  %v4452_v61 = vand.u32 15, %v3940_v49  ;;  %v4454_v62 = vand.u32 15, %v3942_v15 }
 0x1f4   : > { %v5104_v63 = vpop.permute.xlu0 %5103  ;;  %v5230_v21 = vcvt.s32.f32 %v4449_v50  ;;  %v5232_v1 = vcvt.s32.f32 %v4451_v56  ;;  %v5229_v3 = vcvt.s32.f32 %v4448_v16  ;;  %v5231_v4 = vcvt.s32.f32 %v4450_v59 }
 0x1f5   : > { %7792 = vmatmul.mubr.msk.bf16.vlgmr.msra.gmra.mxu0 %vm4940_vm1, %v5104_v63  ;;  %7793 = vmatmul.mubr.msk.bf16.vlgmr.msra.gmra.mxu1 %vm4940_vm1, %v5104_v63  ;;  %v5234_v22 = vcvt.s32.f32 %v4453_v26  ;;  %v5236_v14 = vcvt.s32.f32 %v4455_v60  ;;  %v5233_v23 = vcvt.s32.f32 %v4452_v61  ;;  %v5235_v20 = vcvt.s32.f32 %v4454_v62 }
 0x1f6   : > { %5283 = vmatpush1.bf16.msra.mxu0 %v5265_v37  ;;  %5324 = vmatpush1.bf16.msra.mxu1 %v5267_v18  ;;  %v3929_v34 = vshrl.u32 %v2076_v10, %v8871_v2  ;;  %v3933_v36 = vshrl.u32 %v2092_v24, %v8871_v2  ;;  %v3931_v38 = vshrl.u32 %v2084_v11, %v8871_v2  ;;  %v8043_v24 = vld [vmem:[%s8773_s19 + $0x60] ss:$8 sps:$4 sm:$0xff]  }
 0x1f7   : > { %5284 = vmatprep.subr.bf16.mxu0 %v5262_v27  ;;  %5325 = vmatprep.subr.bf16.mxu1 %v5264_v0  ;;  %v5258_v25 = vpack.c.bf16 %v5234_v22, %v5230_v21  ;;  %v5260_v40 = vpack.c.bf16 %v5236_v14, %v5232_v1  ;;  %v5257_v28 = vpack.c.bf16 %v5233_v23, %v5229_v3 }
 0x1f8   : > { %v5259_v17 = vpack.c.bf16 %v5235_v20, %v5231_v4  ;;  %v4441_v32 = vand.u32 15, %v3929_v34  ;;  %v4445_v37 = vand.u32 15, %v3933_v36  ;;  %v3935_v19 = vshrl.u32 %v2100_v31, %v8871_v2  ;;  %5306 = vmatprep.mubr.bf16.mxu0 %v11307_v51  ;;  %5347 = vmatprep.mubr.bf16.mxu1 %v11307_v51 }
 0x1f9   : > { %v4443_v33 = vand.u32 15, %v3931_v38  ;;  %v2072_v18 = vrot.slane %v9206_v5, %v8853_v54  ;;  %v2088_v46 = vrot.slane %v9216_v8, %v8853_v54  ;;  %v2080_v48 = vrot.slane %v9206_v5, %v8858_v57 }
 0x1fa   : > { %5285 = vmatpush1.bf16.msra.mxu0 %v5261_v39  ;;  %5326 = vmatpush1.bf16.msra.mxu1 %v5263_v12  ;;  %v5222_v27 = vcvt.s32.f32 %v4441_v32  ;;  %v5226_v0 = vcvt.s32.f32 %v4445_v37  ;;  %v4447_v10 = vand.u32 15, %v3935_v19  ;;  %v2096_v11 = vrot.slane %v9216_v8, %v8858_v57 }
 0x1fb   : > { %5286 = vmatprep.subr.bf16.mxu0 %v5258_v25  ;;  %5327 = vmatprep.subr.bf16.mxu1 %v5260_v40  ;;  %v5224_v31 = vcvt.s32.f32 %v4443_v33  ;;  %v3928_v41 = vshrl.u32 %v2072_v18, %v8871_v2  ;;  %v3932_v42 = vshrl.u32 %v2088_v46, %v8871_v2  ;;  %v3930_v5 = vshrl.u32 %v2080_v48, %v8871_v2 }
 0x1fc   : > { %v5254_v43 = vpack.c.bf16 %v5226_v0, %v5222_v27  ;;  %v5228_v6 = vcvt.s32.f32 %v4447_v10  ;;  %v3934_v7 = vshrl.u32 %v2096_v11, %v8871_v2  ;;  %v963_v39 = vcombine.low %v9209_v13, %v9219_v9 }
 0x1fd   : > { %v4440_v12 = vand.u32 15, %v3928_v41  ;;  %v4444_v44 = vand.u32 15, %v3932_v42  ;;  %v4442_v8 = vand.u32 15, %v3930_v5  ;;  %v964_v29 = vcombine.high %v9209_v13, %v9219_v9 }
 0x1fe   : > { %5287 = vmatpush1.bf16.msra.mxu0 %v5257_v28  ;;  %5328 = vmatpush1.bf16.msra.mxu1 %v5259_v17  ;;  %v5256_v30 = vpack.c.bf16 %v5228_v6, %v5224_v31  ;;  %v4446_v45 = vand.u32 15, %v3934_v7  ;;  %v9291_v49 = vrot.slane %v963_v39, %v8851_v53  ;;  %v9294_v15 = vrot.slane %v8043_v24, %v8851_v53 }
 0x1ff   : > { %5288 = vmatprep.subr.bf16.mxu0 %v5254_v43  ;;  %v5221_v50 = vcvt.s32.f32 %v4440_v12  ;;  %v5225_v56 = vcvt.s32.f32 %v4444_v44  ;;  %v5223_v16 = vcvt.s32.f32 %v4442_v8  ;;  %v9297_v59 = vrot.slane %v964_v29, %v8851_v53 }
 0x200   : > { %5329 = vmatprep.subr.bf16.mxu1 %v5256_v30  ;;  %v5227_v26 = vcvt.s32.f32 %v4446_v45  ;;  %v994_v13 = vcombine.high %v9291_v49, %v9291_v49  ;;  %v2268_v9 = vrot.slane %v9291_v49, %v8855_v55  ;;  %v2276_v60 = vrot.slane %v9291_v49, %v8860_v58  ;;  %v8044_v45 = vld [vmem:[%s8773_s19 + $0x70] ss:$8 sps:$4 sm:$0xff]  }
 0x201   : > { %v5253_v61 = vpack.c.bf16 %v5225_v56, %v5221_v50  ;;  %v996_v62 = vcombine.high %v9297_v59, %v9297_v59  ;;  %v2284_v63 = vrot.slane %v9297_v59, %v8855_v55  ;;  %v2292_v21 = vrot.slane %v9297_v59, %v8860_v58 }
 0x202   : > { %v5255_v1 = vpack.c.bf16 %v5227_v26, %v5223_v16  ;;  %v2300_v3 = vrot.slane %v994_v13, %v8855_v55  ;;  %v2308_v4 = vrot.slane %v994_v13, %v8860_v58  ;;  %v2296_v22 = vrot.slane %v994_v13, %v8853_v54 }
 0x203   : > { %5289 = vmatpush1.bf16.msra.mxu0 %v5253_v61  ;;  %v2316_v14 = vrot.slane %v996_v62, %v8855_v55  ;;  %v2324_v23 = vrot.slane %v996_v62, %v8860_v58  ;;  %v2312_v20 = vrot.slane %v996_v62, %v8853_v54  ;;  %v2304_v34 = vrot.slane %v994_v13, %v8858_v57  ;;  %v8045_v13 = vld [vmem:[%s8773_s19 + $0x84] ss:$8 sps:$4 sm:$0xff]  }
 0x204   : > { %5330 = vmatpush1.bf16.msra.mxu1 %v5255_v1  ;;  %v3985_v36 = vshrl.u32 %v2300_v3, %v8871_v2  ;;  %v3987_v38 = vshrl.u32 %v2308_v4, %v8871_v2  ;;  %v3984_v25 = vshrl.u32 %v2296_v22, %v8871_v2  ;;  %v2320_v40 = vrot.slane %v996_v62, %v8858_v57  ;;  %v8047_v4 = vld [vmem:[%s8773_s19 + $0x94] ss:$8 sps:$4 sm:$0xff]  }
 0x205   : > { %v3989_v28 = vshrl.u32 %v2316_v14, %v8871_v2  ;;  %v3991_v17 = vshrl.u32 %v2324_v23, %v8871_v2  ;;  %v3988_v32 = vshrl.u32 %v2312_v20, %v8871_v2  ;;  %v3986_v37 = vshrl.u32 %v2304_v34, %v8871_v2  ;;  %v8049_v34 = vld [vmem:[%s8773_s19 + $0x80] ss:$8 sps:$4 sm:$0xff]  }
 0x206   : > { %7796 = vmatmul.mubr.msk.bf16.vlgmr.msra.gmra.mxu0 %vm4940_vm1, %v8843_v47  ;;  %v4497_v19 = vand.u32 15, %v3985_v36  ;;  %v4499_v33 = vand.u32 15, %v3987_v38  ;;  %v4496_v18 = vand.u32 15, %v3984_v25  ;;  %v3990_v46 = vshrl.u32 %v2320_v40, %v8871_v2 }
 0x207   : > { %7797 = vmatmul.mubr.msk.bf16.vlgmr.msra.gmra.mxu1 %vm4940_vm1, %v8843_v47  ;;  %v4501_v48 = vand.u32 15, %v3989_v28  ;;  %v4503_v27 = vand.u32 15, %v3991_v17  ;;  %v4500_v0 = vand.u32 15, %v3988_v32  ;;  %v4498_v10 = vand.u32 15, %v3986_v37  ;;  %5472 = vmatprep.mubr.bf16.mxu0 %v11307_v51  ;;  %v8050_v32 = vld [vmem:[%s8773_s19 + $0x90] ss:$8 sps:$4 sm:$0xff]  }
 0x208   : > { %v5412_v11 = vcvt.s32.f32 %v4497_v19  ;;  %v5414_v24 = vcvt.s32.f32 %v4499_v33  ;;  %v5411_v31 = vcvt.s32.f32 %v4496_v18  ;;  %v4502_v41 = vand.u32 15, %v3990_v46  ;;  %5513 = vmatprep.mubr.bf16.mxu1 %v11307_v51 }
 0x209   : > { %v5416_v42 = vcvt.s32.f32 %v4501_v48  ;;  %v5418_v5 = vcvt.s32.f32 %v4503_v27  ;;  %v5415_v43 = vcvt.s32.f32 %v4500_v0  ;;  %v5413_v6 = vcvt.s32.f32 %v4498_v10 }
 0x20a   : > { %v5417_v7 = vcvt.s32.f32 %v4502_v41  ;;  %v3977_v47 = vshrl.u32 %v2268_v9, %v8871_v2  ;;  %v3981_v39 = vshrl.u32 %v2284_v63, %v8871_v2  ;;  %v3979_v12 = vshrl.u32 %v2276_v60, %v8871_v2 }
 0x20b   : > { %v5432_v44 = vpack.c.bf16 %v5416_v42, %v5412_v11  ;;  %v5434_v8 = vpack.c.bf16 %v5418_v5, %v5414_v24  ;;  %v5431_v29 = vpack.c.bf16 %v5415_v43, %v5411_v31  ;;  %v3983_v30 = vshrl.u32 %v2292_v21, %v8871_v2 }
 0x20c   : > { %v5433_v50 = vpack.c.bf16 %v5417_v7, %v5413_v6  ;;  %v4489_v56 = vand.u32 15, %v3977_v47  ;;  %v4493_v16 = vand.u32 15, %v3981_v39  ;;  %v4491_v26 = vand.u32 15, %v3979_v12 }
 0x20d   : > { %5448 = vmatprep.subr.bf16.mxu0 %v5432_v44  ;;  %5489 = vmatprep.subr.bf16.mxu1 %v5434_v8  ;;  %v4495_v9 = vand.u32 15, %v3983_v30  ;;  %v2264_v61 = vrot.slane %v9291_v49, %v8853_v54  ;;  %v2280_v60 = vrot.slane %v9297_v59, %v8853_v54  ;;  %v2272_v62 = vrot.slane %v9291_v49, %v8858_v57 }
 0x20e   : > { %5449 = vmatpush1.bf16.msra.mxu0 %v5431_v29  ;;  %5490 = vmatpush1.bf16.msra.mxu1 %v5433_v50  ;;  %v5404_v63 = vcvt.s32.f32 %v4489_v56  ;;  %v5408_v21 = vcvt.s32.f32 %v4493_v16  ;;  %v5406_v1 = vcvt.s32.f32 %v4491_v26  ;;  %v2288_v3 = vrot.slane %v9297_v59, %v8858_v57 }
 0x20f   : > { %v5410_v22 = vcvt.s32.f32 %v4495_v9  ;;  %v3976_v14 = vshrl.u32 %v2264_v61, %v8871_v2  ;;  %v3980_v23 = vshrl.u32 %v2280_v60, %v8871_v2  ;;  %v3978_v20 = vshrl.u32 %v2272_v62, %v8871_v2 }
 0x210   : > { %v5428_v36 = vpack.c.bf16 %v5408_v21, %v5404_v63  ;;  %v3982_v49 = vshrl.u32 %v2288_v3, %v8871_v2  ;;  %v953_v38 = vrot.slane %v8044_v45, %v8851_v53  ;;  %v9355_v25 = vrot.slane %v8045_v13, %v8851_v53 }
 0x211   : > { %v5430_v40 = vpack.c.bf16 %v5410_v22, %v5406_v1  ;;  %v4488_v28 = vand.u32 15, %v3976_v14  ;;  %v4492_v59 = vand.u32 15, %v3980_v23  ;;  %v4490_v17 = vand.u32 15, %v3978_v20 }
 0x212   : > { %5450 = vmatprep.subr.bf16.mxu0 %v5428_v36  ;;  %v4494_v37 = vand.u32 15, %v3982_v49  ;;  %v961_v19 = vcombine.low %v9294_v15, %v953_v38  ;;  %v962_v33 = vcombine.high %v9294_v15, %v953_v38  ;;  %v9361_v18 = vrot.slane %v8047_v4, %v8851_v53 }
 0x213   : > { %5491 = vmatprep.subr.bf16.mxu1 %v5430_v40  ;;  %v5403_v46 = vcvt.s32.f32 %v4488_v28  ;;  %v5407_v48 = vcvt.s32.f32 %v4492_v59  ;;  %v5405_v27 = vcvt.s32.f32 %v4490_v17  ;;  %v9364_v0 = vrot.slane %v8049_v34, %v8851_v53 }
 0x214   : > { %v5409_v10 = vcvt.s32.f32 %v4494_v37  ;;  %v9367_v11 = vrot.slane %v961_v19, %v8851_v53  ;;  %v9370_v24 = vrot.slane %v962_v33, %v8851_v53  ;;  %v1031_v15 = vcombine.low %v9355_v25, %v9361_v18 }
 0x215   : > { %v5427_v31 = vpack.c.bf16 %v5407_v48, %v5403_v46  ;;  %v1032_v41 = vcombine.high %v9355_v25, %v9361_v18  ;;  %v9377_v42 = vrot.slane %v8050_v32, %v8851_v53  ;;  %v9381_v5 = vcombine.high %v9110_v35, %v9110_v35 }
 0x216   : > { %v5429_v43 = vpack.c.bf16 %v5409_v10, %v5405_v27  ;;  %v993_v6 = vcombine.high %v9367_v11, %v9367_v11  ;;  %v995_v7 = vcombine.high %v9370_v24, %v9370_v24  ;;  %v2204_v47 = vrot.slane %v9367_v11, %v8855_v55 }
 0x217   : > { %5451 = vmatpush1.bf16.msra.mxu0 %v5427_v31  ;;  %v2220_v39 = vrot.slane %v9370_v24, %v8855_v55  ;;  %v2212_v12 = vrot.slane %v9367_v11, %v8860_v58  ;;  %v2228_v35 = vrot.slane %v9370_v24, %v8860_v58  ;;  %v2200_v44 = vrot.slane %v9367_v11, %v8853_v54 }
 0x218   : > { %5492 = vmatpush1.bf16.msra.mxu1 %v5429_v43  ;;  %v2236_v8 = vrot.slane %v993_v6, %v8855_v55  ;;  %v2252_v29 = vrot.slane %v995_v7, %v8855_v55  ;;  %v2244_v30 = vrot.slane %v993_v6, %v8860_v58  ;;  %v2260_v45 = vrot.slane %v995_v7, %v8860_v58 }
 0x219   : > { %v2232_v50 = vrot.slane %v993_v6, %v8853_v54  ;;  %v2248_v56 = vrot.slane %v995_v7, %v8853_v54  ;;  %v2240_v16 = vrot.slane %v993_v6, %v8858_v57  ;;  %v2256_v26 = vrot.slane %v995_v7, %v8858_v57  ;;  %6765 = vrot.lane.b32.xlu1 %v9381_v5, %s8432_s17 }
 0x21a   : > { %v3969_v13 = vshrl.u32 %v2236_v8, %v8871_v2  ;;  %v3973_v9 = vshrl.u32 %v2252_v29, %v8871_v2  ;;  %v3971_v61 = vshrl.u32 %v2244_v30, %v8871_v2  ;;  %v3975_v60 = vshrl.u32 %v2260_v45, %v8871_v2 }
 0x21b   : > { %v3968_v62 = vshrl.u32 %v2232_v50, %v8871_v2  ;;  %v3972_v63 = vshrl.u32 %v2248_v56, %v8871_v2  ;;  %v3970_v21 = vshrl.u32 %v2240_v16, %v8871_v2  ;;  %v3974_v1 = vshrl.u32 %v2256_v26, %v8871_v2 }
 0x21c   : > { %v4481_v3 = vand.u32 15, %v3969_v13  ;;  %v4485_v4 = vand.u32 15, %v3973_v9  ;;  %v4483_v22 = vand.u32 15, %v3971_v61  ;;  %v4487_v14 = vand.u32 15, %v3975_v60 }
 0x21d   : > { %v4480_v23 = vand.u32 15, %v3968_v62  ;;  %v4484_v20 = vand.u32 15, %v3972_v63  ;;  %v4482_v34 = vand.u32 15, %v3970_v21  ;;  %v4486_v36 = vand.u32 15, %v3974_v1 }
 0x21e   : > { %v5396_v49 = vcvt.s32.f32 %v4481_v3  ;;  %v5400_v38 = vcvt.s32.f32 %v4485_v4  ;;  %v5398_v40 = vcvt.s32.f32 %v4483_v22  ;;  %v5402_v28 = vcvt.s32.f32 %v4487_v14 }
 0x21f   : > { %v5395_v59 = vcvt.s32.f32 %v4480_v23  ;;  %v5399_v17 = vcvt.s32.f32 %v4484_v20  ;;  %v5397_v32 = vcvt.s32.f32 %v4482_v34  ;;  %v5401_v37 = vcvt.s32.f32 %v4486_v36 }
 0x220   : > { %v5424_v19 = vpack.c.bf16 %v5400_v38, %v5396_v49  ;;  %v5426_v33 = vpack.c.bf16 %v5402_v28, %v5398_v40  ;;  %v3961_v46 = vshrl.u32 %v2204_v47, %v8871_v2  ;;  %v3965_v48 = vshrl.u32 %v2220_v39, %v8871_v2  ;;  %v5436_v28 = vpop.permute.xlu0 %5435 }
 0x221   : > { %v5423_v27 = vpack.c.bf16 %v5399_v17, %v5395_v59  ;;  %v5425_v10 = vpack.c.bf16 %v5401_v37, %v5397_v32  ;;  %v3963_v31 = vshrl.u32 %v2212_v12, %v8871_v2  ;;  %v3967_v43 = vshrl.u32 %v2228_v35, %v8871_v2 }
 0x222   : > { %5452 = vmatprep.subr.bf16.mxu0 %v5424_v19  ;;  %5493 = vmatprep.subr.bf16.mxu1 %v5426_v33  ;;  %v4473_v6 = vand.u32 15, %v3961_v46  ;;  %v4477_v7 = vand.u32 15, %v3965_v48  ;;  %v2216_v8 = vrot.slane %v9370_v24, %v8853_v54  ;;  %v3960_v29 = vshrl.u32 %v2200_v44, %v8871_v2 }
 0x223   : > { %5453 = vmatpush1.bf16.msra.mxu0 %v5423_v27  ;;  %5494 = vmatpush1.bf16.msra.mxu1 %v5425_v10  ;;  %v4475_v47 = vand.u32 15, %v3963_v31  ;;  %v4479_v30 = vand.u32 15, %v3967_v43  ;;  %v2208_v39 = vrot.slane %v9367_v11, %v8858_v57  ;;  %v2224_v12 = vrot.slane %v9370_v24, %v8858_v57 }
 0x224   : > { %v5388_v35 = vcvt.s32.f32 %v4473_v6  ;;  %v5392_v45 = vcvt.s32.f32 %v4477_v7  ;;  %v3964_v50 = vshrl.u32 %v2216_v8, %v8871_v2  ;;  %v4472_v56 = vand.u32 15, %v3960_v29 }
 0x225   : > { %v5390_v16 = vcvt.s32.f32 %v4475_v47  ;;  %v5394_v26 = vcvt.s32.f32 %v4479_v30  ;;  %v3962_v13 = vshrl.u32 %v2208_v39, %v8871_v2  ;;  %v3966_v44 = vshrl.u32 %v2224_v12, %v8871_v2 }
 0x226   : > { %v5420_v9 = vpack.c.bf16 %v5392_v45, %v5388_v35  ;;  %v4476_v61 = vand.u32 15, %v3964_v50  ;;  %v5387_v60 = vcvt.s32.f32 %v4472_v56  ;;  %v9433_v11 = vrot.slane %v1031_v15, %v8851_v53 }
 0x227   : > { %v5422_v24 = vpack.c.bf16 %v5394_v26, %v5390_v16  ;;  %v4474_v62 = vand.u32 15, %v3962_v13  ;;  %v4478_v63 = vand.u32 15, %v3966_v44  ;;  %v9439_v21 = vrot.slane %v1032_v41, %v8851_v53 }
 0x228   : > { %5454 = vmatprep.subr.bf16.mxu0 %v5420_v9  ;;  %v5391_v1 = vcvt.s32.f32 %v4476_v61  ;;  %v1062_v3 = vcombine.high %v9433_v11, %v9433_v11  ;;  %v2396_v4 = vrot.slane %v9433_v11, %v8855_v55  ;;  %v2404_v15 = vrot.slane %v9433_v11, %v8860_v58 }
 0x229   : > { %5495 = vmatprep.subr.bf16.mxu1 %v5422_v24  ;;  %v5389_v22 = vcvt.s32.f32 %v4474_v62  ;;  %v5393_v14 = vcvt.s32.f32 %v4478_v63  ;;  %v1064_v23 = vcombine.high %v9439_v21, %v9439_v21  ;;  %v2412_v25 = vrot.slane %v9439_v21, %v8855_v55 }
 0x22a   : > { %v5419_v18 = vpack.c.bf16 %v5391_v1, %v5387_v60  ;;  %v2428_v41 = vrot.slane %v1062_v3, %v8855_v55  ;;  %v2436_v20 = vrot.slane %v1062_v3, %v8860_v58  ;;  %v2424_v34 = vrot.slane %v1062_v3, %v8853_v54 }
 0x22b   : > { %v5421_v36 = vpack.c.bf16 %v5393_v14, %v5389_v22  ;;  %v2444_v49 = vrot.slane %v1064_v23, %v8855_v55  ;;  %v2452_v38 = vrot.slane %v1064_v23, %v8860_v58  ;;  %v2440_v40 = vrot.slane %v1064_v23, %v8853_v54 }
 0x22c   : > { %5455 = vmatpush1.bf16.msra.mxu0 %v5419_v18  ;;  %v4017_v59 = vshrl.u32 %v2428_v41, %v8871_v2  ;;  %v4019_v17 = vshrl.u32 %v2436_v20, %v8871_v2  ;;  %v4016_v32 = vshrl.u32 %v2424_v34, %v8871_v2  ;;  %v2432_v37 = vrot.slane %v1062_v3, %v8858_v57  ;;  %v8052_v20 = vld [vmem:[%s8773_s19 + $0xa4] ss:$8 sps:$4 sm:$0xff]  }
 0x22d   : > { %5496 = vmatpush1.bf16.msra.mxu1 %v5421_v36  ;;  %v4021_v19 = vshrl.u32 %v2444_v49, %v8871_v2  ;;  %v4023_v33 = vshrl.u32 %v2452_v38, %v8871_v2  ;;  %v4020_v46 = vshrl.u32 %v2440_v40, %v8871_v2  ;;  %v2448_v48 = vrot.slane %v1064_v23, %v8858_v57 }
 0x22e   : > { %v4529_v27 = vand.u32 15, %v4017_v59  ;;  %v4531_v10 = vand.u32 15, %v4019_v17  ;;  %v4528_v31 = vand.u32 15, %v4016_v32  ;;  %v4018_v43 = vshrl.u32 %v2432_v37, %v8871_v2 }
 0x22f   : > { %7799 = vmatmul.mubr.msk.bf16.vlgmr.msra.gmra.mxu0 %vm4940_vm1, %v5436_v28  ;;  %v4533_v6 = vand.u32 15, %v4021_v19  ;;  %v4535_v7 = vand.u32 15, %v4023_v33  ;;  %v4532_v8 = vand.u32 15, %v4020_v46  ;;  %v4022_v29 = vshrl.u32 %v2448_v48, %v8871_v2 }
 0x230   : > { %7800 = vmatmul.mubr.msk.bf16.vlgmr.msra.gmra.mxu1 %vm4940_vm1, %v5436_v28  ;;  %v5578_v47 = vcvt.s32.f32 %v4529_v27  ;;  %v5580_v30 = vcvt.s32.f32 %v4531_v10  ;;  %v5577_v39 = vcvt.s32.f32 %v4528_v31  ;;  %v4530_v12 = vand.u32 15, %v4018_v43  ;;  %5636 = vmatprep.mubr.bf16.mxu0 %v11307_v51 }
 0x231   : > { %v5582_v35 = vcvt.s32.f32 %v4533_v6  ;;  %v5584_v45 = vcvt.s32.f32 %v4535_v7  ;;  %v5581_v50 = vcvt.s32.f32 %v4532_v8  ;;  %v4534_v56 = vand.u32 15, %v4022_v29  ;;  %5677 = vmatprep.mubr.bf16.mxu1 %v11307_v51 }
 0x232   : > { %v5579_v16 = vcvt.s32.f32 %v4530_v12  ;;  %v4009_v26 = vshrl.u32 %v2396_v4, %v8871_v2  ;;  %v4013_v13 = vshrl.u32 %v2412_v25, %v8871_v2  ;;  %v2420_v44 = vrot.slane %v9439_v21, %v8860_v58 }
 0x233   : > { %v5598_v9 = vpack.c.bf16 %v5582_v35, %v5578_v47  ;;  %v5600_v61 = vpack.c.bf16 %v5584_v45, %v5580_v30  ;;  %v5597_v60 = vpack.c.bf16 %v5581_v50, %v5577_v39  ;;  %v5583_v24 = vcvt.s32.f32 %v4534_v56 }
 0x234   : > { %v4521_v62 = vand.u32 15, %v4009_v26  ;;  %v4525_v63 = vand.u32 15, %v4013_v13  ;;  %v4011_v1 = vshrl.u32 %v2404_v15, %v8871_v2  ;;  %v4015_v3 = vshrl.u32 %v2420_v44, %v8871_v2 }
 0x235   : > { %5612 = vmatprep.subr.bf16.mxu0 %v5598_v9  ;;  %5653 = vmatprep.subr.bf16.mxu1 %v5600_v61  ;;  %v5599_v22 = vpack.c.bf16 %v5583_v24, %v5579_v16  ;;  %v2392_v4 = vrot.slane %v9433_v11, %v8853_v54  ;;  %v2408_v14 = vrot.slane %v9439_v21, %v8853_v54 }
 0x236   : > { %5613 = vmatpush1.bf16.msra.mxu0 %v5597_v60  ;;  %v5570_v23 = vcvt.s32.f32 %v4521_v62  ;;  %v5574_v25 = vcvt.s32.f32 %v4525_v63  ;;  %v4523_v18 = vand.u32 15, %v4011_v1  ;;  %v4527_v41 = vand.u32 15, %v4015_v3 }
 0x237   : > { %5654 = vmatpush1.bf16.msra.mxu1 %v5599_v22  ;;  %v4008_v15 = vshrl.u32 %v2392_v4, %v8871_v2  ;;  %v4012_v34 = vshrl.u32 %v2408_v14, %v8871_v2  ;;  %v2400_v36 = vrot.slane %v9433_v11, %v8858_v57  ;;  %v2416_v49 = vrot.slane %v9439_v21, %v8858_v57 }
 0x238   : > { %v5594_v38 = vpack.c.bf16 %v5574_v25, %v5570_v23  ;;  %v5572_v40 = vcvt.s32.f32 %v4523_v18  ;;  %v5576_v28 = vcvt.s32.f32 %v4527_v41  ;;  %v1029_v59 = vcombine.low %v9364_v0, %v9377_v42 }
 0x239   : > { %v4520_v17 = vand.u32 15, %v4008_v15  ;;  %v4524_v32 = vand.u32 15, %v4012_v34  ;;  %v4010_v37 = vshrl.u32 %v2400_v36, %v8871_v2  ;;  %v4014_v19 = vshrl.u32 %v2416_v49, %v8871_v2 }
 0x23a   : > { %5614 = vmatprep.subr.bf16.mxu0 %v5594_v38  ;;  %v5596_v33 = vpack.c.bf16 %v5576_v28, %v5572_v40  ;;  %v1030_v11 = vcombine.high %v9364_v0, %v9377_v42  ;;  %v9495_v46 = vrot.slane %v1029_v59, %v8851_v53  ;;  %v9498_v21 = vrot.slane %v8052_v20, %v8851_v53 }
 0x23b   : > { %v5569_v48 = vcvt.s32.f32 %v4520_v17  ;;  %v5573_v27 = vcvt.s32.f32 %v4524_v32  ;;  %v4522_v10 = vand.u32 15, %v4010_v37  ;;  %v4526_v31 = vand.u32 15, %v4014_v19 }
 0x23c   : > { %5655 = vmatprep.subr.bf16.mxu1 %v5596_v33  ;;  %v9501_v43 = vrot.slane %v1030_v11, %v8851_v53  ;;  %v1061_v6 = vcombine.high %v9495_v46, %v9495_v46  ;;  %v2332_v0 = vrot.slane %v9495_v46, %v8855_v55  ;;  %v2340_v42 = vrot.slane %v9495_v46, %v8860_v58  ;;  %v8054_v11 = vld [vmem:[%s8773_s19 + $0xb4] ss:$8 sps:$4 sm:$0xff]  }
 0x23d   : > { %v5593_v7 = vpack.c.bf16 %v5573_v27, %v5569_v48  ;;  %v5571_v8 = vcvt.s32.f32 %v4522_v10  ;;  %v5575_v29 = vcvt.s32.f32 %v4526_v31  ;;  %v2328_v47 = vrot.slane %v9495_v46, %v8853_v54 }
 0x23e   : > { %v1063_v30 = vcombine.high %v9501_v43, %v9501_v43  ;;  %v2364_v39 = vrot.slane %v1061_v6, %v8855_v55  ;;  %v2372_v12 = vrot.slane %v1061_v6, %v8860_v58  ;;  %v2360_v35 = vrot.slane %v1061_v6, %v8853_v54 }
 0x23f   : > { %5615 = vmatpush1.bf16.msra.mxu0 %v5593_v7  ;;  %v5595_v45 = vpack.c.bf16 %v5575_v29, %v5571_v8  ;;  %v2368_v50 = vrot.slane %v1061_v6, %v8858_v57  ;;  %v2348_v56 = vrot.slane %v9501_v43, %v8855_v55  ;;  %v3993_v16 = vshrl.u32 %v2332_v0, %v8871_v2 }
 0x240   : > { %v2380_v26 = vrot.slane %v1063_v30, %v8855_v55  ;;  %v4001_v13 = vshrl.u32 %v2364_v39, %v8871_v2  ;;  %v2388_v44 = vrot.slane %v1063_v30, %v8860_v58  ;;  %v4003_v9 = vshrl.u32 %v2372_v12, %v8871_v2  ;;  %v8056_v12 = vld [vmem:[%s8773_s19 + $0xa0] ss:$8 sps:$4 sm:$0xff]  }
 0x241   : > { %5656 = vmatpush1.bf16.msra.mxu1 %v5595_v45  ;;  %v2376_v61 = vrot.slane %v1063_v30, %v8853_v54  ;;  %v4000_v60 = vshrl.u32 %v2360_v35, %v8871_v2  ;;  %v2384_v24 = vrot.slane %v1063_v30, %v8858_v57  ;;  %v4002_v62 = vshrl.u32 %v2368_v50, %v8871_v2 }
 0x242   : > { %v4005_v63 = vshrl.u32 %v2380_v26, %v8871_v2  ;;  %v4513_v1 = vand.u32 15, %v4001_v13  ;;  %v4007_v3 = vshrl.u32 %v2388_v44, %v8871_v2  ;;  %v4515_v22 = vand.u32 15, %v4003_v9  ;;  %v8058_v9 = vld [vmem:[%s8773_s19 + $0xc4] ss:$8 sps:$4 sm:$0xff]  }
 0x243   : > { %v4004_v4 = vshrl.u32 %v2376_v61, %v8871_v2  ;;  %v4512_v14 = vand.u32 15, %v4000_v60  ;;  %v4006_v23 = vshrl.u32 %v2384_v24, %v8871_v2  ;;  %v4514_v25 = vand.u32 15, %v4002_v62 }
 0x244   : > { %v4517_v18 = vand.u32 15, %v4005_v63  ;;  %v5562_v41 = vcvt.s32.f32 %v4513_v1  ;;  %v4519_v20 = vand.u32 15, %v4007_v3  ;;  %v5564_v15 = vcvt.s32.f32 %v4515_v22 }
 0x245   : > { %v4516_v34 = vand.u32 15, %v4004_v4  ;;  %v5561_v36 = vcvt.s32.f32 %v4512_v14  ;;  %v4518_v49 = vand.u32 15, %v4006_v23  ;;  %v5563_v38 = vcvt.s32.f32 %v4514_v25 }
 0x246   : > { %v5566_v40 = vcvt.s32.f32 %v4517_v18  ;;  %v5568_v28 = vcvt.s32.f32 %v4519_v20  ;;  %v3997_v59 = vshrl.u32 %v2348_v56, %v8871_v2  ;;  %v4505_v17 = vand.u32 15, %v3993_v16 }
 0x247   : > { %v5565_v32 = vcvt.s32.f32 %v4516_v34  ;;  %v5567_v37 = vcvt.s32.f32 %v4518_v49  ;;  %v2356_v19 = vrot.slane %v9501_v43, %v8860_v58  ;;  %v3995_v33 = vshrl.u32 %v2340_v42, %v8871_v2 }
 0x248   : > { %v5590_v48 = vpack.c.bf16 %v5566_v40, %v5562_v41  ;;  %v5592_v27 = vpack.c.bf16 %v5568_v28, %v5564_v15  ;;  %v4509_v10 = vand.u32 15, %v3997_v59  ;;  %v5554_v31 = vcvt.s32.f32 %v4505_v17 }
 0x249   : > { %v5589_v6 = vpack.c.bf16 %v5565_v32, %v5561_v36  ;;  %v5591_v0 = vpack.c.bf16 %v5567_v37, %v5563_v38  ;;  %v3999_v7 = vshrl.u32 %v2356_v19, %v8871_v2  ;;  %v4507_v8 = vand.u32 15, %v3995_v33 }
 0x24a   : > { %5616 = vmatprep.subr.bf16.mxu0 %v5590_v48  ;;  %5657 = vmatprep.subr.bf16.mxu1 %v5592_v27  ;;  %v5558_v29 = vcvt.s32.f32 %v4509_v10  ;;  %v2344_v30 = vrot.slane %v9501_v43, %v8853_v54  ;;  %v3992_v42 = vshrl.u32 %v2328_v47, %v8871_v2  ;;  %v2336_v39 = vrot.slane %v9495_v46, %v8858_v57  ;;  %v8057_v47 = vld [vmem:[%s8773_s19 + $0xb0] ss:$8 sps:$4 sm:$0xff]  }
 0x24b   : > { %5617 = vmatpush1.bf16.msra.mxu0 %v5589_v6  ;;  %5658 = vmatpush1.bf16.msra.mxu1 %v5591_v0  ;;  %v4511_v35 = vand.u32 15, %v3999_v7  ;;  %v5556_v45 = vcvt.s32.f32 %v4507_v8  ;;  %v2352_v50 = vrot.slane %v9501_v43, %v8858_v57  ;;  %v1096_v56 = vrot.slane %v8054_v11, %v8851_v53 }
 0x24c   : > { %v5586_v16 = vpack.c.bf16 %v5558_v29, %v5554_v31  ;;  %v3996_v26 = vshrl.u32 %v2344_v30, %v8871_v2  ;;  %v4504_v13 = vand.u32 15, %v3992_v42  ;;  %v3994_v44 = vshrl.u32 %v2336_v39, %v8871_v2  ;;  %v8120_v29 = vld [vmem:[%s8766_s13 + $0x8] sm:$0xff] }
 0x24d   : > { %v5560_v61 = vcvt.s32.f32 %v4511_v35  ;;  %v3998_v46 = vshrl.u32 %v2352_v50, %v8871_v2  ;;  %v1099_v60 = vcombine.low %v9498_v21, %v1096_v56  ;;  %v1100_v24 = vcombine.high %v9498_v21, %v1096_v56 }
 0x24e   : > { %5618 = vmatprep.subr.bf16.mxu0 %v5586_v16  ;;  %v4508_v62 = vand.u32 15, %v3996_v26  ;;  %v5553_v43 = vcvt.s32.f32 %v4504_v13  ;;  %v4506_v63 = vand.u32 15, %v3994_v44  ;;  %v9555_v1 = vrot.slane %v8056_v12, %v8851_v53 }
 0x24f   : > { %v5588_v3 = vpack.c.bf16 %v5560_v61, %v5556_v45  ;;  %v4510_v22 = vand.u32 15, %v3998_v46  ;;  %v9558_v4 = vrot.slane %v1099_v60, %v8851_v53  ;;  %v9561_v14 = vrot.slane %v1100_v24, %v8851_v53 }
 0x250   : > { %v5557_v23 = vcvt.s32.f32 %v4508_v62  ;;  %v5555_v25 = vcvt.s32.f32 %v4506_v63  ;;  %v9564_v18 = vrot.slane %v8057_v47, %v8851_v53  ;;  %v9567_v21 = vrot.slane %v8058_v9, %v8851_v53 }
 0x251   : > { %5659 = vmatprep.subr.bf16.mxu1 %v5588_v3  ;;  %v5559_v41 = vcvt.s32.f32 %v4510_v22  ;;  %v1130_v20 = vcombine.high %v9558_v4, %v9558_v4  ;;  %v1132_v15 = vcombine.high %v9561_v14, %v9561_v14  ;;  %v2524_v34 = vrot.slane %v9558_v4, %v8855_v55 }
 0x252   : > { %v5585_v36 = vpack.c.bf16 %v5557_v23, %v5553_v43  ;;  %v2540_v49 = vrot.slane %v9561_v14, %v8855_v55  ;;  %v2532_v38 = vrot.slane %v9558_v4, %v8860_v58  ;;  %v2548_v40 = vrot.slane %v9561_v14, %v8860_v58 }
 0x253   : > { %v5587_v28 = vpack.c.bf16 %v5559_v41, %v5555_v25  ;;  %v2556_v59 = vrot.slane %v1130_v20, %v8855_v55  ;;  %v2572_v17 = vrot.slane %v1132_v15, %v8855_v55  ;;  %v2564_v32 = vrot.slane %v1130_v20, %v8860_v58 }
 0x254   : > { %5619 = vmatpush1.bf16.msra.mxu0 %v5585_v36  ;;  %v2580_v37 = vrot.slane %v1132_v15, %v8860_v58  ;;  %v2552_v19 = vrot.slane %v1130_v20, %v8853_v54  ;;  %v2568_v33 = vrot.slane %v1132_v15, %v8853_v54  ;;  %v2560_v11 = vrot.slane %v1130_v20, %v8858_v57 }
 0x255   : > { %5660 = vmatpush1.bf16.msra.mxu1 %v5587_v28  ;;  %v4049_v48 = vshrl.u32 %v2556_v59, %v8871_v2  ;;  %v4053_v27 = vshrl.u32 %v2572_v17, %v8871_v2  ;;  %v4051_v10 = vshrl.u32 %v2564_v32, %v8871_v2  ;;  %v2576_v31 = vrot.slane %v1132_v15, %v8858_v57  ;;  %v8060_v32 = vld [vmem:[%s8773_s19 + $0xd4] ss:$8 sps:$4 sm:$0xff]  }
 0x256   : > { %v4055_v6 = vshrl.u32 %v2580_v37, %v8871_v2  ;;  %v4048_v0 = vshrl.u32 %v2552_v19, %v8871_v2  ;;  %v4052_v7 = vshrl.u32 %v2568_v33, %v8871_v2  ;;  %v4050_v8 = vshrl.u32 %v2560_v11, %v8871_v2 }
 0x257   : > { %7802 = vmatmul.mubr.msk.bf16.vlgmr.msra.gmra.mxu0 %vm4940_vm1, %v8120_v29  ;;  %v4561_v30 = vand.u32 15, %v4049_v48  ;;  %v4565_v42 = vand.u32 15, %v4053_v27  ;;  %v4563_v39 = vand.u32 15, %v4051_v10  ;;  %v4054_v12 = vshrl.u32 %v2576_v31, %v8871_v2  ;;  %v8062_v48 = vld [vmem:[%s8773_s19 + $0xc0] ss:$8 sps:$4 sm:$0xff]  }
 0x258   : > { %7803 = vmatmul.mubr.msk.bf16.vlgmr.msra.gmra.mxu1 %vm4940_vm1, %v8120_v29  ;;  %v4567_v35 = vand.u32 15, %v4055_v6  ;;  %v4560_v45 = vand.u32 15, %v4048_v0  ;;  %v4564_v50 = vand.u32 15, %v4052_v7  ;;  %v4562_v56 = vand.u32 15, %v4050_v8  ;;  %5805 = vmatprep.mubr.bf16.mxu0 %v11307_v51 }
 0x259   : > { %v5742_v16 = vcvt.s32.f32 %v4561_v30  ;;  %v5746_v26 = vcvt.s32.f32 %v4565_v42  ;;  %v5744_v13 = vcvt.s32.f32 %v4563_v39  ;;  %v4566_v44 = vand.u32 15, %v4054_v12  ;;  %5846 = vmatprep.mubr.bf16.mxu1 %v11307_v51 }
 0x25a   : > { %v5748_v47 = vcvt.s32.f32 %v4567_v35  ;;  %v5741_v9 = vcvt.s32.f32 %v4560_v45  ;;  %v5745_v61 = vcvt.s32.f32 %v4564_v50  ;;  %v5743_v46 = vcvt.s32.f32 %v4562_v56 }
 0x25b   : > { %v5762_v60 = vpack.c.bf16 %v5746_v26, %v5742_v16  ;;  %v5747_v24 = vcvt.s32.f32 %v4566_v44  ;;  %v4041_v62 = vshrl.u32 %v2524_v34, %v8871_v2  ;;  %v4045_v43 = vshrl.u32 %v2540_v49, %v8871_v2 }
 0x25c   : > { %v5764_v63 = vpack.c.bf16 %v5748_v47, %v5744_v13  ;;  %v5761_v3 = vpack.c.bf16 %v5745_v61, %v5741_v9  ;;  %v4043_v22 = vshrl.u32 %v2532_v38, %v8871_v2  ;;  %v4047_v23 = vshrl.u32 %v2548_v40, %v8871_v2 }
 0x25d   : > { %5781 = vmatprep.subr.bf16.mxu0 %v5762_v60  ;;  %v5763_v25 = vpack.c.bf16 %v5747_v24, %v5743_v46  ;;  %v4553_v41 = vand.u32 15, %v4041_v62  ;;  %v4557_v20 = vand.u32 15, %v4045_v43  ;;  %v2520_v15 = vrot.slane %v9558_v4, %v8853_v54 }
 0x25e   : > { %5822 = vmatprep.subr.bf16.mxu1 %v5764_v63  ;;  %5782 = vmatpush1.bf16.msra.mxu0 %v5761_v3  ;;  %v4555_v34 = vand.u32 15, %v4043_v22  ;;  %v4559_v36 = vand.u32 15, %v4047_v23  ;;  %v2536_v49 = vrot.slane %v9561_v14, %v8853_v54  ;;  %v2528_v38 = vrot.slane %v9558_v4, %v8858_v57 }
 0x25f   : > { %5823 = vmatpush1.bf16.msra.mxu1 %v5763_v25  ;;  %v5734_v40 = vcvt.s32.f32 %v4553_v41  ;;  %v5738_v28 = vcvt.s32.f32 %v4557_v20  ;;  %v4040_v59 = vshrl.u32 %v2520_v15, %v8871_v2  ;;  %v2544_v17 = vrot.slane %v9561_v14, %v8858_v57 }
 0x260   : > { %v5736_v37 = vcvt.s32.f32 %v4555_v34  ;;  %v5740_v19 = vcvt.s32.f32 %v4559_v36  ;;  %v4044_v33 = vshrl.u32 %v2536_v49, %v8871_v2  ;;  %v4042_v11 = vshrl.u32 %v2528_v38, %v8871_v2 }
 0x261   : > { %v5758_v27 = vpack.c.bf16 %v5738_v28, %v5734_v40  ;;  %v4552_v10 = vand.u32 15, %v4040_v59  ;;  %v4046_v4 = vshrl.u32 %v2544_v17, %v8871_v2  ;;  %v1097_v31 = vcombine.low %v9555_v1, %v9564_v18 }
 0x262   : > { %v5760_v6 = vpack.c.bf16 %v5740_v19, %v5736_v37  ;;  %v4556_v0 = vand.u32 15, %v4044_v33  ;;  %v4554_v7 = vand.u32 15, %v4042_v11  ;;  %v1098_v14 = vcombine.high %v9555_v1, %v9564_v18 }
 0x263   : > { %5783 = vmatprep.subr.bf16.mxu0 %v5758_v27  ;;  %v5733_v8 = vcvt.s32.f32 %v4552_v10  ;;  %v4558_v29 = vand.u32 15, %v4046_v4  ;;  %v9625_v30 = vrot.slane %v1097_v31, %v8851_v53  ;;  %v9628_v42 = vrot.slane %v8060_v32, %v8851_v53 }
 0x264   : > { %5824 = vmatprep.subr.bf16.mxu1 %v5760_v6  ;;  %v5737_v39 = vcvt.s32.f32 %v4556_v0  ;;  %v5735_v12 = vcvt.s32.f32 %v4554_v7  ;;  %v9631_v35 = vrot.slane %v1098_v14, %v8851_v53  ;;  %v9634_v45 = vrot.slane %v8062_v48, %v8851_v53 }
 0x265   : > { %v5739_v50 = vcvt.s32.f32 %v4558_v29  ;;  %v1129_v1 = vcombine.high %v9625_v30, %v9625_v30  ;;  %v2460_v18 = vrot.slane %v9625_v30, %v8855_v55  ;;  %v2468_v56 = vrot.slane %v9625_v30, %v8860_v58 }
 0x266   : > { %v5757_v16 = vpack.c.bf16 %v5737_v39, %v5733_v8  ;;  %v1131_v26 = vcombine.high %v9631_v35, %v9631_v35  ;;  %v2476_v13 = vrot.slane %v9631_v35, %v8855_v55  ;;  %v2484_v44 = vrot.slane %v9631_v35, %v8860_v58 }
 0x267   : > { %v5759_v47 = vpack.c.bf16 %v5739_v50, %v5735_v12  ;;  %v2492_v9 = vrot.slane %v1129_v1, %v8855_v55  ;;  %v2500_v61 = vrot.slane %v1129_v1, %v8860_v58  ;;  %v2488_v46 = vrot.slane %v1129_v1, %v8853_v54 }
 0x268   : > { %5784 = vmatpush1.bf16.msra.mxu0 %v5757_v16  ;;  %v2508_v60 = vrot.slane %v1131_v26, %v8855_v55  ;;  %v2516_v24 = vrot.slane %v1131_v26, %v8860_v58  ;;  %v2504_v62 = vrot.slane %v1131_v26, %v8853_v54  ;;  %v2496_v43 = vrot.slane %v1129_v1, %v8858_v57 }
 0x269   : > { %5825 = vmatpush1.bf16.msra.mxu1 %v5759_v47  ;;  %v4033_v63 = vshrl.u32 %v2492_v9, %v8871_v2  ;;  %v4035_v3 = vshrl.u32 %v2500_v61, %v8871_v2  ;;  %v4032_v22 = vshrl.u32 %v2488_v46, %v8871_v2  ;;  %v2512_v23 = vrot.slane %v1131_v26, %v8858_v57  ;;  %v8063_v61 = vld [vmem:[%s8773_s19 + $0xd0] ss:$8 sps:$4 sm:$0xff]  }
 0x26a   : > { %v4037_v25 = vshrl.u32 %v2508_v60, %v8871_v2  ;;  %v4039_v41 = vshrl.u32 %v2516_v24, %v8871_v2  ;;  %v4036_v20 = vshrl.u32 %v2504_v62, %v8871_v2  ;;  %v4034_v15 = vshrl.u32 %v2496_v43, %v8871_v2 }
 0x26b   : > { %v4545_v34 = vand.u32 15, %v4033_v63  ;;  %v4547_v36 = vand.u32 15, %v4035_v3  ;;  %v4544_v49 = vand.u32 15, %v4032_v22  ;;  %v4038_v38 = vshrl.u32 %v2512_v23, %v8871_v2  ;;  %v9686_v22 = vld [vmem:[%s8766_s13 + $0x18] sm:$0xff] }
 0x26c   : > { %v4549_v40 = vand.u32 15, %v4037_v25  ;;  %v4551_v28 = vand.u32 15, %v4039_v41  ;;  %v4548_v59 = vand.u32 15, %v4036_v20  ;;  %v4546_v17 = vand.u32 15, %v4034_v15 }
 0x26d   : > { %v5726_v32 = vcvt.s32.f32 %v4545_v34  ;;  %v5728_v37 = vcvt.s32.f32 %v4547_v36  ;;  %v5725_v19 = vcvt.s32.f32 %v4544_v49  ;;  %v4550_v33 = vand.u32 15, %v4038_v38 }
 0x26e   : > { %v5730_v11 = vcvt.s32.f32 %v4549_v40  ;;  %v5732_v48 = vcvt.s32.f32 %v4551_v28  ;;  %v5729_v27 = vcvt.s32.f32 %v4548_v59  ;;  %v5727_v10 = vcvt.s32.f32 %v4546_v17 }
 0x26f   : > { %v5731_v4 = vcvt.s32.f32 %v4550_v33  ;;  %v4025_v31 = vshrl.u32 %v2460_v18, %v8871_v2  ;;  %v4029_v6 = vshrl.u32 %v2476_v13, %v8871_v2  ;;  %v4027_v0 = vshrl.u32 %v2468_v56, %v8871_v2 }
 0x270   : > { %v5754_v7 = vpack.c.bf16 %v5730_v11, %v5726_v32  ;;  %v5756_v14 = vpack.c.bf16 %v5732_v48, %v5728_v37  ;;  %v5753_v8 = vpack.c.bf16 %v5729_v27, %v5725_v19  ;;  %v4031_v29 = vshrl.u32 %v2484_v44, %v8871_v2 }
 0x271   : > { %v5755_v39 = vpack.c.bf16 %v5731_v4, %v5727_v10  ;;  %v4537_v12 = vand.u32 15, %v4025_v31  ;;  %v4541_v50 = vand.u32 15, %v4029_v6  ;;  %v4539_v1 = vand.u32 15, %v4027_v0  ;;  %v5769_v4 = vpop.permute.xlu1 %5768 }
 0x272   : > { %5785 = vmatprep.subr.bf16.mxu0 %v5754_v7  ;;  %5826 = vmatprep.subr.bf16.mxu1 %v5756_v14  ;;  %v4543_v16 = vand.u32 15, %v4031_v29  ;;  %v2456_v18 = vrot.slane %v9625_v30, %v8853_v54  ;;  %v2472_v26 = vrot.slane %v9631_v35, %v8853_v54  ;;  %v2464_v56 = vrot.slane %v9625_v30, %v8858_v57 }
 0x273   : > { %5786 = vmatpush1.bf16.msra.mxu0 %v5753_v8  ;;  %5827 = vmatpush1.bf16.msra.mxu1 %v5755_v39  ;;  %v5718_v13 = vcvt.s32.f32 %v4537_v12  ;;  %v5722_v44 = vcvt.s32.f32 %v4541_v50  ;;  %v5720_v47 = vcvt.s32.f32 %v4539_v1  ;;  %v2480_v9 = vrot.slane %v9631_v35, %v8858_v57 }
 0x274   : > { %v5724_v46 = vcvt.s32.f32 %v4543_v16  ;;  %v4024_v60 = vshrl.u32 %v2456_v18, %v8871_v2  ;;  %v4028_v24 = vshrl.u32 %v2472_v26, %v8871_v2  ;;  %v4026_v62 = vshrl.u32 %v2464_v56, %v8871_v2 }
 0x275   : > { %v5750_v43 = vpack.c.bf16 %v5722_v44, %v5718_v13  ;;  %v4030_v30 = vshrl.u32 %v2480_v9, %v8871_v2  ;;  %v1167_v63 = vcombine.low %v9567_v21, %v9628_v42  ;;  %v1168_v3 = vcombine.high %v9567_v21, %v9628_v42 }
 0x276   : > { %v5752_v35 = vpack.c.bf16 %v5724_v46, %v5720_v47  ;;  %v4536_v23 = vand.u32 15, %v4024_v60  ;;  %v4540_v25 = vand.u32 15, %v4028_v24  ;;  %v4538_v41 = vand.u32 15, %v4026_v62 }
 0x277   : > { %5787 = vmatprep.subr.bf16.mxu0 %v5750_v43  ;;  %v4542_v20 = vand.u32 15, %v4030_v30  ;;  %v9689_v15 = vrot.slane %v1167_v63, %v8851_v53  ;;  %v9692_v34 = vrot.slane %v1168_v3, %v8851_v53  ;;  %v9695_v36 = vrot.slane %v8063_v61, %v8851_v53 }
 0x278   : > { %5828 = vmatprep.subr.bf16.mxu1 %v5752_v35  ;;  %v5717_v49 = vcvt.s32.f32 %v4536_v23  ;;  %v5721_v21 = vcvt.s32.f32 %v4540_v25  ;;  %v5719_v42 = vcvt.s32.f32 %v4538_v41  ;;  %v7833_v38 = vcombine.low %v9686_v22, %v9686_v22 }
 0x279   : > { %v5723_v40 = vcvt.s32.f32 %v4542_v20  ;;  %v1198_v28 = vcombine.high %v9689_v15, %v9689_v15  ;;  %v1200_v59 = vcombine.high %v9692_v34, %v9692_v34  ;;  %v2652_v17 = vrot.slane %v9689_v15, %v8855_v55 }
 0x27a   : > { %v5749_v32 = vpack.c.bf16 %v5721_v21, %v5717_v49  ;;  %v2668_v37 = vrot.slane %v9692_v34, %v8855_v55  ;;  %v2660_v19 = vrot.slane %v9689_v15, %v8860_v58  ;;  %v2676_v33 = vrot.slane %v9692_v34, %v8860_v58  ;;  %7098 = vrot.lane.b32.xlu0 %v7833_v38, %s8432_s17 }
 0x27b   : > { %v5751_v11 = vpack.c.bf16 %v5723_v40, %v5719_v42  ;;  %v2684_v48 = vrot.slane %v1198_v28, %v8855_v55  ;;  %v2700_v27 = vrot.slane %v1200_v59, %v8855_v55  ;;  %v2692_v10 = vrot.slane %v1198_v28, %v8860_v58 }
 0x27c   : > { %5788 = vmatpush1.bf16.msra.mxu0 %v5749_v32  ;;  %v2708_v31 = vrot.slane %v1200_v59, %v8860_v58  ;;  %v2680_v6 = vrot.slane %v1198_v28, %v8853_v54  ;;  %v2696_v0 = vrot.slane %v1200_v59, %v8853_v54  ;;  %v2688_v7 = vrot.slane %v1198_v28, %v8858_v57 }
 0x27d   : > { %5829 = vmatpush1.bf16.msra.mxu1 %v5751_v11  ;;  %v4081_v14 = vshrl.u32 %v2684_v48, %v8871_v2  ;;  %v4085_v8 = vshrl.u32 %v2700_v27, %v8871_v2  ;;  %v4083_v29 = vshrl.u32 %v2692_v10, %v8871_v2  ;;  %v2704_v39 = vrot.slane %v1200_v59, %v8858_v57  ;;  %v8065_v10 = vld [vmem:[%s8773_s19 + $0xe4] ss:$8 sps:$4 sm:$0xff]  }
 0x27e   : > { %v4087_v12 = vshrl.u32 %v2708_v31, %v8871_v2  ;;  %v4080_v50 = vshrl.u32 %v2680_v6, %v8871_v2  ;;  %v4084_v1 = vshrl.u32 %v2696_v0, %v8871_v2  ;;  %v4082_v16 = vshrl.u32 %v2688_v7, %v8871_v2  ;;  %v8067_v7 = vld [vmem:[%s8773_s19 + $0xf4] ss:$8 sps:$4 sm:$0xff]  }
 0x27f   : > { %7806 = vmatmul.mubr.msk.bf16.vlgmr.msra.gmra.mxu0 %vm4940_vm1, %v5769_v4  ;;  %v4593_v18 = vand.u32 15, %v4081_v14  ;;  %v4597_v26 = vand.u32 15, %v4085_v8  ;;  %v4595_v56 = vand.u32 15, %v4083_v29  ;;  %v4086_v13 = vshrl.u32 %v2704_v39, %v8871_v2 }
 0x280   : > { %7807 = vmatmul.mubr.msk.bf16.vlgmr.msra.gmra.mxu1 %vm4940_vm1, %v5769_v4  ;;  %v4599_v44 = vand.u32 15, %v4087_v12  ;;  %v4592_v47 = vand.u32 15, %v4080_v50  ;;  %v4596_v9 = vand.u32 15, %v4084_v1  ;;  %v4594_v61 = vand.u32 15, %v4082_v16  ;;  %5971 = vmatprep.mubr.bf16.mxu0 %v11307_v51 }
 0x281   : > { %v5911_v46 = vcvt.s32.f32 %v4593_v18  ;;  %v5915_v60 = vcvt.s32.f32 %v4597_v26  ;;  %v5913_v24 = vcvt.s32.f32 %v4595_v56  ;;  %v4598_v62 = vand.u32 15, %v4086_v13  ;;  %6012 = vmatprep.mubr.bf16.mxu1 %v11307_v51 }
 0x282   : > { %v5917_v43 = vcvt.s32.f32 %v4599_v44  ;;  %v5910_v30 = vcvt.s32.f32 %v4592_v47  ;;  %v5914_v63 = vcvt.s32.f32 %v4596_v9  ;;  %v5912_v3 = vcvt.s32.f32 %v4594_v61 }
 0x283   : > { %v5931_v35 = vpack.c.bf16 %v5915_v60, %v5911_v46  ;;  %v5916_v23 = vcvt.s32.f32 %v4598_v62  ;;  %v4073_v25 = vshrl.u32 %v2652_v17, %v8871_v2  ;;  %v4077_v41 = vshrl.u32 %v2668_v37, %v8871_v2 }
 0x284   : > { %v5933_v20 = vpack.c.bf16 %v5917_v43, %v5913_v24  ;;  %v5930_v49 = vpack.c.bf16 %v5914_v63, %v5910_v30  ;;  %v4075_v21 = vshrl.u32 %v2660_v19, %v8871_v2  ;;  %v4079_v42 = vshrl.u32 %v2676_v33, %v8871_v2 }
 0x285   : > { %5947 = vmatprep.subr.bf16.mxu0 %v5931_v35  ;;  %v5932_v38 = vpack.c.bf16 %v5916_v23, %v5912_v3  ;;  %v4585_v40 = vand.u32 15, %v4073_v25  ;;  %v4589_v28 = vand.u32 15, %v4077_v41  ;;  %v2648_v59 = vrot.slane %v9689_v15, %v8853_v54 }
 0x286   : > { %5988 = vmatprep.subr.bf16.mxu1 %v5933_v20  ;;  %5948 = vmatpush1.bf16.msra.mxu0 %v5930_v49  ;;  %v4587_v17 = vand.u32 15, %v4075_v21  ;;  %v4591_v32 = vand.u32 15, %v4079_v42  ;;  %v2664_v37 = vrot.slane %v9692_v34, %v8853_v54  ;;  %v2656_v19 = vrot.slane %v9689_v15, %v8858_v57 }
 0x287   : > { %5989 = vmatpush1.bf16.msra.mxu1 %v5932_v38  ;;  %v5903_v33 = vcvt.s32.f32 %v4585_v40  ;;  %v5907_v11 = vcvt.s32.f32 %v4589_v28  ;;  %v4072_v48 = vshrl.u32 %v2648_v59, %v8871_v2  ;;  %v2672_v27 = vrot.slane %v9692_v34, %v8858_v57 }
 0x288   : > { %v5905_v4 = vcvt.s32.f32 %v4587_v17  ;;  %v5909_v31 = vcvt.s32.f32 %v4591_v32  ;;  %v4076_v6 = vshrl.u32 %v2664_v37, %v8871_v2  ;;  %v4074_v0 = vshrl.u32 %v2656_v19, %v8871_v2 }
 0x289   : > { %v5927_v14 = vpack.c.bf16 %v5907_v11, %v5903_v33  ;;  %v4584_v8 = vand.u32 15, %v4072_v48  ;;  %v4078_v15 = vshrl.u32 %v2672_v27, %v8871_v2  ;;  %v1165_v29 = vcombine.low %v9634_v45, %v9695_v36 }
 0x28a   : > { %v5929_v39 = vpack.c.bf16 %v5909_v31, %v5905_v4  ;;  %v4588_v12 = vand.u32 15, %v4076_v6  ;;  %v4586_v50 = vand.u32 15, %v4074_v0  ;;  %v1166_v34 = vcombine.high %v9634_v45, %v9695_v36 }
 0x28b   : > { %5949 = vmatprep.subr.bf16.mxu0 %v5927_v14  ;;  %v5902_v1 = vcvt.s32.f32 %v4584_v8  ;;  %v4590_v16 = vand.u32 15, %v4078_v15  ;;  %v9755_v18 = vrot.slane %v1165_v29, %v8851_v53  ;;  %v9758_v26 = vrot.slane %v8065_v10, %v8851_v53 }
 0x28c   : > { %5990 = vmatprep.subr.bf16.mxu1 %v5929_v39  ;;  %v5906_v56 = vcvt.s32.f32 %v4588_v12  ;;  %v5904_v13 = vcvt.s32.f32 %v4586_v50  ;;  %v9761_v44 = vrot.slane %v1166_v34, %v8851_v53  ;;  %v9764_v47 = vrot.slane %v8067_v7, %v8851_v53 }
 0x28d   : > { %v5908_v9 = vcvt.s32.f32 %v4590_v16  ;;  %v1197_v45 = vcombine.high %v9755_v18, %v9755_v18  ;;  %v2588_v36 = vrot.slane %v9755_v18, %v8855_v55  ;;  %v2596_v61 = vrot.slane %v9755_v18, %v8860_v58 }
 0x28e   : > { %v5926_v46 = vpack.c.bf16 %v5906_v56, %v5902_v1  ;;  %v1199_v60 = vcombine.high %v9761_v44, %v9761_v44  ;;  %v2604_v24 = vrot.slane %v9761_v44, %v8855_v55  ;;  %v2612_v62 = vrot.slane %v9761_v44, %v8860_v58 }
 0x28f   : > { %v5928_v43 = vpack.c.bf16 %v5908_v9, %v5904_v13  ;;  %v2620_v30 = vrot.slane %v1197_v45, %v8855_v55  ;;  %v2628_v63 = vrot.slane %v1197_v45, %v8860_v58  ;;  %v2616_v3 = vrot.slane %v1197_v45, %v8853_v54 }
 0x290   : > { %5950 = vmatpush1.bf16.msra.mxu0 %v5926_v46  ;;  %v2636_v35 = vrot.slane %v1199_v60, %v8855_v55  ;;  %v2644_v23 = vrot.slane %v1199_v60, %v8860_v58  ;;  %v2632_v25 = vrot.slane %v1199_v60, %v8853_v54  ;;  %v2624_v41 = vrot.slane %v1197_v45, %v8858_v57 }
 0x291   : > { %5991 = vmatpush1.bf16.msra.mxu1 %v5928_v43  ;;  %v4065_v20 = vshrl.u32 %v2620_v30, %v8871_v2  ;;  %v4067_v49 = vshrl.u32 %v2628_v63, %v8871_v2  ;;  %v4064_v21 = vshrl.u32 %v2616_v3, %v8871_v2  ;;  %v2640_v42 = vrot.slane %v1199_v60, %v8858_v57  ;;  %v8069_v63 = vld [vmem:[%s8773_s19 + $0xe0] ss:$8 sps:$4 sm:$0xff]  }
 0x292   : > { %v4069_v38 = vshrl.u32 %v2636_v35, %v8871_v2  ;;  %v4071_v40 = vshrl.u32 %v2644_v23, %v8871_v2  ;;  %v4068_v28 = vshrl.u32 %v2632_v25, %v8871_v2  ;;  %v4066_v59 = vshrl.u32 %v2624_v41, %v8871_v2  ;;  %v8070_v41 = vld [vmem:[%s8773_s19 + $0xf0] ss:$8 sps:$4 sm:$0xff]  }
 0x293   : > { %v4577_v17 = vand.u32 15, %v4065_v20  ;;  %v4579_v32 = vand.u32 15, %v4067_v49  ;;  %v4576_v37 = vand.u32 15, %v4064_v21  ;;  %v4070_v19 = vshrl.u32 %v2640_v42, %v8871_v2 }
 0x294   : > { %v4581_v33 = vand.u32 15, %v4069_v38  ;;  %v4583_v11 = vand.u32 15, %v4071_v40  ;;  %v4580_v48 = vand.u32 15, %v4068_v28  ;;  %v4578_v27 = vand.u32 15, %v4066_v59 }
 0x295   : > { %v5895_v10 = vcvt.s32.f32 %v4577_v17  ;;  %v5897_v4 = vcvt.s32.f32 %v4579_v32  ;;  %v5894_v31 = vcvt.s32.f32 %v4576_v37  ;;  %v4582_v6 = vand.u32 15, %v4070_v19 }
 0x296   : > { %v5899_v0 = vcvt.s32.f32 %v4581_v33  ;;  %v5901_v7 = vcvt.s32.f32 %v4583_v11  ;;  %v5898_v14 = vcvt.s32.f32 %v4580_v48  ;;  %v5896_v8 = vcvt.s32.f32 %v4578_v27 }
 0x297   : > { %v5900_v15 = vcvt.s32.f32 %v4582_v6  ;;  %v4057_v29 = vshrl.u32 %v2588_v36, %v8871_v2  ;;  %v4061_v39 = vshrl.u32 %v2604_v24, %v8871_v2  ;;  %v4059_v12 = vshrl.u32 %v2596_v61, %v8871_v2 }
 0x298   : > { %v5923_v50 = vpack.c.bf16 %v5899_v0, %v5895_v10  ;;  %v5925_v34 = vpack.c.bf16 %v5901_v7, %v5897_v4  ;;  %v5922_v1 = vpack.c.bf16 %v5898_v14, %v5894_v31  ;;  %v4063_v16 = vshrl.u32 %v2612_v62, %v8871_v2 }
 0x299   : > { %v5924_v56 = vpack.c.bf16 %v5900_v15, %v5896_v8  ;;  %v4569_v13 = vand.u32 15, %v4057_v29  ;;  %v4573_v9 = vand.u32 15, %v4061_v39  ;;  %v4571_v45 = vand.u32 15, %v4059_v12 }
 0x29a   : > { %5951 = vmatprep.subr.bf16.mxu0 %v5923_v50  ;;  %5992 = vmatprep.subr.bf16.mxu1 %v5925_v34  ;;  %v4575_v46 = vand.u32 15, %v4063_v16  ;;  %v2584_v36 = vrot.slane %v9755_v18, %v8853_v54  ;;  %v2600_v61 = vrot.slane %v9761_v44, %v8853_v54  ;;  %v2592_v60 = vrot.slane %v9755_v18, %v8858_v57 }
 0x29b   : > { %5952 = vmatpush1.bf16.msra.mxu0 %v5922_v1  ;;  %5993 = vmatpush1.bf16.msra.mxu1 %v5924_v56  ;;  %v5887_v24 = vcvt.s32.f32 %v4569_v13  ;;  %v5891_v62 = vcvt.s32.f32 %v4573_v9  ;;  %v5889_v43 = vcvt.s32.f32 %v4571_v45  ;;  %v2608_v30 = vrot.slane %v9761_v44, %v8858_v57 }
 0x29c   : > { %v5893_v3 = vcvt.s32.f32 %v4575_v46  ;;  %v4056_v35 = vshrl.u32 %v2584_v36, %v8871_v2  ;;  %v4060_v23 = vshrl.u32 %v2600_v61, %v8871_v2  ;;  %v4058_v25 = vshrl.u32 %v2592_v60, %v8871_v2 }
 0x29d   : > { %v5919_v20 = vpack.c.bf16 %v5891_v62, %v5887_v24  ;;  %v4062_v18 = vshrl.u32 %v2608_v30, %v8871_v2  ;;  %v1235_v49 = vcombine.low %v9758_v26, %v9764_v47  ;;  %v1236_v21 = vcombine.high %v9758_v26, %v9764_v47 }
 0x29e   : > { %v5921_v42 = vpack.c.bf16 %v5893_v3, %v5889_v43  ;;  %v4568_v44 = vand.u32 15, %v4056_v35  ;;  %v4572_v38 = vand.u32 15, %v4060_v23  ;;  %v4570_v40 = vand.u32 15, %v4058_v25 }
 0x29f   : > { %5953 = vmatprep.subr.bf16.mxu0 %v5919_v20  ;;  %v4574_v28 = vand.u32 15, %v4062_v18  ;;  %v9817_v59 = vrot.slane %v1235_v49, %v8851_v53  ;;  %v9820_v17 = vrot.slane %v1236_v21, %v8851_v53  ;;  %v9823_v32 = vrot.slane %v8069_v63, %v8851_v53 }
 0x2a0   : > { %5994 = vmatprep.subr.bf16.mxu1 %v5921_v42  ;;  %v5886_v37 = vcvt.s32.f32 %v4568_v44  ;;  %v5890_v19 = vcvt.s32.f32 %v4572_v38  ;;  %v5888_v33 = vcvt.s32.f32 %v4570_v40  ;;  %v9826_v26 = vrot.slane %v8070_v41, %v8851_v53 }
 0x2a1   : > { %v5892_v47 = vcvt.s32.f32 %v4574_v28  ;;  %v1266_v11 = vcombine.high %v9817_v59, %v9817_v59  ;;  %v1268_v48 = vcombine.high %v9820_v17, %v9820_v17  ;;  %v2780_v27 = vrot.slane %v9817_v59, %v8855_v55 }
 0x2a2   : > { %v5918_v10 = vpack.c.bf16 %v5890_v19, %v5886_v37  ;;  %v2796_v4 = vrot.slane %v9820_v17, %v8855_v55  ;;  %v2788_v31 = vrot.slane %v9817_v59, %v8860_v58  ;;  %v2804_v6 = vrot.slane %v9820_v17, %v8860_v58 }
 0x2a3   : > { %v5920_v0 = vpack.c.bf16 %v5892_v47, %v5888_v33  ;;  %v2812_v7 = vrot.slane %v1266_v11, %v8855_v55  ;;  %v2828_v14 = vrot.slane %v1268_v48, %v8855_v55  ;;  %v2820_v8 = vrot.slane %v1266_v11, %v8860_v58 }
 0x2a4   : > { %5954 = vmatpush1.bf16.msra.mxu0 %v5918_v10  ;;  %v2836_v15 = vrot.slane %v1268_v48, %v8860_v58  ;;  %v2808_v29 = vrot.slane %v1266_v11, %v8853_v54  ;;  %v2824_v39 = vrot.slane %v1268_v48, %v8853_v54  ;;  %v2816_v12 = vrot.slane %v1266_v11, %v8858_v57 }
 0x2a5   : > { %5995 = vmatpush1.bf16.msra.mxu1 %v5920_v0  ;;  %v4113_v50 = vshrl.u32 %v2812_v7, %v8871_v2  ;;  %v4117_v34 = vshrl.u32 %v2828_v14, %v8871_v2  ;;  %v4115_v1 = vshrl.u32 %v2820_v8, %v8871_v2  ;;  %v2832_v16 = vrot.slane %v1268_v48, %v8858_v57  ;;  %v8071_v7 = vld [vmem:[%s8773_s19 + $0x104] ss:$8 sps:$4 sm:$0xff]  }
 0x2a6   : > { %v4119_v56 = vshrl.u32 %v2836_v15, %v8871_v2  ;;  %v4112_v13 = vshrl.u32 %v2808_v29, %v8871_v2  ;;  %v4116_v9 = vshrl.u32 %v2824_v39, %v8871_v2  ;;  %v4114_v45 = vshrl.u32 %v2816_v12, %v8871_v2  ;;  %v8073_v39 = vld [vmem:[%s8773_s19 + $0x114] ss:$8 sps:$4 sm:$0xff]  }
 0x2a7   : > { %7810 = vmatmul.mubr.msk.bf16.vlgmr.msra.gmra.mxu0 %vm4940_vm1, %v8849_v52  ;;  %v4625_v46 = vand.u32 15, %v4113_v50  ;;  %v4629_v36 = vand.u32 15, %v4117_v34  ;;  %v4627_v61 = vand.u32 15, %v4115_v1  ;;  %v4118_v60 = vshrl.u32 %v2832_v16, %v8871_v2 }
 0x2a8   : > { %7811 = vmatmul.mubr.msk.bf16.vlgmr.msra.gmra.mxu1 %vm4940_vm1, %v8849_v52  ;;  %v4631_v24 = vand.u32 15, %v4119_v56  ;;  %v4624_v62 = vand.u32 15, %v4112_v13  ;;  %v4628_v43 = vand.u32 15, %v4116_v9  ;;  %v4626_v30 = vand.u32 15, %v4114_v45  ;;  %6137 = vmatprep.mubr.bf16.mxu0 %v11307_v51 }
 0x2a9   : > { %v6077_v63 = vcvt.s32.f32 %v4625_v46  ;;  %v6081_v3 = vcvt.s32.f32 %v4629_v36  ;;  %v6079_v35 = vcvt.s32.f32 %v4627_v61  ;;  %v4630_v23 = vand.u32 15, %v4118_v60  ;;  %6178 = vmatprep.mubr.bf16.mxu1 %v11307_v51 }
 0x2aa   : > { %v6083_v25 = vcvt.s32.f32 %v4631_v24  ;;  %v6076_v41 = vcvt.s32.f32 %v4624_v62  ;;  %v6080_v20 = vcvt.s32.f32 %v4628_v43  ;;  %v6078_v18 = vcvt.s32.f32 %v4626_v30 }
 0x2ab   : > { %v6097_v49 = vpack.c.bf16 %v6081_v3, %v6077_v63  ;;  %v6082_v21 = vcvt.s32.f32 %v4630_v23  ;;  %v4105_v52 = vshrl.u32 %v2780_v27, %v8871_v2  ;;  %v4109_v42 = vshrl.u32 %v2796_v4, %v8871_v2 }
 0x2ac   : > { %v6099_v44 = vpack.c.bf16 %v6083_v25, %v6079_v35  ;;  %v6096_v38 = vpack.c.bf16 %v6080_v20, %v6076_v41  ;;  %v4107_v40 = vshrl.u32 %v2788_v31, %v8871_v2  ;;  %v4111_v28 = vshrl.u32 %v2804_v6, %v8871_v2 }
 0x2ad   : > { %6113 = vmatprep.subr.bf16.mxu0 %v6097_v49  ;;  %v6098_v37 = vpack.c.bf16 %v6082_v21, %v6078_v18  ;;  %v4617_v19 = vand.u32 15, %v4105_v52  ;;  %v4621_v33 = vand.u32 15, %v4109_v42  ;;  %v2776_v47 = vrot.slane %v9817_v59, %v8853_v54 }
 0x2ae   : > { %6154 = vmatprep.subr.bf16.mxu1 %v6099_v44  ;;  %6114 = vmatpush1.bf16.msra.mxu0 %v6096_v38  ;;  %v4619_v11 = vand.u32 15, %v4107_v40  ;;  %v4623_v48 = vand.u32 15, %v4111_v28  ;;  %v2792_v27 = vrot.slane %v9820_v17, %v8853_v54  ;;  %v2784_v10 = vrot.slane %v9817_v59, %v8858_v57 }
 0x2af   : > { %6155 = vmatpush1.bf16.msra.mxu1 %v6098_v37  ;;  %v6069_v4 = vcvt.s32.f32 %v4617_v19  ;;  %v6073_v31 = vcvt.s32.f32 %v4621_v33  ;;  %v4104_v6 = vshrl.u32 %v2776_v47, %v8871_v2  ;;  %v2800_v0 = vrot.slane %v9820_v17, %v8858_v57 }
 0x2b0   : > { %v6071_v14 = vcvt.s32.f32 %v4619_v11  ;;  %v6075_v8 = vcvt.s32.f32 %v4623_v48  ;;  %v4108_v15 = vshrl.u32 %v2792_v27, %v8871_v2  ;;  %v4106_v29 = vshrl.u32 %v2784_v10, %v8871_v2 }
 0x2b1   : > { %v6093_v12 = vpack.c.bf16 %v6073_v31, %v6069_v4  ;;  %v4616_v50 = vand.u32 15, %v4104_v6  ;;  %v4110_v59 = vshrl.u32 %v2800_v0, %v8871_v2  ;;  %v1233_v34 = vcombine.low %v9823_v32, %v9826_v26 }
 0x2b2   : > { %v6095_v1 = vpack.c.bf16 %v6075_v8, %v6071_v14  ;;  %v4620_v16 = vand.u32 15, %v4108_v15  ;;  %v4618_v56 = vand.u32 15, %v4106_v29  ;;  %v1234_v17 = vcombine.high %v9823_v32, %v9826_v26 }
 0x2b3   : > { %6115 = vmatprep.subr.bf16.mxu0 %v6093_v12  ;;  %v6068_v13 = vcvt.s32.f32 %v4616_v50  ;;  %v4622_v9 = vand.u32 15, %v4110_v59  ;;  %v9885_v45 = vrot.slane %v1233_v34, %v8851_v53  ;;  %v9888_v46 = vrot.slane %v8071_v7, %v8851_v53 }
 0x2b4   : > { %6156 = vmatprep.subr.bf16.mxu1 %v6095_v1  ;;  %v6072_v36 = vcvt.s32.f32 %v4620_v16  ;;  %v6070_v61 = vcvt.s32.f32 %v4618_v56  ;;  %v9891_v60 = vrot.slane %v1234_v17, %v8851_v53  ;;  %v9894_v24 = vrot.slane %v8073_v39, %v8851_v53 }
 0x2b5   : > { %v6074_v62 = vcvt.s32.f32 %v4622_v9  ;;  %v1265_v32 = vcombine.high %v9885_v45, %v9885_v45  ;;  %v2716_v26 = vrot.slane %v9885_v45, %v8855_v55  ;;  %v2724_v43 = vrot.slane %v9885_v45, %v8860_v58 }
 0x2b6   : > { %v6092_v30 = vpack.c.bf16 %v6072_v36, %v6068_v13  ;;  %v1267_v63 = vcombine.high %v9891_v60, %v9891_v60  ;;  %v2732_v3 = vrot.slane %v9891_v60, %v8855_v55  ;;  %v2740_v35 = vrot.slane %v9891_v60, %v8860_v58 }
 0x2b7   : > { %v6094_v23 = vpack.c.bf16 %v6074_v62, %v6070_v61  ;;  %v2748_v25 = vrot.slane %v1265_v32, %v8855_v55  ;;  %v2756_v41 = vrot.slane %v1265_v32, %v8860_v58  ;;  %v2744_v20 = vrot.slane %v1265_v32, %v8853_v54 }
 0x2b8   : > { %6116 = vmatpush1.bf16.msra.mxu0 %v6092_v30  ;;  %v2764_v18 = vrot.slane %v1267_v63, %v8855_v55  ;;  %v2772_v49 = vrot.slane %v1267_v63, %v8860_v58  ;;  %v2760_v21 = vrot.slane %v1267_v63, %v8853_v54  ;;  %v2752_v52 = vrot.slane %v1265_v32, %v8858_v57 }
 0x2b9   : > { %6157 = vmatpush1.bf16.msra.mxu1 %v6094_v23  ;;  %v4097_v42 = vshrl.u32 %v2748_v25, %v8871_v2  ;;  %v4099_v44 = vshrl.u32 %v2756_v41, %v8871_v2  ;;  %v4096_v38 = vshrl.u32 %v2744_v20, %v8871_v2  ;;  %v2768_v40 = vrot.slane %v1267_v63, %v8858_v57  ;;  %v8075_v25 = vld [vmem:[%s8773_s19 + $0x100] ss:$8 sps:$4 sm:$0xff]  }
 0x2ba   : > { %v4101_v28 = vshrl.u32 %v2764_v18, %v8871_v2  ;;  %v4103_v37 = vshrl.u32 %v2772_v49, %v8871_v2  ;;  %v4100_v19 = vshrl.u32 %v2760_v21, %v8871_v2  ;;  %v4098_v33 = vshrl.u32 %v2752_v52, %v8871_v2  ;;  %v8076_v21 = vld [vmem:[%s8773_s19 + $0x110] ss:$8 sps:$4 sm:$0xff]  }
 0x2bb   : > { %v4609_v47 = vand.u32 15, %v4097_v42  ;;  %v4611_v11 = vand.u32 15, %v4099_v44  ;;  %v4608_v48 = vand.u32 15, %v4096_v38  ;;  %v4102_v27 = vshrl.u32 %v2768_v40, %v8871_v2 }
 0x2bc   : > { %v4613_v10 = vand.u32 15, %v4101_v28  ;;  %v4615_v4 = vand.u32 15, %v4103_v37  ;;  %v4612_v31 = vand.u32 15, %v4100_v19  ;;  %v4610_v6 = vand.u32 15, %v4098_v33 }
 0x2bd   : > { %v6061_v0 = vcvt.s32.f32 %v4609_v47  ;;  %v6063_v7 = vcvt.s32.f32 %v4611_v11  ;;  %v6060_v14 = vcvt.s32.f32 %v4608_v48  ;;  %v4614_v8 = vand.u32 15, %v4102_v27 }
 0x2be   : > { %v6065_v15 = vcvt.s32.f32 %v4613_v10  ;;  %v6067_v29 = vcvt.s32.f32 %v4615_v4  ;;  %v6064_v39 = vcvt.s32.f32 %v4612_v31  ;;  %v6062_v12 = vcvt.s32.f32 %v4610_v6 }
 0x2bf   : > { %v6066_v50 = vcvt.s32.f32 %v4614_v8  ;;  %v4089_v59 = vshrl.u32 %v2716_v26, %v8871_v2  ;;  %v4093_v34 = vshrl.u32 %v2732_v3, %v8871_v2  ;;  %v4091_v1 = vshrl.u32 %v2724_v43, %v8871_v2 }
 0x2c0   : > { %v6089_v16 = vpack.c.bf16 %v6065_v15, %v6061_v0  ;;  %v6091_v56 = vpack.c.bf16 %v6067_v29, %v6063_v7  ;;  %v6088_v17 = vpack.c.bf16 %v6064_v39, %v6060_v14  ;;  %v4095_v13 = vshrl.u32 %v2740_v35, %v8871_v2 }
 0x2c1   : > { %v6090_v9 = vpack.c.bf16 %v6066_v50, %v6062_v12  ;;  %v4601_v36 = vand.u32 15, %v4089_v59  ;;  %v4605_v61 = vand.u32 15, %v4093_v34  ;;  %v4603_v62 = vand.u32 15, %v4091_v1  ;;  %v6101_v12 = vpop.permute.xlu1 %6100 }
 0x2c2   : > { %6117 = vmatprep.subr.bf16.mxu0 %v6089_v16  ;;  %6158 = vmatprep.subr.bf16.mxu1 %v6091_v56  ;;  %v4607_v32 = vand.u32 15, %v4095_v13  ;;  %v2712_v26 = vrot.slane %v9885_v45, %v8853_v54  ;;  %v2728_v43 = vrot.slane %v9891_v60, %v8853_v54  ;;  %v2720_v30 = vrot.slane %v9885_v45, %v8858_v57 }
 0x2c3   : > { %6118 = vmatpush1.bf16.msra.mxu0 %v6088_v17  ;;  %6159 = vmatpush1.bf16.msra.mxu1 %v6090_v9  ;;  %v6053_v63 = vcvt.s32.f32 %v4601_v36  ;;  %v6057_v3 = vcvt.s32.f32 %v4605_v61  ;;  %v6055_v35 = vcvt.s32.f32 %v4603_v62  ;;  %v2736_v23 = vrot.slane %v9891_v60, %v8858_v57 }
 0x2c4   : > { %v6059_v41 = vcvt.s32.f32 %v4607_v32  ;;  %v4088_v20 = vshrl.u32 %v2712_v26, %v8871_v2  ;;  %v4092_v18 = vshrl.u32 %v2728_v43, %v8871_v2  ;;  %v4090_v49 = vshrl.u32 %v2720_v30, %v8871_v2 }
 0x2c5   : > { %v6085_v52 = vpack.c.bf16 %v6057_v3, %v6053_v63  ;;  %v4094_v45 = vshrl.u32 %v2736_v23, %v8871_v2  ;;  %v1303_v42 = vcombine.low %v9888_v46, %v9894_v24  ;;  %v1304_v44 = vcombine.high %v9888_v46, %v9894_v24 }
 0x2c6   : > { %v6087_v38 = vpack.c.bf16 %v6059_v41, %v6055_v35  ;;  %v4600_v60 = vand.u32 15, %v4088_v20  ;;  %v4604_v40 = vand.u32 15, %v4092_v18  ;;  %v4602_v28 = vand.u32 15, %v4090_v49 }
 0x2c7   : > { %6119 = vmatprep.subr.bf16.mxu0 %v6085_v52  ;;  %v4606_v37 = vand.u32 15, %v4094_v45  ;;  %v9947_v19 = vrot.slane %v1303_v42, %v8851_v53  ;;  %v9950_v33 = vrot.slane %v1304_v44, %v8851_v53  ;;  %v9953_v47 = vrot.slane %v8075_v25, %v8851_v53 }
 0x2c8   : > { %6160 = vmatprep.subr.bf16.mxu1 %v6087_v38  ;;  %v6052_v11 = vcvt.s32.f32 %v4600_v60  ;;  %v6056_v48 = vcvt.s32.f32 %v4604_v40  ;;  %v6054_v27 = vcvt.s32.f32 %v4602_v28  ;;  %v9956_v46 = vrot.slane %v8076_v21, %v8851_v53 }
 0x2c9   : > { %v6058_v24 = vcvt.s32.f32 %v4606_v37  ;;  %v1334_v10 = vcombine.high %v9947_v19, %v9947_v19  ;;  %v1336_v4 = vcombine.high %v9950_v33, %v9950_v33  ;;  %v2908_v31 = vrot.slane %v9947_v19, %v8855_v55 }
 0x2ca   : > { %v6084_v6 = vpack.c.bf16 %v6056_v48, %v6052_v11  ;;  %v2924_v0 = vrot.slane %v9950_v33, %v8855_v55  ;;  %v2916_v7 = vrot.slane %v9947_v19, %v8860_v58  ;;  %v2932_v14 = vrot.slane %v9950_v33, %v8860_v58 }
 0x2cb   : > { %v6086_v8 = vpack.c.bf16 %v6058_v24, %v6054_v27  ;;  %v2940_v15 = vrot.slane %v1334_v10, %v8855_v55  ;;  %v2956_v29 = vrot.slane %v1336_v4, %v8855_v55  ;;  %v2948_v39 = vrot.slane %v1334_v10, %v8860_v58 }
 0x2cc   : > { %6120 = vmatpush1.bf16.msra.mxu0 %v6084_v6  ;;  %v2964_v50 = vrot.slane %v1336_v4, %v8860_v58  ;;  %v2936_v59 = vrot.slane %v1334_v10, %v8853_v54  ;;  %v2952_v34 = vrot.slane %v1336_v4, %v8853_v54  ;;  %v2944_v1 = vrot.slane %v1334_v10, %v8858_v57 }
 0x2cd   : > { %6161 = vmatpush1.bf16.msra.mxu1 %v6086_v8  ;;  %v4145_v16 = vshrl.u32 %v2940_v15, %v8871_v2  ;;  %v4149_v56 = vshrl.u32 %v2956_v29, %v8871_v2  ;;  %v4147_v17 = vshrl.u32 %v2948_v39, %v8871_v2  ;;  %v2960_v13 = vrot.slane %v1336_v4, %v8858_v57 }
 0x2ce   : > { %v4151_v9 = vshrl.u32 %v2964_v50, %v8871_v2  ;;  %v4144_v36 = vshrl.u32 %v2936_v59, %v8871_v2  ;;  %v4148_v61 = vshrl.u32 %v2952_v34, %v8871_v2  ;;  %v4146_v62 = vshrl.u32 %v2944_v1, %v8871_v2  ;;  %v8078_v59 = vld [vmem:[%s8773_s19 + $0x124] ss:$8 sps:$4 sm:$0xff]  }
 0x2cf   : > { %7813 = vmatmul.mubr.msk.bf16.vlgmr.msra.gmra.mxu0 %vm4940_vm1, %v6101_v12  ;;  %v4657_v32 = vand.u32 15, %v4145_v16  ;;  %v4661_v26 = vand.u32 15, %v4149_v56  ;;  %v4659_v43 = vand.u32 15, %v4147_v17  ;;  %v4150_v30 = vshrl.u32 %v2960_v13, %v8871_v2 }
 0x2d0   : > { %7814 = vmatmul.mubr.msk.bf16.vlgmr.msra.gmra.mxu1 %vm4940_vm1, %v6101_v12  ;;  %v4663_v63 = vand.u32 15, %v4151_v9  ;;  %v4656_v3 = vand.u32 15, %v4144_v36  ;;  %v4660_v35 = vand.u32 15, %v4148_v61  ;;  %v4658_v23 = vand.u32 15, %v4146_v62  ;;  %6301 = vmatprep.mubr.bf16.mxu0 %v11307_v51 }
 0x2d1   : > { %v6243_v25 = vcvt.s32.f32 %v4657_v32  ;;  %v6247_v41 = vcvt.s32.f32 %v4661_v26  ;;  %v6245_v20 = vcvt.s32.f32 %v4659_v43  ;;  %v4662_v18 = vand.u32 15, %v4150_v30  ;;  %6342 = vmatprep.mubr.bf16.mxu1 %v11307_v51 }
 0x2d2   : > { %v6249_v49 = vcvt.s32.f32 %v4663_v63  ;;  %v6242_v21 = vcvt.s32.f32 %v4656_v3  ;;  %v6246_v52 = vcvt.s32.f32 %v4660_v35  ;;  %v6244_v45 = vcvt.s32.f32 %v4658_v23 }
 0x2d3   : > { %v6263_v42 = vpack.c.bf16 %v6247_v41, %v6243_v25  ;;  %v6248_v44 = vcvt.s32.f32 %v4662_v18  ;;  %v4137_v38 = vshrl.u32 %v2908_v31, %v8871_v2  ;;  %v4141_v60 = vshrl.u32 %v2924_v0, %v8871_v2 }
 0x2d4   : > { %v6265_v40 = vpack.c.bf16 %v6249_v49, %v6245_v20  ;;  %v6262_v28 = vpack.c.bf16 %v6246_v52, %v6242_v21  ;;  %v4139_v37 = vshrl.u32 %v2916_v7, %v8871_v2  ;;  %v4143_v11 = vshrl.u32 %v2932_v14, %v8871_v2 }
 0x2d5   : > { %6277 = vmatprep.subr.bf16.mxu0 %v6263_v42  ;;  %v6264_v48 = vpack.c.bf16 %v6248_v44, %v6244_v45  ;;  %v4649_v27 = vand.u32 15, %v4137_v38  ;;  %v4653_v24 = vand.u32 15, %v4141_v60  ;;  %v2904_v10 = vrot.slane %v9947_v19, %v8853_v54 }
 0x2d6   : > { %6318 = vmatprep.subr.bf16.mxu1 %v6265_v40  ;;  %6278 = vmatpush1.bf16.msra.mxu0 %v6262_v28  ;;  %v4651_v4 = vand.u32 15, %v4139_v37  ;;  %v4655_v31 = vand.u32 15, %v4143_v11  ;;  %v2920_v6 = vrot.slane %v9950_v33, %v8853_v54  ;;  %v2912_v0 = vrot.slane %v9947_v19, %v8858_v57 }
 0x2d7   : > { %6319 = vmatpush1.bf16.msra.mxu1 %v6264_v48  ;;  %v6235_v7 = vcvt.s32.f32 %v4649_v27  ;;  %v6239_v14 = vcvt.s32.f32 %v4653_v24  ;;  %v4136_v8 = vshrl.u32 %v2904_v10, %v8871_v2  ;;  %v2928_v15 = vrot.slane %v9950_v33, %v8858_v57 }
 0x2d8   : > { %v6237_v29 = vcvt.s32.f32 %v4651_v4  ;;  %v6241_v39 = vcvt.s32.f32 %v4655_v31  ;;  %v4140_v12 = vshrl.u32 %v2920_v6, %v8871_v2  ;;  %v4138_v50 = vshrl.u32 %v2912_v0, %v8871_v2 }
 0x2d9   : > { %v6259_v34 = vpack.c.bf16 %v6239_v14, %v6235_v7  ;;  %v4648_v1 = vand.u32 15, %v4136_v8  ;;  %v4142_v16 = vshrl.u32 %v2928_v15, %v8871_v2  ;;  %v1301_v19 = vcombine.low %v9953_v47, %v9956_v46 }
 0x2da   : > { %v6261_v56 = vpack.c.bf16 %v6241_v39, %v6237_v29  ;;  %v4652_v17 = vand.u32 15, %v4140_v12  ;;  %v4650_v13 = vand.u32 15, %v4138_v50  ;;  %v1302_v33 = vcombine.high %v9953_v47, %v9956_v46 }
 0x2db   : > { %6279 = vmatprep.subr.bf16.mxu0 %v6259_v34  ;;  %v6234_v9 = vcvt.s32.f32 %v4648_v1  ;;  %v4654_v36 = vand.u32 15, %v4142_v16  ;;  %v10012_v61 = vrot.slane %v1301_v19, %v8851_v53  ;;  %v10016_v62 = vcombine.high %v9686_v22, %v9686_v22 }
 0x2dc   : > { %6320 = vmatprep.subr.bf16.mxu1 %v6261_v56  ;;  %v6238_v32 = vcvt.s32.f32 %v4652_v17  ;;  %v6236_v26 = vcvt.s32.f32 %v4650_v13  ;;  %v10019_v43 = vrot.slane %v1302_v33, %v8851_v53  ;;  %v10022_v30 = vrot.slane %v8078_v59, %v8851_v53 }
 0x2dd   : > { %v6240_v47 = vcvt.s32.f32 %v4654_v36  ;;  %v1333_v46 = vcombine.high %v10012_v61, %v10012_v61  ;;  %v2844_v63 = vrot.slane %v10012_v61, %v8855_v55  ;;  %v2852_v22 = vrot.slane %v10012_v61, %v8860_v58  ;;  %7430 = vrot.lane.b32.xlu1 %v10016_v62, %s8432_s17 }
 0x2de   : > { %v6258_v3 = vpack.c.bf16 %v6238_v32, %v6234_v9  ;;  %v1335_v35 = vcombine.high %v10019_v43, %v10019_v43  ;;  %v2860_v23 = vrot.slane %v10019_v43, %v8855_v55  ;;  %v2868_v25 = vrot.slane %v10019_v43, %v8860_v58  ;;  %v8080_v9 = vld [vmem:[%s8773_s19 + $0x134] ss:$8 sps:$4 sm:$0xff]  }
 0x2df   : > { %v6260_v41 = vpack.c.bf16 %v6240_v47, %v6236_v26  ;;  %v2876_v20 = vrot.slane %v1333_v46, %v8855_v55  ;;  %v2884_v18 = vrot.slane %v1333_v46, %v8860_v58  ;;  %v2872_v49 = vrot.slane %v1333_v46, %v8853_v54 }
 0x2e0   : > { %6280 = vmatpush1.bf16.msra.mxu0 %v6258_v3  ;;  %v2892_v21 = vrot.slane %v1335_v35, %v8855_v55  ;;  %v2900_v52 = vrot.slane %v1335_v35, %v8860_v58  ;;  %v2888_v45 = vrot.slane %v1335_v35, %v8853_v54  ;;  %v2880_v42 = vrot.slane %v1333_v46, %v8858_v57  ;;  %v8082_v46 = vld [vmem:[%s8773_s19 + $0x120] ss:$8 sps:$4 sm:$0xff]  }
 0x2e1   : > { %6321 = vmatpush1.bf16.msra.mxu1 %v6260_v41  ;;  %v4129_v44 = vshrl.u32 %v2876_v20, %v8871_v2  ;;  %v4131_v38 = vshrl.u32 %v2884_v18, %v8871_v2  ;;  %v4128_v60 = vshrl.u32 %v2872_v49, %v8871_v2  ;;  %v2896_v40 = vrot.slane %v1335_v35, %v8858_v57  ;;  %v8083_v18 = vld [vmem:[%s8773_s19 + $0x130] ss:$8 sps:$4 sm:$0xff]  }
 0x2e2   : > { %v4133_v28 = vshrl.u32 %v2892_v21, %v8871_v2  ;;  %v4135_v37 = vshrl.u32 %v2900_v52, %v8871_v2  ;;  %v4132_v11 = vshrl.u32 %v2888_v45, %v8871_v2  ;;  %v4130_v48 = vshrl.u32 %v2880_v42, %v8871_v2  ;;  %v8084_v42 = vld [vmem:[%s8773_s19 + $0x144] ss:$8 sps:$4 sm:$0xff]  }
 0x2e3   : > { %v4641_v27 = vand.u32 15, %v4129_v44  ;;  %v4643_v24 = vand.u32 15, %v4131_v38  ;;  %v4640_v10 = vand.u32 15, %v4128_v60  ;;  %v4134_v4 = vshrl.u32 %v2896_v40, %v8871_v2  ;;  %v8086_v40 = vld [vmem:[%s8773_s19 + $0x154] ss:$8 sps:$4 sm:$0xff]  }
 0x2e4   : > { %v4645_v31 = vand.u32 15, %v4133_v28  ;;  %v4647_v6 = vand.u32 15, %v4135_v37  ;;  %v4644_v0 = vand.u32 15, %v4132_v11  ;;  %v4642_v7 = vand.u32 15, %v4130_v48  ;;  %v8088_v48 = vld [vmem:[%s8773_s19 + $0x140] ss:$8 sps:$4 sm:$0xff]  }
 0x2e5   : > { %v6227_v14 = vcvt.s32.f32 %v4641_v27  ;;  %v6229_v8 = vcvt.s32.f32 %v4643_v24  ;;  %v6226_v15 = vcvt.s32.f32 %v4640_v10  ;;  %v4646_v29 = vand.u32 15, %v4134_v4 }
 0x2e6   : > { %v6231_v39 = vcvt.s32.f32 %v4645_v31  ;;  %v6233_v12 = vcvt.s32.f32 %v4647_v6  ;;  %v6230_v50 = vcvt.s32.f32 %v4644_v0  ;;  %v6228_v59 = vcvt.s32.f32 %v4642_v7 }
 0x2e7   : > { %v6232_v34 = vcvt.s32.f32 %v4646_v29  ;;  %v4121_v1 = vshrl.u32 %v2844_v63, %v8871_v2  ;;  %v4125_v16 = vshrl.u32 %v2860_v23, %v8871_v2  ;;  %v4123_v19 = vshrl.u32 %v2852_v22, %v8871_v2 }
 0x2e8   : > { %v6255_v56 = vpack.c.bf16 %v6231_v39, %v6227_v14  ;;  %v6257_v17 = vpack.c.bf16 %v6233_v12, %v6229_v8  ;;  %v6254_v13 = vpack.c.bf16 %v6230_v50, %v6226_v15  ;;  %v4127_v33 = vshrl.u32 %v2868_v25, %v8871_v2 }
 0x2e9   : > { %v6256_v36 = vpack.c.bf16 %v6232_v34, %v6228_v59  ;;  %v4633_v32 = vand.u32 15, %v4121_v1  ;;  %v4637_v26 = vand.u32 15, %v4125_v16  ;;  %v4635_v47 = vand.u32 15, %v4123_v19 }
 0x2ea   : > { %6281 = vmatprep.subr.bf16.mxu0 %v6255_v56  ;;  %6322 = vmatprep.subr.bf16.mxu1 %v6257_v17  ;;  %v4639_v63 = vand.u32 15, %v4127_v33  ;;  %v2840_v3 = vrot.slane %v10012_v61, %v8853_v54  ;;  %v2856_v22 = vrot.slane %v10019_v43, %v8853_v54  ;;  %v2848_v35 = vrot.slane %v10012_v61, %v8858_v57 }
 0x2eb   : > { %6282 = vmatpush1.bf16.msra.mxu0 %v6254_v13  ;;  %6323 = vmatpush1.bf16.msra.mxu1 %v6256_v36  ;;  %v6219_v23 = vcvt.s32.f32 %v4633_v32  ;;  %v6223_v25 = vcvt.s32.f32 %v4637_v26  ;;  %v6221_v41 = vcvt.s32.f32 %v4635_v47  ;;  %v2864_v20 = vrot.slane %v10019_v43, %v8858_v57 }
 0x2ec   : > { %v6225_v49 = vcvt.s32.f32 %v4639_v63  ;;  %v4120_v21 = vshrl.u32 %v2840_v3, %v8871_v2  ;;  %v4124_v52 = vshrl.u32 %v2856_v22, %v8871_v2  ;;  %v4122_v45 = vshrl.u32 %v2848_v35, %v8871_v2  ;;  %v8121_v3 = vld [vmem:[%s8766_s13 + $0x10] sm:$0xff] }
 0x2ed   : > { %v6251_v61 = vpack.c.bf16 %v6223_v25, %v6219_v23  ;;  %v4126_v44 = vshrl.u32 %v2864_v20, %v8871_v2  ;;  %v1368_v38 = vrot.slane %v8080_v9, %v8851_v53  ;;  %v10076_v60 = vrot.slane %v8082_v46, %v8851_v53 }
 0x2ee   : > { %v6253_v43 = vpack.c.bf16 %v6225_v49, %v6221_v41  ;;  %v4632_v28 = vand.u32 15, %v4120_v21  ;;  %v4636_v37 = vand.u32 15, %v4124_v52  ;;  %v4634_v11 = vand.u32 15, %v4122_v45 }
 0x2ef   : > { %6283 = vmatprep.subr.bf16.mxu0 %v6251_v61  ;;  %v4638_v27 = vand.u32 15, %v4126_v44  ;;  %v1371_v24 = vcombine.low %v10022_v30, %v1368_v38  ;;  %v1372_v10 = vcombine.high %v10022_v30, %v1368_v38  ;;  %v10083_v4 = vrot.slane %v8083_v18, %v8851_v53 }
 0x2f0   : > { %6324 = vmatprep.subr.bf16.mxu1 %v6253_v43  ;;  %v6218_v31 = vcvt.s32.f32 %v4632_v28  ;;  %v6222_v6 = vcvt.s32.f32 %v4636_v37  ;;  %v6220_v0 = vcvt.s32.f32 %v4634_v11  ;;  %v10086_v7 = vrot.slane %v8084_v42, %v8851_v53 }
 0x2f1   : > { %v6224_v14 = vcvt.s32.f32 %v4638_v27  ;;  %v10089_v8 = vrot.slane %v1371_v24, %v8851_v53  ;;  %v10092_v15 = vrot.slane %v1372_v10, %v8851_v53  ;;  %v1369_v30 = vcombine.low %v10076_v60, %v10083_v4 }
 0x2f2   : > { %v6250_v29 = vpack.c.bf16 %v6222_v6, %v6218_v31  ;;  %v1370_v39 = vcombine.high %v10076_v60, %v10083_v4  ;;  %v10099_v12 = vrot.slane %v8086_v40, %v8851_v53  ;;  %v10102_v50 = vrot.slane %v8088_v48, %v8851_v53 }
 0x2f3   : > { %v6252_v59 = vpack.c.bf16 %v6224_v14, %v6220_v0  ;;  %v1402_v34 = vcombine.high %v10089_v8, %v10089_v8  ;;  %v1404_v1 = vcombine.high %v10092_v15, %v10092_v15  ;;  %v3036_v16 = vrot.slane %v10089_v8, %v8855_v55 }
 0x2f4   : > { %6284 = vmatpush1.bf16.msra.mxu0 %v6250_v29  ;;  %v3052_v19 = vrot.slane %v10092_v15, %v8855_v55  ;;  %v3044_v56 = vrot.slane %v10089_v8, %v8860_v58  ;;  %v3060_v17 = vrot.slane %v10092_v15, %v8860_v58  ;;  %v3032_v13 = vrot.slane %v10089_v8, %v8853_v54 }
 0x2f5   : > { %6325 = vmatpush1.bf16.msra.mxu1 %v6252_v59  ;;  %v3068_v33 = vrot.slane %v1402_v34, %v8855_v55  ;;  %v3084_v9 = vrot.slane %v1404_v1, %v8855_v55  ;;  %v3076_v36 = vrot.slane %v1402_v34, %v8860_v58  ;;  %v3092_v32 = vrot.slane %v1404_v1, %v8860_v58 }
 0x2f6   : > { %v3064_v26 = vrot.slane %v1402_v34, %v8853_v54  ;;  %v3080_v47 = vrot.slane %v1404_v1, %v8853_v54  ;;  %v3072_v46 = vrot.slane %v1402_v34, %v8858_v57  ;;  %v3088_v63 = vrot.slane %v1404_v1, %v8858_v57 }
 0x2f7   : > { %7816 = vmatmul.mubr.msk.bf16.vlgmr.msra.gmra.mxu0 %vm4940_vm1, %v8121_v3  ;;  %v4177_v22 = vshrl.u32 %v3068_v33, %v8871_v2  ;;  %v4181_v35 = vshrl.u32 %v3084_v9, %v8871_v2  ;;  %v4179_v23 = vshrl.u32 %v3076_v36, %v8871_v2  ;;  %v4183_v25 = vshrl.u32 %v3092_v32, %v8871_v2 }
 0x2f8   : > { %7817 = vmatmul.mubr.msk.bf16.vlgmr.msra.gmra.mxu1 %vm4940_vm1, %v8121_v3  ;;  %v4176_v41 = vshrl.u32 %v3064_v26, %v8871_v2  ;;  %v4180_v20 = vshrl.u32 %v3080_v47, %v8871_v2  ;;  %v4178_v18 = vshrl.u32 %v3072_v46, %v8871_v2  ;;  %v4182_v49 = vshrl.u32 %v3088_v63, %v8871_v2 }
 0x2f9   : > { %v4689_v21 = vand.u32 15, %v4177_v22  ;;  %v4693_v52 = vand.u32 15, %v4181_v35  ;;  %v4691_v45 = vand.u32 15, %v4179_v23  ;;  %v4695_v42 = vand.u32 15, %v4183_v25  ;;  %6470 = vmatprep.mubr.bf16.mxu0 %v11307_v51  ;;  %6511 = vmatprep.mubr.bf16.mxu1 %v11307_v51 }
 0x2fa   : > { %v4688_v61 = vand.u32 15, %v4176_v41  ;;  %v4692_v44 = vand.u32 15, %v4180_v20  ;;  %v4690_v38 = vand.u32 15, %v4178_v18  ;;  %v4694_v40 = vand.u32 15, %v4182_v49 }
 0x2fb   : > { %v6407_v43 = vcvt.s32.f32 %v4689_v21  ;;  %v6411_v28 = vcvt.s32.f32 %v4693_v52  ;;  %v6409_v37 = vcvt.s32.f32 %v4691_v45  ;;  %v6413_v11 = vcvt.s32.f32 %v4695_v42 }
 0x2fc   : > { %v6406_v48 = vcvt.s32.f32 %v4688_v61  ;;  %v6410_v27 = vcvt.s32.f32 %v4692_v44  ;;  %v6408_v24 = vcvt.s32.f32 %v4690_v38  ;;  %v6412_v10 = vcvt.s32.f32 %v4694_v40 }
 0x2fd   : > { %v6427_v31 = vpack.c.bf16 %v6411_v28, %v6407_v43  ;;  %v6429_v6 = vpack.c.bf16 %v6413_v11, %v6409_v37  ;;  %v4169_v0 = vshrl.u32 %v3036_v16, %v8871_v2  ;;  %v4173_v14 = vshrl.u32 %v3052_v19, %v8871_v2 }
 0x2fe   : > { %v6426_v29 = vpack.c.bf16 %v6410_v27, %v6406_v48  ;;  %v6428_v59 = vpack.c.bf16 %v6412_v10, %v6408_v24  ;;  %v4171_v34 = vshrl.u32 %v3044_v56, %v8871_v2  ;;  %v4175_v1 = vshrl.u32 %v3060_v17, %v8871_v2 }
 0x2ff   : > { %6446 = vmatprep.subr.bf16.mxu0 %v6427_v31  ;;  %6487 = vmatprep.subr.bf16.mxu1 %v6429_v6  ;;  %v4681_v33 = vand.u32 15, %v4169_v0  ;;  %v4685_v9 = vand.u32 15, %v4173_v14  ;;  %v3048_v36 = vrot.slane %v10092_v15, %v8853_v54  ;;  %v4168_v32 = vshrl.u32 %v3032_v13, %v8871_v2 }
 0x300   : > { %6447 = vmatpush1.bf16.msra.mxu0 %v6426_v29  ;;  %6488 = vmatpush1.bf16.msra.mxu1 %v6428_v59  ;;  %v4683_v16 = vand.u32 15, %v4171_v34  ;;  %v4687_v26 = vand.u32 15, %v4175_v1  ;;  %v3040_v19 = vrot.slane %v10089_v8, %v8858_v57  ;;  %v3056_v56 = vrot.slane %v10092_v15, %v8858_v57 }
 0x301   : > { %v6399_v17 = vcvt.s32.f32 %v4681_v33  ;;  %v6403_v47 = vcvt.s32.f32 %v4685_v9  ;;  %v4172_v46 = vshrl.u32 %v3048_v36, %v8871_v2  ;;  %v4680_v63 = vand.u32 15, %v4168_v32 }
 0x302   : > { %v6401_v3 = vcvt.s32.f32 %v4683_v16  ;;  %v6405_v22 = vcvt.s32.f32 %v4687_v26  ;;  %v4170_v35 = vshrl.u32 %v3040_v19, %v8871_v2  ;;  %v4174_v13 = vshrl.u32 %v3056_v56, %v8871_v2 }
 0x303   : > { %v6423_v23 = vpack.c.bf16 %v6403_v47, %v6399_v17  ;;  %v4684_v25 = vand.u32 15, %v4172_v46  ;;  %v6398_v41 = vcvt.s32.f32 %v4680_v63  ;;  %v10157_v8 = vrot.slane %v1369_v30, %v8851_v53 }
 0x304   : > { %v6425_v15 = vpack.c.bf16 %v6405_v22, %v6401_v3  ;;  %v4682_v20 = vand.u32 15, %v4170_v35  ;;  %v4686_v18 = vand.u32 15, %v4174_v13  ;;  %v10163_v49 = vrot.slane %v1370_v39, %v8851_v53 }
 0x305   : > { %6448 = vmatprep.subr.bf16.mxu0 %v6423_v23  ;;  %v6402_v21 = vcvt.s32.f32 %v4684_v25  ;;  %v1401_v52 = vcombine.high %v10157_v8, %v10157_v8  ;;  %v2972_v45 = vrot.slane %v10157_v8, %v8855_v55  ;;  %v2980_v30 = vrot.slane %v10157_v8, %v8860_v58  ;;  %v10195_v23 = vpop.f32.mrf.mxu0  ;;  %v10197_v25 = vpop.f32.mrf.mxu1 }
 0x306   : > { %6489 = vmatprep.subr.bf16.mxu1 %v6425_v15  ;;  %v6400_v42 = vcvt.s32.f32 %v4682_v20  ;;  %v6404_v61 = vcvt.s32.f32 %v4686_v18  ;;  %v1403_v44 = vcombine.high %v10163_v49, %v10163_v49  ;;  %v2988_v60 = vrot.slane %v10163_v49, %v8855_v55 }
 0x307   : > { %v6422_v4 = vpack.c.bf16 %v6402_v21, %v6398_v41  ;;  %v3004_v39 = vrot.slane %v1401_v52, %v8855_v55  ;;  %v3012_v38 = vrot.slane %v1401_v52, %v8860_v58  ;;  %v3000_v40 = vrot.slane %v1401_v52, %v8853_v54 }
 0x308   : > { %v6424_v43 = vpack.c.bf16 %v6404_v61, %v6400_v42  ;;  %v3020_v28 = vrot.slane %v1403_v44, %v8855_v55  ;;  %v3028_v37 = vrot.slane %v1403_v44, %v8860_v58  ;;  %v3016_v11 = vrot.slane %v1403_v44, %v8853_v54 }
 0x309   : > { %6449 = vmatpush1.bf16.msra.mxu0 %v6422_v4  ;;  %v4161_v48 = vshrl.u32 %v3004_v39, %v8871_v2  ;;  %v4163_v27 = vshrl.u32 %v3012_v38, %v8871_v2  ;;  %v4160_v24 = vshrl.u32 %v3000_v40, %v8871_v2  ;;  %v3008_v10 = vrot.slane %v1401_v52, %v8858_v57 }
 0x30a   : > { %6490 = vmatpush1.bf16.msra.mxu1 %v6424_v43  ;;  %v4165_v31 = vshrl.u32 %v3020_v28, %v8871_v2  ;;  %v4167_v6 = vshrl.u32 %v3028_v37, %v8871_v2  ;;  %v4164_v0 = vshrl.u32 %v3016_v11, %v8871_v2  ;;  %v3024_v14 = vrot.slane %v1403_v44, %v8858_v57  ;;  %v8089_v43 = vld [vmem:[%s8773_s19 + $0x150] ss:$8 sps:$4 sm:$0xff]   ;;  %v10206_v28 = vpop.f32.mrf.mxu0 }
 0x30b   : > { %v4673_v29 = vand.u32 15, %v4161_v48  ;;  %v4675_v59 = vand.u32 15, %v4163_v27  ;;  %v4672_v34 = vand.u32 15, %v4160_v24  ;;  %v4162_v1 = vshrl.u32 %v3008_v10, %v8871_v2 }
 0x30c   : > { %v4677_v33 = vand.u32 15, %v4165_v31  ;;  %v4679_v9 = vand.u32 15, %v4167_v6  ;;  %v4676_v36 = vand.u32 15, %v4164_v0  ;;  %v4166_v32 = vshrl.u32 %v3024_v14, %v8871_v2  ;;  %v4982_v0 = vpop.f32.mrf.mxu0 }
 0x30d   : > { %v6391_v16 = vcvt.s32.f32 %v4673_v29  ;;  %v6393_v26 = vcvt.s32.f32 %v4675_v59  ;;  %v6390_v19 = vcvt.s32.f32 %v4672_v34  ;;  %v4674_v56 = vand.u32 15, %v4162_v1 }
 0x30e   : > { %v6395_v17 = vcvt.s32.f32 %v4677_v33  ;;  %v6397_v47 = vcvt.s32.f32 %v4679_v9  ;;  %v6394_v46 = vcvt.s32.f32 %v4676_v36  ;;  %v4678_v63 = vand.u32 15, %v4166_v32  ;;  %v4983_v36 = vpop.f32.mrf.mxu0 }
 0x30f   : > { %v6392_v3 = vcvt.s32.f32 %v4674_v56  ;;  %v4153_v22 = vshrl.u32 %v2972_v45, %v8871_v2  ;;  %v4157_v35 = vshrl.u32 %v2988_v60, %v8871_v2  ;;  %v2996_v13 = vrot.slane %v10163_v49, %v8860_v58 }
 0x310   : > { %v6419_v41 = vpack.c.bf16 %v6395_v17, %v6391_v16  ;;  %v6421_v15 = vpack.c.bf16 %v6397_v47, %v6393_v26  ;;  %v6418_v20 = vpack.c.bf16 %v6394_v46, %v6390_v19  ;;  %v6396_v18 = vcvt.s32.f32 %v4678_v63 }
 0x311   : > { %v4665_v21 = vand.u32 15, %v4153_v22  ;;  %v4669_v52 = vand.u32 15, %v4157_v35  ;;  %v4155_v42 = vshrl.u32 %v2980_v30, %v8871_v2  ;;  %v4159_v45 = vshrl.u32 %v2996_v13, %v8871_v2  ;;  %v10208_v30 = vpop.f32.mrf.mxu1 }
 0x312   : > { %6450 = vmatprep.subr.bf16.mxu0 %v6419_v41  ;;  %6491 = vmatprep.subr.bf16.mxu1 %v6421_v15  ;;  %v6420_v61 = vpack.c.bf16 %v6396_v18, %v6392_v3  ;;  %v2968_v44 = vrot.slane %v10157_v8, %v8853_v54  ;;  %v2984_v60 = vrot.slane %v10163_v49, %v8853_v54  ;;  %v6434_v18 = vpop.permute.xlu0 %6433 }
 0x313   : > { %6451 = vmatpush1.bf16.msra.mxu0 %v6418_v20  ;;  %v6383_v4 = vcvt.s32.f32 %v4665_v21  ;;  %v6387_v39 = vcvt.s32.f32 %v4669_v52  ;;  %v4667_v38 = vand.u32 15, %v4155_v42  ;;  %v4671_v40 = vand.u32 15, %v4159_v45  ;;  %v5023_v14 = vpop.f32.mrf.mxu1 }
 0x314   : > { %6492 = vmatpush1.bf16.msra.mxu1 %v6420_v61  ;;  %v4152_v37 = vshrl.u32 %v2968_v44, %v8871_v2  ;;  %v4156_v11 = vshrl.u32 %v2984_v60, %v8871_v2  ;;  %v2976_v48 = vrot.slane %v10157_v8, %v8858_v57  ;;  %v2992_v27 = vrot.slane %v10163_v49, %v8858_v57 }
 0x315   : > { %v6415_v24 = vpack.c.bf16 %v6387_v39, %v6383_v4  ;;  %v6385_v10 = vcvt.s32.f32 %v4667_v38  ;;  %v6389_v31 = vcvt.s32.f32 %v4671_v40  ;;  %v1439_v6 = vcombine.low %v10086_v7, %v10099_v12  ;;  %v5024_v32 = vpop.f32.mrf.mxu1 }
 0x316   : > { %v4664_v29 = vand.u32 15, %v4152_v37  ;;  %v4668_v59 = vand.u32 15, %v4156_v11  ;;  %v4154_v34 = vshrl.u32 %v2976_v48, %v8871_v2  ;;  %v4158_v1 = vshrl.u32 %v2992_v27, %v8871_v2 }
 0x317   : > { %6452 = vmatprep.subr.bf16.mxu0 %v6415_v24  ;;  %v6417_v33 = vpack.c.bf16 %v6389_v31, %v6385_v10  ;;  %v1440_v8 = vcombine.high %v10086_v7, %v10099_v12  ;;  %v10223_v49 = vrot.slane %v1439_v6, %v8851_v53  ;;  %v10226_v9 = vrot.slane %v8089_v43, %v8851_v53 }
 0x318   : > { %v6382_v16 = vcvt.s32.f32 %v4664_v29  ;;  %v6386_v26 = vcvt.s32.f32 %v4668_v59  ;;  %v4666_v19 = vand.u32 15, %v4154_v34  ;;  %v4670_v56 = vand.u32 15, %v4158_v1 }
 0x319   : > { %6493 = vmatprep.subr.bf16.mxu1 %v6417_v33  ;;  %v10229_v17 = vrot.slane %v1440_v8, %v8851_v53  ;;  %v1470_v47 = vcombine.high %v10223_v49, %v10223_v49  ;;  %v3164_v7 = vrot.slane %v10223_v49, %v8855_v55  ;;  %v3172_v12 = vrot.slane %v10223_v49, %v8860_v58 }
 0x31a   : > { %v6414_v46 = vpack.c.bf16 %v6386_v26, %v6382_v16  ;;  %v6384_v63 = vcvt.s32.f32 %v4666_v19  ;;  %v6388_v3 = vcvt.s32.f32 %v4670_v56  ;;  %v3160_v22 = vrot.slane %v10223_v49, %v8853_v54 }
 0x31b   : > { %v1472_v35 = vcombine.high %v10229_v17, %v10229_v17  ;;  %v3196_v13 = vrot.slane %v1470_v47, %v8855_v55  ;;  %v3204_v41 = vrot.slane %v1470_v47, %v8860_v58  ;;  %v3192_v15 = vrot.slane %v1470_v47, %v8853_v54 }
 0x31c   : > { %6453 = vmatpush1.bf16.msra.mxu0 %v6414_v46  ;;  %v6416_v20 = vpack.c.bf16 %v6388_v3, %v6384_v63  ;;  %v3200_v21 = vrot.slane %v1470_v47, %v8858_v57  ;;  %v3180_v52 = vrot.slane %v10229_v17, %v8855_v55  ;;  %v4201_v42 = vshrl.u32 %v3164_v7, %v8871_v2 }
 0x31d   : > { %v3212_v45 = vrot.slane %v1472_v35, %v8855_v55  ;;  %v4209_v61 = vshrl.u32 %v3196_v13, %v8871_v2  ;;  %v3220_v44 = vrot.slane %v1472_v35, %v8860_v58  ;;  %v4211_v60 = vshrl.u32 %v3204_v41, %v8871_v2 }
 0x31e   : > { %6494 = vmatpush1.bf16.msra.mxu1 %v6416_v20  ;;  %v3208_v4 = vrot.slane %v1472_v35, %v8853_v54  ;;  %v4208_v39 = vshrl.u32 %v3192_v15, %v8871_v2  ;;  %v3216_v38 = vrot.slane %v1472_v35, %v8858_v57  ;;  %v4210_v40 = vshrl.u32 %v3200_v21, %v8871_v2 }
 0x31f   : > { %7820 = vmatmul.mubr.msk.bf16.vlgmr.msra.gmra.mxu0 %vm4940_vm1, %v6434_v18  ;;  %v4213_v43 = vshrl.u32 %v3212_v45, %v8871_v2  ;;  %v4721_v37 = vand.u32 15, %v4209_v61  ;;  %v4215_v11 = vshrl.u32 %v3220_v44, %v8871_v2  ;;  %v4723_v48 = vand.u32 15, %v4211_v60 }
 0x320   : > { %v4212_v27 = vshrl.u32 %v3208_v4, %v8871_v2  ;;  %v4720_v24 = vand.u32 15, %v4208_v39  ;;  %v4214_v10 = vshrl.u32 %v3216_v38, %v8871_v2  ;;  %v4722_v31 = vand.u32 15, %v4210_v40  ;;  %6636 = vmatprep.mubr.bf16.mxu0 %v11307_v51 }
 0x321   : > { %7821 = vmatmul.mubr.msk.bf16.vlgmr.msra.gmra.mxu1 %vm4940_vm1, %v6434_v18  ;;  %v4725_v6 = vand.u32 15, %v4213_v43  ;;  %v6576_v0 = vcvt.s32.f32 %v4721_v37  ;;  %v4727_v14 = vand.u32 15, %v4215_v11  ;;  %v6578_v29 = vcvt.s32.f32 %v4723_v48 }
 0x322   : > { %v4724_v59 = vand.u32 15, %v4212_v27  ;;  %v6575_v34 = vcvt.s32.f32 %v4720_v24  ;;  %v4726_v1 = vand.u32 15, %v4214_v10  ;;  %v6577_v33 = vcvt.s32.f32 %v4722_v31  ;;  %6677 = vmatprep.mubr.bf16.mxu1 %v11307_v51 }
 0x323   : > { %v6580_v8 = vcvt.s32.f32 %v4725_v6  ;;  %v6582_v36 = vcvt.s32.f32 %v4727_v14  ;;  %v4205_v32 = vshrl.u32 %v3180_v52, %v8871_v2  ;;  %v4713_v16 = vand.u32 15, %v4201_v42  ;;  %v8090_v52 = vld [vmem:[%s8773_s19 + $0x164] ss:$8 sps:$4 sm:$0xff]  }
 0x324   : > { %v6579_v26 = vcvt.s32.f32 %v4724_v59  ;;  %v6581_v19 = vcvt.s32.f32 %v4726_v1  ;;  %v3188_v56 = vrot.slane %v10229_v17, %v8860_v58  ;;  %v4203_v47 = vshrl.u32 %v3172_v12, %v8871_v2 }
 0x325   : > { %v6596_v7 = vpack.c.bf16 %v6580_v8, %v6576_v0  ;;  %v6598_v46 = vpack.c.bf16 %v6582_v36, %v6578_v29  ;;  %v4717_v63 = vand.u32 15, %v4205_v32  ;;  %v6568_v3 = vcvt.s32.f32 %v4713_v16 }
 0x326   : > { %v6595_v35 = vpack.c.bf16 %v6579_v26, %v6575_v34  ;;  %v6597_v13 = vpack.c.bf16 %v6581_v19, %v6577_v33  ;;  %v4207_v41 = vshrl.u32 %v3188_v56, %v8871_v2  ;;  %v4715_v15 = vand.u32 15, %v4203_v47 }
 0x327   : > { %6612 = vmatprep.subr.bf16.mxu0 %v6596_v7  ;;  %6653 = vmatprep.subr.bf16.mxu1 %v6598_v46  ;;  %v6572_v20 = vcvt.s32.f32 %v4717_v63  ;;  %v3176_v18 = vrot.slane %v10229_v17, %v8853_v54  ;;  %v4200_v21 = vshrl.u32 %v3160_v22, %v8871_v2  ;;  %v3168_v12 = vrot.slane %v10223_v49, %v8858_v57 }
 0x328   : > { %6613 = vmatpush1.bf16.msra.mxu0 %v6595_v35  ;;  %6654 = vmatpush1.bf16.msra.mxu1 %v6597_v13  ;;  %v4719_v42 = vand.u32 15, %v4207_v41  ;;  %v6570_v45 = vcvt.s32.f32 %v4715_v15  ;;  %v3184_v61 = vrot.slane %v10229_v17, %v8858_v57  ;;  %v1437_v44 = vcombine.low %v10102_v50, %v10226_v9 }
 0x329   : > { %v6592_v60 = vpack.c.bf16 %v6572_v20, %v6568_v3  ;;  %v4204_v4 = vshrl.u32 %v3176_v18, %v8871_v2  ;;  %v4712_v39 = vand.u32 15, %v4200_v21  ;;  %v4202_v22 = vshrl.u32 %v3168_v12, %v8871_v2 }
 0x32a   : > { %v6574_v38 = vcvt.s32.f32 %v4719_v42  ;;  %v4206_v49 = vshrl.u32 %v3184_v61, %v8871_v2  ;;  %v1438_v40 = vcombine.high %v10102_v50, %v10226_v9  ;;  %v10285_v43 = vrot.slane %v1437_v44, %v8851_v53 }
 0x32b   : > { %6614 = vmatprep.subr.bf16.mxu0 %v6592_v60  ;;  %v4716_v17 = vand.u32 15, %v4204_v4  ;;  %v6567_v37 = vcvt.s32.f32 %v4712_v39  ;;  %v4714_v11 = vand.u32 15, %v4202_v22  ;;  %v10288_v48 = vrot.slane %v8090_v52, %v8851_v53 }
 0x32c   : > { %v6594_v27 = vpack.c.bf16 %v6574_v38, %v6570_v45  ;;  %v4718_v24 = vand.u32 15, %v4206_v49  ;;  %v10291_v10 = vrot.slane %v1438_v40, %v8851_v53  ;;  %v1469_v31 = vcombine.high %v10285_v43, %v10285_v43 }
 0x32d   : > { %v6571_v6 = vcvt.s32.f32 %v4716_v17  ;;  %v6569_v50 = vcvt.s32.f32 %v4714_v11  ;;  %v3100_v9 = vrot.slane %v10285_v43, %v8855_v55  ;;  %v3108_v0 = vrot.slane %v10285_v43, %v8860_v58 }
 0x32e   : > { %6655 = vmatprep.subr.bf16.mxu1 %v6594_v27  ;;  %v6573_v14 = vcvt.s32.f32 %v4718_v24  ;;  %v1471_v29 = vcombine.high %v10291_v10, %v10291_v10  ;;  %v3132_v59 = vrot.slane %v1469_v31, %v8855_v55  ;;  %v3140_v34 = vrot.slane %v1469_v31, %v8860_v58 }
 0x32f   : > { %v6591_v1 = vpack.c.bf16 %v6571_v6, %v6567_v37  ;;  %v3128_v33 = vrot.slane %v1469_v31, %v8853_v54  ;;  %v3136_v8 = vrot.slane %v1469_v31, %v8858_v57  ;;  %v3116_v36 = vrot.slane %v10291_v10, %v8855_v55  ;;  %v8092_v6 = vld [vmem:[%s8773_s19 + $0x174] ss:$8 sps:$4 sm:$0xff]  }
 0x330   : > { %v6593_v32 = vpack.c.bf16 %v6573_v14, %v6569_v50  ;;  %v3148_v16 = vrot.slane %v1471_v29, %v8855_v55  ;;  %v4193_v26 = vshrl.u32 %v3132_v59, %v8871_v2  ;;  %v3156_v19 = vrot.slane %v1471_v29, %v8860_v58 }
 0x331   : > { %6615 = vmatpush1.bf16.msra.mxu0 %v6591_v1  ;;  %v4195_v56 = vshrl.u32 %v3140_v34, %v8871_v2  ;;  %v3144_v47 = vrot.slane %v1471_v29, %v8853_v54  ;;  %v4192_v7 = vshrl.u32 %v3128_v33, %v8871_v2  ;;  %v3152_v46 = vrot.slane %v1471_v29, %v8858_v57 }
 0x332   : > { %6656 = vmatpush1.bf16.msra.mxu1 %v6593_v32  ;;  %v4197_v63 = vshrl.u32 %v3148_v16, %v8871_v2  ;;  %v4705_v3 = vand.u32 15, %v4193_v26  ;;  %v4199_v35 = vshrl.u32 %v3156_v19, %v8871_v2  ;;  %v4194_v13 = vshrl.u32 %v3136_v8, %v8871_v2  ;;  %v8094_v16 = vld [vmem:[%s8773_s19 + $0x160] ss:$8 sps:$4 sm:$0xff]  }
 0x333   : > { %v4707_v41 = vand.u32 15, %v4195_v56  ;;  %v4196_v15 = vshrl.u32 %v3144_v47, %v8871_v2  ;;  %v4704_v20 = vand.u32 15, %v4192_v7  ;;  %v4198_v18 = vshrl.u32 %v3152_v46, %v8871_v2 }
 0x334   : > { %v4709_v21 = vand.u32 15, %v4197_v63  ;;  %v6560_v12 = vcvt.s32.f32 %v4705_v3  ;;  %v4711_v52 = vand.u32 15, %v4199_v35  ;;  %v4706_v42 = vand.u32 15, %v4194_v13  ;;  %v8095_v35 = vld [vmem:[%s8773_s19 + $0x170] ss:$8 sps:$4 sm:$0xff]  }
 0x335   : > { %v6562_v45 = vcvt.s32.f32 %v4707_v41  ;;  %v4708_v61 = vand.u32 15, %v4196_v15  ;;  %v6559_v44 = vcvt.s32.f32 %v4704_v20  ;;  %v4710_v60 = vand.u32 15, %v4198_v18  ;;  %v8096_v13 = vld [vmem:[%s8773_s19 + $0x184] ss:$8 sps:$4 sm:$0xff]  }
 0x336   : > { %v6564_v4 = vcvt.s32.f32 %v4709_v21  ;;  %v6566_v39 = vcvt.s32.f32 %v4711_v52  ;;  %v6561_v22 = vcvt.s32.f32 %v4706_v42  ;;  %v4185_v38 = vshrl.u32 %v3100_v9, %v8871_v2 }
 0x337   : > { %v6563_v49 = vcvt.s32.f32 %v4708_v61  ;;  %v6565_v40 = vcvt.s32.f32 %v4710_v60  ;;  %v4189_v17 = vshrl.u32 %v3116_v36, %v8871_v2  ;;  %v3124_v37 = vrot.slane %v10291_v10, %v8860_v58 }
 0x338   : > { %v6588_v11 = vpack.c.bf16 %v6564_v4, %v6560_v12  ;;  %v6590_v27 = vpack.c.bf16 %v6566_v39, %v6562_v45  ;;  %v4697_v24 = vand.u32 15, %v4185_v38  ;;  %v4187_v31 = vshrl.u32 %v3108_v0, %v8871_v2 }
 0x339   : > { %v6587_v50 = vpack.c.bf16 %v6563_v49, %v6559_v44  ;;  %v6589_v14 = vpack.c.bf16 %v6565_v40, %v6561_v22  ;;  %v4701_v29 = vand.u32 15, %v4189_v17  ;;  %v4191_v59 = vshrl.u32 %v3124_v37, %v8871_v2 }
 0x33a   : > { %6616 = vmatprep.subr.bf16.mxu0 %v6588_v11  ;;  %6657 = vmatprep.subr.bf16.mxu1 %v6590_v27  ;;  %v6552_v9 = vcvt.s32.f32 %v4697_v24  ;;  %v4699_v34 = vand.u32 15, %v4187_v31  ;;  %v3096_v1 = vrot.slane %v10285_v43, %v8853_v54  ;;  %v3112_v33 = vrot.slane %v10291_v10, %v8853_v54 }
 0x33b   : > { %6617 = vmatpush1.bf16.msra.mxu0 %v6587_v50  ;;  %6658 = vmatpush1.bf16.msra.mxu1 %v6589_v14  ;;  %v6556_v0 = vcvt.s32.f32 %v4701_v29  ;;  %v4703_v8 = vand.u32 15, %v4191_v59  ;;  %v3104_v36 = vrot.slane %v10285_v43, %v8858_v57  ;;  %v3120_v32 = vrot.slane %v10291_v10, %v8858_v57 }
 0x33c   : > { %v6554_v26 = vcvt.s32.f32 %v4699_v34  ;;  %v4184_v19 = vshrl.u32 %v3096_v1, %v8871_v2  ;;  %v4188_v56 = vshrl.u32 %v3112_v33, %v8871_v2  ;;  %v1504_v47 = vrot.slane %v8092_v6, %v8851_v53 }
 0x33d   : > { %v6584_v7 = vpack.c.bf16 %v6556_v0, %v6552_v9  ;;  %v6558_v46 = vcvt.s32.f32 %v4703_v8  ;;  %v4186_v63 = vshrl.u32 %v3104_v36, %v8871_v2  ;;  %v4190_v3 = vshrl.u32 %v3120_v32, %v8871_v2 }
 0x33e   : > { %v4696_v43 = vand.u32 15, %v4184_v19  ;;  %v4700_v41 = vand.u32 15, %v4188_v56  ;;  %v1507_v10 = vcombine.low %v10288_v48, %v1504_v47  ;;  %v1508_v15 = vcombine.high %v10288_v48, %v1504_v47 }
 0x33f   : > { %6618 = vmatprep.subr.bf16.mxu0 %v6584_v7  ;;  %v6586_v20 = vpack.c.bf16 %v6558_v46, %v6554_v26  ;;  %v4698_v18 = vand.u32 15, %v4186_v63  ;;  %v4702_v21 = vand.u32 15, %v4190_v3  ;;  %v10345_v12 = vrot.slane %v8094_v16, %v8851_v53 }
 0x340   : > { %v6551_v52 = vcvt.s32.f32 %v4696_v43  ;;  %v6555_v42 = vcvt.s32.f32 %v4700_v41  ;;  %v10348_v45 = vrot.slane %v1507_v10, %v8851_v53  ;;  %v10351_v61 = vrot.slane %v1508_v15, %v8851_v53  ;;  %v10393_v41 = vpop.f32.mrf.mxu0  ;;  %v10395_v10 = vpop.f32.mrf.mxu1 }
 0x341   : > { %6659 = vmatprep.subr.bf16.mxu1 %v6586_v20  ;;  %v6553_v44 = vcvt.s32.f32 %v4698_v18  ;;  %v6557_v60 = vcvt.s32.f32 %v4702_v21  ;;  %v10354_v48 = vrot.slane %v8095_v35, %v8851_v53  ;;  %v10357_v4 = vrot.slane %v8096_v13, %v8851_v53 }
 0x342   : > { %v6583_v39 = vpack.c.bf16 %v6555_v42, %v6551_v52  ;;  %v1538_v22 = vcombine.high %v10348_v45, %v10348_v45  ;;  %v1540_v38 = vcombine.high %v10351_v61, %v10351_v61  ;;  %v3292_v49 = vrot.slane %v10348_v45, %v8855_v55 }
 0x343   : > { %v6585_v40 = vpack.c.bf16 %v6557_v60, %v6553_v44  ;;  %v3308_v17 = vrot.slane %v10351_v61, %v8855_v55  ;;  %v3300_v37 = vrot.slane %v10348_v45, %v8860_v58  ;;  %v3316_v11 = vrot.slane %v10351_v61, %v8860_v58  ;;  %v10399_v60 = vpop.f32.mrf.mxu0 }
 0x344   : > { %6619 = vmatpush1.bf16.msra.mxu0 %v6583_v39  ;;  %v3324_v27 = vrot.slane %v1538_v22, %v8855_v55  ;;  %v3340_v24 = vrot.slane %v1540_v38, %v8855_v55  ;;  %v3332_v31 = vrot.slane %v1538_v22, %v8860_v58  ;;  %v3348_v6 = vrot.slane %v1540_v38, %v8860_v58  ;;  %v10401_v39 = vpop.f32.mrf.mxu1 }
 0x345   : > { %6660 = vmatpush1.bf16.msra.mxu1 %v6585_v40  ;;  %v3320_v50 = vrot.slane %v1538_v22, %v8853_v54  ;;  %v3336_v14 = vrot.slane %v1540_v38, %v8853_v54  ;;  %v3328_v29 = vrot.slane %v1538_v22, %v8858_v57  ;;  %v3344_v59 = vrot.slane %v1540_v38, %v8858_v57 }
 0x346   : > { %v4241_v9 = vshrl.u32 %v3324_v27, %v8871_v2  ;;  %v4245_v34 = vshrl.u32 %v3340_v24, %v8871_v2  ;;  %v4243_v1 = vshrl.u32 %v3332_v31, %v8871_v2  ;;  %v4247_v33 = vshrl.u32 %v3348_v6, %v8871_v2  ;;  %v5146_v6 = vpop.f32.mrf.mxu0 }
 0x347   : > { %7824 = vmatmul.mubr.msk.bf16.vlgmr.msra.gmra.mxu0 %vm4940_vm1, %v9381_v5  ;;  %v4240_v0 = vshrl.u32 %v3320_v50, %v8871_v2  ;;  %v4244_v8 = vshrl.u32 %v3336_v14, %v8871_v2  ;;  %v4242_v36 = vshrl.u32 %v3328_v29, %v8871_v2  ;;  %v4246_v32 = vshrl.u32 %v3344_v59, %v8871_v2  ;;  %v5187_v50 = vpop.f32.mrf.mxu1 }
 0x348   : > { %7825 = vmatmul.mubr.msk.bf16.vlgmr.msra.gmra.mxu1 %vm4940_vm1, %v9381_v5  ;;  %v4753_v16 = vand.u32 15, %v4241_v9  ;;  %v4757_v26 = vand.u32 15, %v4245_v34  ;;  %v4755_v19 = vand.u32 15, %v4243_v1  ;;  %v4759_v56 = vand.u32 15, %v4247_v33  ;;  %6802 = vmatprep.mubr.bf16.mxu0 %v11307_v51  ;;  %v8098_v33 = vld [vmem:[%s8773_s19 + $0x194] ss:$8 sps:$4 sm:$0xff]  }
 0x349   : > { %v4752_v47 = vand.u32 15, %v4240_v0  ;;  %v4756_v7 = vand.u32 15, %v4244_v8  ;;  %v4754_v46 = vand.u32 15, %v4242_v36  ;;  %v4758_v63 = vand.u32 15, %v4246_v32  ;;  %6843 = vmatprep.mubr.bf16.mxu1 %v11307_v51  ;;  %v5147_v0 = vpop.f32.mrf.mxu0  ;;  %v5188_v8 = vpop.f32.mrf.mxu1 }
 0x34a   : > { %v6742_v3 = vcvt.s32.f32 %v4753_v16  ;;  %v6746_v35 = vcvt.s32.f32 %v4757_v26  ;;  %v6744_v13 = vcvt.s32.f32 %v4755_v19  ;;  %v6748_v43 = vcvt.s32.f32 %v4759_v56  ;;  %v8100_v19 = vld [vmem:[%s8773_s19 + $0x180] ss:$8 sps:$4 sm:$0xff]  }
 0x34b   : > { %v6741_v5 = vcvt.s32.f32 %v4752_v47  ;;  %v6745_v15 = vcvt.s32.f32 %v4756_v7  ;;  %v6743_v20 = vcvt.s32.f32 %v4754_v46  ;;  %v6747_v18 = vcvt.s32.f32 %v4758_v63 }
 0x34c   : > { %v6762_v21 = vpack.c.bf16 %v6746_v35, %v6742_v3  ;;  %v6764_v52 = vpack.c.bf16 %v6748_v43, %v6744_v13  ;;  %v4233_v42 = vshrl.u32 %v3292_v49, %v8871_v2  ;;  %v4237_v44 = vshrl.u32 %v3308_v17, %v8871_v2 }
 0x34d   : > { %v6761_v22 = vpack.c.bf16 %v6745_v15, %v6741_v5  ;;  %v6763_v38 = vpack.c.bf16 %v6747_v18, %v6743_v20  ;;  %v4235_v40 = vshrl.u32 %v3300_v37, %v8871_v2  ;;  %v4239_v27 = vshrl.u32 %v3316_v11, %v8871_v2 }
 0x34e   : > { %6778 = vmatprep.subr.bf16.mxu0 %v6762_v21  ;;  %6819 = vmatprep.subr.bf16.mxu1 %v6764_v52  ;;  %v4745_v24 = vand.u32 15, %v4233_v42  ;;  %v4749_v31 = vand.u32 15, %v4237_v44  ;;  %v3288_v49 = vrot.slane %v10348_v45, %v8853_v54  ;;  %v3304_v17 = vrot.slane %v10351_v61, %v8853_v54 }
 0x34f   : > { %6779 = vmatpush1.bf16.msra.mxu0 %v6761_v22  ;;  %6820 = vmatpush1.bf16.msra.mxu1 %v6763_v38  ;;  %v4747_v14 = vand.u32 15, %v4235_v40  ;;  %v4751_v37 = vand.u32 15, %v4239_v27  ;;  %v3296_v11 = vrot.slane %v10348_v45, %v8858_v57  ;;  %v3312_v29 = vrot.slane %v10351_v61, %v8858_v57 }
 0x350   : > { %v6734_v59 = vcvt.s32.f32 %v4745_v24  ;;  %v6738_v9 = vcvt.s32.f32 %v4749_v31  ;;  %v4232_v34 = vshrl.u32 %v3288_v49, %v8871_v2  ;;  %v4236_v1 = vshrl.u32 %v3304_v17, %v8871_v2 }
 0x351   : > { %v6736_v36 = vcvt.s32.f32 %v4747_v14  ;;  %v6740_v32 = vcvt.s32.f32 %v4751_v37  ;;  %v4234_v16 = vshrl.u32 %v3296_v11, %v8871_v2  ;;  %v4238_v26 = vshrl.u32 %v3312_v29, %v8871_v2 }
 0x352   : > { %v6758_v45 = vpack.c.bf16 %v6738_v9, %v6734_v59  ;;  %v4744_v56 = vand.u32 15, %v4232_v34  ;;  %v4748_v47 = vand.u32 15, %v4236_v1  ;;  %v1505_v61 = vcombine.low %v10345_v12, %v10354_v48 }
 0x353   : > { %v6760_v7 = vpack.c.bf16 %v6740_v32, %v6736_v36  ;;  %v4746_v46 = vand.u32 15, %v4234_v16  ;;  %v4750_v63 = vand.u32 15, %v4238_v26  ;;  %v1506_v3 = vcombine.high %v10345_v12, %v10354_v48 }
 0x354   : > { %6780 = vmatprep.subr.bf16.mxu0 %v6758_v45  ;;  %v6733_v35 = vcvt.s32.f32 %v4744_v56  ;;  %v6737_v13 = vcvt.s32.f32 %v4748_v47  ;;  %v10424_v43 = vrot.slane %v1505_v61, %v8851_v53  ;;  %v10427_v5 = vrot.slane %v8098_v33, %v8851_v53 }
 0x355   : > { %6821 = vmatprep.subr.bf16.mxu1 %v6760_v7  ;;  %v6735_v15 = vcvt.s32.f32 %v4746_v46  ;;  %v6739_v20 = vcvt.s32.f32 %v4750_v63  ;;  %v10430_v18 = vrot.slane %v1506_v3, %v8851_v53  ;;  %v10433_v21 = vrot.slane %v8100_v19, %v8851_v53 }
 0x356   : > { %v6757_v52 = vpack.c.bf16 %v6737_v13, %v6733_v35  ;;  %v1537_v12 = vcombine.high %v10424_v43, %v10424_v43  ;;  %v3228_v48 = vrot.slane %v10424_v43, %v8855_v55  ;;  %v3236_v42 = vrot.slane %v10424_v43, %v8860_v58 }
 0x357   : > { %v6759_v44 = vpack.c.bf16 %v6739_v20, %v6735_v15  ;;  %v1539_v22 = vcombine.high %v10430_v18, %v10430_v18  ;;  %v3244_v38 = vrot.slane %v10430_v18, %v8855_v55  ;;  %v3252_v40 = vrot.slane %v10430_v18, %v8860_v58 }
 0x358   : > { %6781 = vmatpush1.bf16.msra.mxu0 %v6757_v52  ;;  %v3260_v27 = vrot.slane %v1537_v12, %v8855_v55  ;;  %v3268_v24 = vrot.slane %v1537_v12, %v8860_v58  ;;  %v3256_v31 = vrot.slane %v1537_v12, %v8853_v54  ;;  %v3264_v49 = vrot.slane %v1537_v12, %v8858_v57 }
 0x359   : > { %6822 = vmatpush1.bf16.msra.mxu1 %v6759_v44  ;;  %v3276_v17 = vrot.slane %v1539_v22, %v8855_v55  ;;  %v3284_v6 = vrot.slane %v1539_v22, %v8860_v58  ;;  %v3272_v50 = vrot.slane %v1539_v22, %v8853_v54  ;;  %v3280_v14 = vrot.slane %v1539_v22, %v8858_v57 }
 0x35a   : > { %v4225_v37 = vshrl.u32 %v3260_v27, %v8871_v2  ;;  %v4227_v11 = vshrl.u32 %v3268_v24, %v8871_v2  ;;  %v4224_v29 = vshrl.u32 %v3256_v31, %v8871_v2  ;;  %v4226_v59 = vshrl.u32 %v3264_v49, %v8871_v2 }
 0x35b   : > { %v4229_v9 = vshrl.u32 %v3276_v17, %v8871_v2  ;;  %v4231_v34 = vshrl.u32 %v3284_v6, %v8871_v2  ;;  %v4228_v1 = vshrl.u32 %v3272_v50, %v8871_v2  ;;  %v4230_v33 = vshrl.u32 %v3280_v14, %v8871_v2 }
 0x35c   : > { %v4737_v0 = vand.u32 15, %v4225_v37  ;;  %v4739_v8 = vand.u32 15, %v4227_v11  ;;  %v4736_v36 = vand.u32 15, %v4224_v29  ;;  %v4738_v32 = vand.u32 15, %v4226_v59  ;;  %v8101_v37 = vld [vmem:[%s8773_s19 + $0x190] ss:$8 sps:$4 sm:$0xff]  }
 0x35d   : > { %v4741_v16 = vand.u32 15, %v4229_v9  ;;  %v4743_v26 = vand.u32 15, %v4231_v34  ;;  %v4740_v19 = vand.u32 15, %v4228_v1  ;;  %v4742_v45 = vand.u32 15, %v4230_v33 }
 0x35e   : > { %v6726_v56 = vcvt.s32.f32 %v4737_v0  ;;  %v6728_v47 = vcvt.s32.f32 %v4739_v8  ;;  %v6725_v61 = vcvt.s32.f32 %v4736_v36  ;;  %v6727_v7 = vcvt.s32.f32 %v4738_v32 }
 0x35f   : > { %v6730_v46 = vcvt.s32.f32 %v4741_v16  ;;  %v6732_v63 = vcvt.s32.f32 %v4743_v26  ;;  %v6729_v3 = vcvt.s32.f32 %v4740_v19  ;;  %v6731_v35 = vcvt.s32.f32 %v4742_v45 }
 0x360   : > { %v4217_v13 = vshrl.u32 %v3228_v48, %v8871_v2  ;;  %v4221_v15 = vshrl.u32 %v3244_v38, %v8871_v2  ;;  %v4219_v20 = vshrl.u32 %v3236_v42, %v8871_v2  ;;  %v4223_v52 = vshrl.u32 %v3252_v40, %v8871_v2 }
 0x361   : > { %v6754_v12 = vpack.c.bf16 %v6730_v46, %v6726_v56  ;;  %v6756_v44 = vpack.c.bf16 %v6732_v63, %v6728_v47  ;;  %v6753_v22 = vpack.c.bf16 %v6729_v3, %v6725_v61  ;;  %v6755_v27 = vpack.c.bf16 %v6731_v35, %v6727_v7 }
 0x362   : > { %v4729_v24 = vand.u32 15, %v4217_v13  ;;  %v4733_v31 = vand.u32 15, %v4221_v15  ;;  %v4731_v49 = vand.u32 15, %v4219_v20  ;;  %v4735_v17 = vand.u32 15, %v4223_v52 }
 0x363   : > { %6782 = vmatprep.subr.bf16.mxu0 %v6754_v12  ;;  %6823 = vmatprep.subr.bf16.mxu1 %v6756_v44  ;;  %v3224_v48 = vrot.slane %v10424_v43, %v8853_v54  ;;  %v3240_v38 = vrot.slane %v10430_v18, %v8853_v54  ;;  %v3232_v42 = vrot.slane %v10424_v43, %v8858_v57  ;;  %v6766_v44 = vpop.permute.xlu1 %6765 }
 0x364   : > { %6783 = vmatpush1.bf16.msra.mxu0 %v6753_v22  ;;  %6824 = vmatpush1.bf16.msra.mxu1 %v6755_v27  ;;  %v6718_v40 = vcvt.s32.f32 %v4729_v24  ;;  %v6722_v6 = vcvt.s32.f32 %v4733_v31  ;;  %v6720_v50 = vcvt.s32.f32 %v4731_v49  ;;  %v6724_v14 = vcvt.s32.f32 %v4735_v17 }
 0x365   : > { %v4216_v11 = vshrl.u32 %v3224_v48, %v8871_v2  ;;  %v4220_v29 = vshrl.u32 %v3240_v38, %v8871_v2  ;;  %v3248_v59 = vrot.slane %v10430_v18, %v8858_v57  ;;  %v4218_v9 = vshrl.u32 %v3232_v42, %v8871_v2 }
 0x366   : > { %v6750_v34 = vpack.c.bf16 %v6722_v6, %v6718_v40  ;;  %v6752_v1 = vpack.c.bf16 %v6724_v14, %v6720_v50  ;;  %v1575_v43 = vcombine.low %v10357_v4, %v10427_v5  ;;  %v1576_v33 = vcombine.high %v10357_v4, %v10427_v5 }
 0x367   : > { %v4728_v0 = vand.u32 15, %v4216_v11  ;;  %v4732_v8 = vand.u32 15, %v4220_v29  ;;  %v4222_v36 = vshrl.u32 %v3248_v59, %v8871_v2  ;;  %v4730_v32 = vand.u32 15, %v4218_v9 }
 0x368   : > { %6784 = vmatprep.subr.bf16.mxu0 %v6750_v34  ;;  %6825 = vmatprep.subr.bf16.mxu1 %v6752_v1  ;;  %v10485_v16 = vrot.slane %v1575_v43, %v8851_v53  ;;  %v10488_v18 = vrot.slane %v1576_v33, %v8851_v53  ;;  %v10491_v26 = vrot.slane %v8101_v37, %v8851_v53 }
 0x369   : > { %v6717_v19 = vcvt.s32.f32 %v4728_v0  ;;  %v6721_v45 = vcvt.s32.f32 %v4732_v8  ;;  %v4734_v56 = vand.u32 15, %v4222_v36  ;;  %v6719_v4 = vcvt.s32.f32 %v4730_v32 }
 0x36a   : > { %v1606_v5 = vcombine.high %v10485_v16, %v10485_v16  ;;  %v1608_v47 = vcombine.high %v10488_v18, %v10488_v18  ;;  %v3420_v61 = vrot.slane %v10485_v16, %v8855_v55  ;;  %v3436_v7 = vrot.slane %v10488_v18, %v8855_v55 }
 0x36b   : > { %v6749_v46 = vpack.c.bf16 %v6721_v45, %v6717_v19  ;;  %v6723_v63 = vcvt.s32.f32 %v4734_v56  ;;  %v3428_v3 = vrot.slane %v10485_v16, %v8860_v58  ;;  %v3444_v35 = vrot.slane %v10488_v18, %v8860_v58 }
 0x36c   : > { %v3452_v13 = vrot.slane %v1606_v5, %v8855_v55  ;;  %v3468_v15 = vrot.slane %v1608_v47, %v8855_v55  ;;  %v3460_v20 = vrot.slane %v1606_v5, %v8860_v58  ;;  %v3476_v52 = vrot.slane %v1608_v47, %v8860_v58 }
 0x36d   : > { %6785 = vmatpush1.bf16.msra.mxu0 %v6749_v46  ;;  %v6751_v12 = vpack.c.bf16 %v6723_v63, %v6719_v4  ;;  %v3448_v22 = vrot.slane %v1606_v5, %v8853_v54  ;;  %v3464_v27 = vrot.slane %v1608_v47, %v8853_v54  ;;  %v3456_v24 = vrot.slane %v1606_v5, %v8858_v57  ;;  %v10529_v46 = vpop.f32.mrf.mxu1 }
 0x36e   : > { %v4273_v31 = vshrl.u32 %v3452_v13, %v8871_v2  ;;  %v4277_v49 = vshrl.u32 %v3468_v15, %v8871_v2  ;;  %v4275_v17 = vshrl.u32 %v3460_v20, %v8871_v2  ;;  %v4279_v48 = vshrl.u32 %v3476_v52, %v8871_v2 }
 0x36f   : > { %6826 = vmatpush1.bf16.msra.mxu1 %v6751_v12  ;;  %v4272_v38 = vshrl.u32 %v3448_v22, %v8871_v2  ;;  %v4276_v42 = vshrl.u32 %v3464_v27, %v8871_v2  ;;  %v3472_v40 = vrot.slane %v1608_v47, %v8858_v57  ;;  %v4274_v6 = vshrl.u32 %v3456_v24, %v8871_v2  ;;  %v10527_v47 = vpop.f32.mrf.mxu0 }
 0x370   : > { %7827 = vmatmul.mubr.msk.bf16.vlgmr.msra.gmra.mxu0 %vm4940_vm1, %v6766_v44  ;;  %v4785_v50 = vand.u32 15, %v4273_v31  ;;  %v4789_v14 = vand.u32 15, %v4277_v49  ;;  %v4787_v37 = vand.u32 15, %v4275_v17  ;;  %v4791_v11 = vand.u32 15, %v4279_v48  ;;  %v10543_v48 = vpop.f32.mrf.mxu1 }
 0x371   : > { %v4784_v29 = vand.u32 15, %v4272_v38  ;;  %v4788_v59 = vand.u32 15, %v4276_v42  ;;  %v4278_v9 = vshrl.u32 %v3472_v40, %v8871_v2  ;;  %v4786_v34 = vand.u32 15, %v4274_v6  ;;  %6966 = vmatprep.mubr.bf16.mxu0 %v11307_v51  ;;  %v10541_v17 = vpop.f32.mrf.mxu0 }
 0x372   : > { %7828 = vmatmul.mubr.msk.bf16.vlgmr.msra.gmra.mxu1 %vm4940_vm1, %v6766_v44  ;;  %v6908_v1 = vcvt.s32.f32 %v4785_v50  ;;  %v6912_v43 = vcvt.s32.f32 %v4789_v14  ;;  %v6910_v33 = vcvt.s32.f32 %v4787_v37  ;;  %v6914_v0 = vcvt.s32.f32 %v4791_v11 }
 0x373   : > { %v6907_v8 = vcvt.s32.f32 %v4784_v29  ;;  %v6911_v36 = vcvt.s32.f32 %v4788_v59  ;;  %v4790_v32 = vand.u32 15, %v4278_v9  ;;  %v6909_v19 = vcvt.s32.f32 %v4786_v34  ;;  %7007 = vmatprep.mubr.bf16.mxu1 %v11307_v51  ;;  %v5312_v11 = vpop.f32.mrf.mxu0  ;;  %v5353_v29 = vpop.f32.mrf.mxu1 }
 0x374   : > { %v6928_v45 = vpack.c.bf16 %v6912_v43, %v6908_v1  ;;  %v6930_v56 = vpack.c.bf16 %v6914_v0, %v6910_v33  ;;  %v4265_v4 = vshrl.u32 %v3420_v61, %v8871_v2  ;;  %v4269_v5 = vshrl.u32 %v3436_v7, %v8871_v2 }
 0x375   : > { %v6927_v63 = vpack.c.bf16 %v6911_v36, %v6907_v8  ;;  %v6913_v13 = vcvt.s32.f32 %v4790_v32  ;;  %v4267_v15 = vshrl.u32 %v3428_v3, %v8871_v2  ;;  %v4271_v20 = vshrl.u32 %v3444_v35, %v8871_v2  ;;  %v5313_v0 = vpop.f32.mrf.mxu0  ;;  %v5354_v8 = vpop.f32.mrf.mxu1 }
 0x376   : > { %6942 = vmatprep.subr.bf16.mxu0 %v6928_v45  ;;  %6983 = vmatprep.subr.bf16.mxu1 %v6930_v56  ;;  %v4777_v52 = vand.u32 15, %v4265_v4  ;;  %v4781_v12 = vand.u32 15, %v4269_v5  ;;  %v3416_v44 = vrot.slane %v10485_v16, %v8853_v54  ;;  %v3432_v61 = vrot.slane %v10488_v18, %v8853_v54 }
 0x377   : > { %6943 = vmatpush1.bf16.msra.mxu0 %v6927_v63  ;;  %v6929_v7 = vpack.c.bf16 %v6913_v13, %v6909_v19  ;;  %v4779_v22 = vand.u32 15, %v4267_v15  ;;  %v4783_v27 = vand.u32 15, %v4271_v20  ;;  %v3424_v24 = vrot.slane %v10485_v16, %v8858_v57 }
 0x378   : > { %v6900_v3 = vcvt.s32.f32 %v4777_v52  ;;  %v6904_v31 = vcvt.s32.f32 %v4781_v12  ;;  %v4264_v35 = vshrl.u32 %v3416_v44, %v8871_v2  ;;  %v4268_v49 = vshrl.u32 %v3432_v61, %v8871_v2 }
 0x379   : > { %6984 = vmatpush1.bf16.msra.mxu1 %v6929_v7  ;;  %v6902_v38 = vcvt.s32.f32 %v4779_v22  ;;  %v6906_v42 = vcvt.s32.f32 %v4783_v27  ;;  %v3440_v40 = vrot.slane %v10488_v18, %v8858_v57  ;;  %v4266_v6 = vshrl.u32 %v3424_v24, %v8871_v2 }
 0x37a   : > { %v6924_v50 = vpack.c.bf16 %v6904_v31, %v6900_v3  ;;  %v4776_v16 = vand.u32 15, %v4264_v35  ;;  %v4780_v14 = vand.u32 15, %v4268_v49  ;;  %v1573_v37 = vcombine.low %v10433_v21, %v10491_v26 }
 0x37b   : > { %v6926_v59 = vpack.c.bf16 %v6906_v42, %v6902_v38  ;;  %v4270_v9 = vshrl.u32 %v3440_v40, %v8871_v2  ;;  %v4778_v34 = vand.u32 15, %v4266_v6  ;;  %v1574_v1 = vcombine.high %v10433_v21, %v10491_v26 }
 0x37c   : > { %6944 = vmatprep.subr.bf16.mxu0 %v6924_v50  ;;  %v6899_v43 = vcvt.s32.f32 %v4776_v16  ;;  %v6903_v18 = vcvt.s32.f32 %v4780_v14  ;;  %v10554_v33 = vrot.slane %v1573_v37, %v8851_v53 }
 0x37d   : > { %6985 = vmatprep.subr.bf16.mxu1 %v6926_v59  ;;  %v4782_v36 = vand.u32 15, %v4270_v9  ;;  %v6901_v32 = vcvt.s32.f32 %v4778_v34  ;;  %v10557_v19 = vrot.slane %v1574_v1, %v8851_v53 }
 0x37e   : > { %v6923_v45 = vpack.c.bf16 %v6903_v18, %v6899_v43  ;;  %v1605_v56 = vcombine.high %v10554_v33, %v10554_v33  ;;  %v3356_v26 = vrot.slane %v10554_v33, %v8855_v55 }
 0x37f   : > { %v6905_v4 = vcvt.s32.f32 %v4782_v36  ;;  %v1607_v21 = vcombine.high %v10557_v19, %v10557_v19  ;;  %v3372_v5 = vrot.slane %v10557_v19, %v8855_v55 }
 0x380   : > { %6945 = vmatpush1.bf16.msra.mxu0 %v6923_v45  ;;  %v3388_v63 = vrot.slane %v1605_v56, %v8855_v55  ;;  %v3396_v13 = vrot.slane %v1605_v56, %v8860_v58  ;;  %v3384_v15 = vrot.slane %v1605_v56, %v8853_v54  ;;  %v3392_v20 = vrot.slane %v1605_v56, %v8858_v57 }
 0x381   : > { %v6925_v52 = vpack.c.bf16 %v6905_v4, %v6901_v32  ;;  %v3404_v12 = vrot.slane %v1607_v21, %v8855_v55  ;;  %v3412_v44 = vrot.slane %v1607_v21, %v8860_v58  ;;  %v3400_v61 = vrot.slane %v1607_v21, %v8853_v54 }
 0x382   : > { %v4257_v7 = vshrl.u32 %v3388_v63, %v8871_v2  ;;  %v4259_v22 = vshrl.u32 %v3396_v13, %v8871_v2  ;;  %v4256_v27 = vshrl.u32 %v3384_v15, %v8871_v2  ;;  %v3408_v24 = vrot.slane %v1607_v21, %v8858_v57 }
 0x383   : > { %6986 = vmatpush1.bf16.msra.mxu1 %v6925_v52  ;;  %v4261_v3 = vshrl.u32 %v3404_v12, %v8871_v2  ;;  %v4263_v31 = vshrl.u32 %v3412_v44, %v8871_v2  ;;  %v4260_v35 = vshrl.u32 %v3400_v61, %v8871_v2  ;;  %v4258_v49 = vshrl.u32 %v3392_v20, %v8871_v2 }
 0x384   : > { %v4769_v38 = vand.u32 15, %v4257_v7  ;;  %v4771_v42 = vand.u32 15, %v4259_v22  ;;  %v4768_v40 = vand.u32 15, %v4256_v27  ;;  %v4262_v6 = vshrl.u32 %v3408_v24, %v8871_v2  ;;  %v8104_v7 = vld [vmem:[%s8773_s19 + $0x1b4] ss:$8 sps:$4 sm:$0xff]  }
 0x385   : > { %v4773_v50 = vand.u32 15, %v4261_v3  ;;  %v4775_v16 = vand.u32 15, %v4263_v31  ;;  %v4772_v14 = vand.u32 15, %v4260_v35  ;;  %v4770_v37 = vand.u32 15, %v4258_v49  ;;  %v8106_v22 = vld [vmem:[%s8773_s19 + $0x1a0] ss:$8 sps:$4 sm:$0xff]  }
 0x386   : > { %v6892_v11 = vcvt.s32.f32 %v4769_v38  ;;  %v6894_v29 = vcvt.s32.f32 %v4771_v42  ;;  %v6891_v59 = vcvt.s32.f32 %v4768_v40  ;;  %v4774_v9 = vand.u32 15, %v4262_v6  ;;  %v8107_v3 = vld [vmem:[%s8773_s19 + $0x1b0] ss:$8 sps:$4 sm:$0xff]  }
 0x387   : > { %v6896_v34 = vcvt.s32.f32 %v4773_v50  ;;  %v6898_v1 = vcvt.s32.f32 %v4775_v16  ;;  %v6895_v43 = vcvt.s32.f32 %v4772_v14  ;;  %v6893_v18 = vcvt.s32.f32 %v4770_v37 }
 0x388   : > { %v6897_v0 = vcvt.s32.f32 %v4774_v9  ;;  %v4249_v8 = vshrl.u32 %v3356_v26, %v8871_v2  ;;  %v4253_v36 = vshrl.u32 %v3372_v5, %v8871_v2  ;;  %v3364_v32 = vrot.slane %v10554_v33, %v8860_v58  ;;  %v8102_v5 = vld [vmem:[%s8773_s19 + $0x1a4] ss:$8 sps:$4 sm:$0xff]  }
 0x389   : > { %v6920_v45 = vpack.c.bf16 %v6896_v34, %v6892_v11  ;;  %v6922_v56 = vpack.c.bf16 %v6898_v1, %v6894_v29  ;;  %v6919_v4 = vpack.c.bf16 %v6895_v43, %v6891_v59  ;;  %v3380_v21 = vrot.slane %v10557_v19, %v8860_v58  ;;  %v8108_v29 = vld [vmem:[%s8773_s19 + $0x1c4] ss:$8 sps:$4 sm:$0xff]  }
 0x38a   : > { %v6921_v63 = vpack.c.bf16 %v6897_v0, %v6893_v18  ;;  %v4761_v13 = vand.u32 15, %v4249_v8  ;;  %v4765_v15 = vand.u32 15, %v4253_v36  ;;  %v4251_v20 = vshrl.u32 %v3364_v32, %v8871_v2 }
 0x38b   : > { %6946 = vmatprep.subr.bf16.mxu0 %v6920_v45  ;;  %6987 = vmatprep.subr.bf16.mxu1 %v6922_v56  ;;  %v4255_v26 = vshrl.u32 %v3380_v21, %v8871_v2  ;;  %v3352_v61 = vrot.slane %v10554_v33, %v8853_v54  ;;  %v3368_v24 = vrot.slane %v10557_v19, %v8853_v54 }
 0x38c   : > { %6947 = vmatpush1.bf16.msra.mxu0 %v6919_v4  ;;  %6988 = vmatpush1.bf16.msra.mxu1 %v6921_v63  ;;  %v6884_v52 = vcvt.s32.f32 %v4761_v13  ;;  %v6888_v12 = vcvt.s32.f32 %v4765_v15  ;;  %v4763_v44 = vand.u32 15, %v4251_v20  ;;  %v3360_v38 = vrot.slane %v10554_v33, %v8858_v57 }
 0x38d   : > { %v4767_v27 = vand.u32 15, %v4255_v26  ;;  %v4248_v49 = vshrl.u32 %v3352_v61, %v8871_v2  ;;  %v4252_v40 = vshrl.u32 %v3368_v24, %v8871_v2  ;;  %v3376_v6 = vrot.slane %v10557_v19, %v8858_v57 }
 0x38e   : > { %v6916_v31 = vpack.c.bf16 %v6888_v12, %v6884_v52  ;;  %v6886_v35 = vcvt.s32.f32 %v4763_v44  ;;  %v1626_v50 = vrot.slane %v8102_v5, %v8851_v53  ;;  %v4250_v14 = vshrl.u32 %v3360_v38, %v8871_v2 }
 0x38f   : > { %v6890_v42 = vcvt.s32.f32 %v4767_v27  ;;  %v4760_v16 = vand.u32 15, %v4248_v49  ;;  %v1640_v37 = vrot.slane %v8104_v7, %v8851_v53  ;;  %v1619_v11 = vrot.slane %v8106_v22, %v8851_v53 }
 0x390   : > { %6948 = vmatprep.subr.bf16.mxu0 %v6916_v31  ;;  %v4764_v9 = vand.u32 15, %v4252_v40  ;;  %v4254_v33 = vshrl.u32 %v3376_v6, %v8871_v2  ;;  %v1633_v34 = vrot.slane %v8107_v3, %v8851_v53  ;;  %v4762_v43 = vand.u32 15, %v4250_v14  ;;  %v10651_v6 = vpop.f32.mrf.mxu1 }
 0x391   : > { %v6918_v59 = vpack.c.bf16 %v6890_v42, %v6886_v35  ;;  %v6883_v1 = vcvt.s32.f32 %v4760_v16  ;;  %v1643_v19 = vcombine.low %v1626_v50, %v1640_v37  ;;  %v1644_v18 = vcombine.high %v1626_v50, %v1640_v37  ;;  %v10645_v35 = vpop.f32.mrf.mxu0  ;;  %v8122_v50 = vld [vmem:[%s8766_s13 + $0x18] sm:$0xff]  ;;  %s11399_s13 = sld [smem:[#allocation19_spill]] }
 0x392   : > { %v6887_v0 = vcvt.s32.f32 %v4764_v9  ;;  %v4766_v8 = vand.u32 15, %v4254_v33  ;;  %v1641_v36 = vcombine.low %v1619_v11, %v1633_v34  ;;  %v1642_v32 = vcombine.high %v1619_v11, %v1633_v34 }
 0x393   : > { %6989 = vmatprep.subr.bf16.mxu1 %v6918_v59  ;;  %v6885_v45 = vcvt.s32.f32 %v4762_v43  ;;  %v10613_v56 = vrot.slane %v1643_v19, %v8851_v53  ;;  %v10616_v4 = vrot.slane %v1644_v18, %v8851_v53  ;;  %v10619_v21 = vrot.slane %v8108_v29, %v8851_v53  ;;  %v10664_v34 = vpop.f32.mrf.mxu0 }
 0x394   : > { %v6915_v63 = vpack.c.bf16 %v6887_v0, %v6883_v1  ;;  %v6889_v13 = vcvt.s32.f32 %v4766_v8  ;;  %v10622_v15 = vrot.slane %v1641_v36, %v8851_v53  ;;  %v10625_v20 = vrot.slane %v1642_v32, %v8851_v53  ;;  %v10666_v1 = vpop.f32.mrf.mxu1 }
 0x395   : > { %v1674_v26 = vcombine.high %v10613_v56, %v10613_v56  ;;  %v1676_v5 = vcombine.high %v10616_v4, %v10616_v4  ;;  %v3548_v52 = vrot.slane %v10613_v56, %v8855_v55  ;;  %v3564_v12 = vrot.slane %v10616_v4, %v8855_v55 }
 0x396   : > { %6949 = vmatpush1.bf16.msra.mxu0 %v6915_v63  ;;  %v6917_v44 = vpack.c.bf16 %v6889_v13, %v6885_v45  ;;  %v3556_v61 = vrot.slane %v10613_v56, %v8860_v58  ;;  %v3572_v7 = vrot.slane %v10616_v4, %v8860_v58  ;;  %v3544_v22 = vrot.slane %v10613_v56, %v8853_v54  ;;  %v5478_v63 = vpop.f32.mrf.mxu0  ;;  %v5519_v13 = vpop.f32.mrf.mxu1 }
 0x397   : > { %v3580_v27 = vrot.slane %v1674_v26, %v8855_v55  ;;  %v3596_v24 = vrot.slane %v1676_v5, %v8855_v55  ;;  %v3588_v3 = vrot.slane %v1674_v26, %v8860_v58  ;;  %v3604_v31 = vrot.slane %v1676_v5, %v8860_v58 }
 0x398   : > { %6990 = vmatpush1.bf16.msra.mxu1 %v6917_v44  ;;  %v3576_v49 = vrot.slane %v1674_v26, %v8853_v54  ;;  %v3592_v38 = vrot.slane %v1676_v5, %v8853_v54  ;;  %v3584_v42 = vrot.slane %v1674_v26, %v8858_v57  ;;  %v3600_v40 = vrot.slane %v1676_v5, %v8858_v57 }
 0x399   : > { %7830 = vmatmul.mubr.msk.bf16.vlgmr.msra.gmra.mxu0 %vm4940_vm1, %v8122_v50  ;;  %v4305_v16 = vshrl.u32 %v3580_v27, %v8871_v2  ;;  %v4309_v14 = vshrl.u32 %v3596_v24, %v8871_v2  ;;  %v4307_v37 = vshrl.u32 %v3588_v3, %v8871_v2  ;;  %v4311_v11 = vshrl.u32 %v3604_v31, %v8871_v2 }
 0x39a   : > { %v4304_v29 = vshrl.u32 %v3576_v49, %v8871_v2  ;;  %v4308_v59 = vshrl.u32 %v3592_v38, %v8871_v2  ;;  %v4306_v9 = vshrl.u32 %v3584_v42, %v8871_v2  ;;  %v4310_v33 = vshrl.u32 %v3600_v40, %v8871_v2  ;;  %7135 = vmatprep.mubr.bf16.mxu0 %v11307_v51  ;;  %v5479_v38 = vpop.f32.mrf.mxu0  ;;  %v5520_v42 = vpop.f32.mrf.mxu1 }
 0x39b   : > { %7831 = vmatmul.mubr.msk.bf16.vlgmr.msra.gmra.mxu1 %vm4940_vm1, %v8122_v50  ;;  %v4817_v43 = vand.u32 15, %v4305_v16  ;;  %v4821_v19 = vand.u32 15, %v4309_v14  ;;  %v4819_v18 = vand.u32 15, %v4307_v37  ;;  %v4823_v0 = vand.u32 15, %v4311_v11 }
 0x39c   : > { %v4816_v8 = vand.u32 15, %v4304_v29  ;;  %v4820_v36 = vand.u32 15, %v4308_v59  ;;  %v4818_v32 = vand.u32 15, %v4306_v9  ;;  %v4822_v45 = vand.u32 15, %v4310_v33  ;;  %7176 = vmatprep.mubr.bf16.mxu1 %v11307_v51  ;;  %v10674_v9 = vpop.f32.mrf.mxu0  ;;  %v10676_v33 = vpop.f32.mrf.mxu1 }
 0x39d   : > { %v7072_v26 = vcvt.s32.f32 %v4817_v43  ;;  %v7076_v5 = vcvt.s32.f32 %v4821_v19  ;;  %v7074_v44 = vcvt.s32.f32 %v4819_v18  ;;  %v7078_v27 = vcvt.s32.f32 %v4823_v0 }
 0x39e   : > { %v7071_v24 = vcvt.s32.f32 %v4816_v8  ;;  %v7075_v3 = vcvt.s32.f32 %v4820_v36  ;;  %v7073_v31 = vcvt.s32.f32 %v4818_v32  ;;  %v7077_v49 = vcvt.s32.f32 %v4822_v45  ;;  %v10685_v8 = vpop.f32.mrf.mxu0  ;;  %v10687_v36 = vpop.f32.mrf.mxu1 }
 0x39f   : > { %v7092_v40 = vpack.c.bf16 %v7076_v5, %v7072_v26  ;;  %v7094_v50 = vpack.c.bf16 %v7078_v27, %v7074_v44  ;;  %v4297_v16 = vshrl.u32 %v3548_v52, %v8871_v2  ;;  %v4301_v14 = vshrl.u32 %v3564_v12, %v8871_v2  ;;  %11355 = vst [vmem:[#allocation27_spill] sm:$0xff] %v10685_v8 }
 0x3a0   : > { %v7091_v37 = vpack.c.bf16 %v7075_v3, %v7071_v24  ;;  %v7093_v11 = vpack.c.bf16 %v7077_v49, %v7073_v31  ;;  %v4299_v29 = vshrl.u32 %v3556_v61, %v8871_v2  ;;  %v4303_v59 = vshrl.u32 %v3572_v7, %v8871_v2  ;;  %v5642_v27 = vpop.f32.mrf.mxu0 }
 0x3a1   : > { %7111 = vmatprep.subr.bf16.mxu0 %v7092_v40  ;;  %7152 = vmatprep.subr.bf16.mxu1 %v7094_v50  ;;  %v4809_v43 = vand.u32 15, %v4297_v16  ;;  %v4813_v19 = vand.u32 15, %v4301_v14  ;;  %v3560_v18 = vrot.slane %v10616_v4, %v8853_v54  ;;  %v4296_v52 = vshrl.u32 %v3544_v22, %v8871_v2 }
 0x3a2   : > { %7112 = vmatpush1.bf16.msra.mxu0 %v7091_v37  ;;  %7153 = vmatpush1.bf16.msra.mxu1 %v7093_v11  ;;  %v4811_v12 = vand.u32 15, %v4299_v29  ;;  %v4815_v0 = vand.u32 15, %v4303_v59  ;;  %v3552_v61 = vrot.slane %v10613_v56, %v8858_v57  ;;  %v3568_v7 = vrot.slane %v10616_v4, %v8858_v57  ;;  %v5683_v56 = vpop.f32.mrf.mxu1  ;;  %v5643_v50 = vpop.f32.mrf.mxu0 }
 0x3a3   : > { %v7064_v32 = vcvt.s32.f32 %v4809_v43  ;;  %v7068_v45 = vcvt.s32.f32 %v4813_v19  ;;  %v4300_v63 = vshrl.u32 %v3560_v18, %v8871_v2  ;;  %v4808_v13 = vand.u32 15, %v4296_v52 }
 0x3a4   : > { %v7066_v22 = vcvt.s32.f32 %v4811_v12  ;;  %v7070_v26 = vcvt.s32.f32 %v4815_v0  ;;  %v4298_v5 = vshrl.u32 %v3552_v61, %v8871_v2  ;;  %v4302_v44 = vshrl.u32 %v3568_v7, %v8871_v2  ;;  %v5684_v16 = vpop.f32.mrf.mxu1  ;;  %v10701_v52 = vpop.f32.mrf.mxu0 }
 0x3a5   : > { %v7088_v24 = vpack.c.bf16 %v7068_v45, %v7064_v32  ;;  %v4812_v3 = vand.u32 15, %v4300_v63  ;;  %v7063_v4 = vcvt.s32.f32 %v4808_v13  ;;  %v1673_v31 = vcombine.high %v10622_v15, %v10622_v15  ;;  %11356 = vst [vmem:[#allocation28_spill] sm:$0xff] %v10701_v52 }
 0x3a6   : > { %v7090_v49 = vpack.c.bf16 %v7070_v26, %v7066_v22  ;;  %v4810_v38 = vand.u32 15, %v4298_v5  ;;  %v4814_v42 = vand.u32 15, %v4302_v44  ;;  %v1675_v40 = vcombine.high %v10625_v20, %v10625_v20  ;;  %v10703_v12 = vpop.f32.mrf.mxu1  ;;  %v10711_v26 = vpop.f32.mrf.mxu0 }
 0x3a7   : > { %7113 = vmatprep.subr.bf16.mxu0 %v7088_v24  ;;  %v7067_v14 = vcvt.s32.f32 %v4812_v3  ;;  %v3516_v37 = vrot.slane %v1673_v31, %v8855_v55  ;;  %v3524_v11 = vrot.slane %v1673_v31, %v8860_v58  ;;  %v3512_v29 = vrot.slane %v1673_v31, %v8853_v54  ;;  %11357 = vst [vmem:[#allocation29_spill] sm:$0xff] %v10703_v12 }
 0x3a8   : > { %7154 = vmatprep.subr.bf16.mxu1 %v7090_v49  ;;  %v7065_v59 = vcvt.s32.f32 %v4810_v38  ;;  %v7069_v43 = vcvt.s32.f32 %v4814_v42  ;;  %v3532_v19 = vrot.slane %v1675_v40, %v8855_v55  ;;  %v3540_v18 = vrot.slane %v1675_v40, %v8860_v58  ;;  %11358 = vst [vmem:[#allocation30_spill] sm:$0xff] %v10711_v26  ;;  %v10713_v5 = vpop.f32.mrf.mxu1  ;;  %v5811_v42 = vpop.f32.mrf.mxu0 }
 0x3a9   : > { %v7087_v0 = vpack.c.bf16 %v7067_v14, %v7063_v4  ;;  %v4289_v61 = vshrl.u32 %v3516_v37, %v8871_v2  ;;  %v4291_v7 = vshrl.u32 %v3524_v11, %v8871_v2  ;;  %v3528_v32 = vrot.slane %v1675_v40, %v8853_v54  ;;  %11359 = vst [vmem:[#allocation31_spill] sm:$0xff] %v10713_v5 }
 0x3aa   : > { %v7089_v45 = vpack.c.bf16 %v7069_v43, %v7065_v59  ;;  %v4293_v63 = vshrl.u32 %v3532_v19, %v8871_v2  ;;  %v4295_v13 = vshrl.u32 %v3540_v18, %v8871_v2  ;;  %v4288_v22 = vshrl.u32 %v3512_v29, %v8871_v2  ;;  %v5852_v50 = vpop.f32.mrf.mxu1  ;;  %v5812_v18 = vpop.f32.mrf.mxu0 }
 0x3ab   : > { %7114 = vmatpush1.bf16.msra.mxu0 %v7087_v0  ;;  %v4801_v44 = vand.u32 15, %v4289_v61  ;;  %v4803_v27 = vand.u32 15, %v4291_v7  ;;  %v4292_v56 = vshrl.u32 %v3528_v32, %v8871_v2  ;;  %v3520_v24 = vrot.slane %v1673_v31, %v8858_v57 }
 0x3ac   : > { %7155 = vmatpush1.bf16.msra.mxu1 %v7089_v45  ;;  %v4805_v3 = vand.u32 15, %v4293_v63  ;;  %v4807_v4 = vand.u32 15, %v4295_v13  ;;  %v4800_v49 = vand.u32 15, %v4288_v22  ;;  %v3536_v38 = vrot.slane %v1675_v40, %v8858_v57  ;;  %v5853_v31 = vpop.f32.mrf.mxu1  ;;  %v10726_v22 = vpop.f32.mrf.mxu0 }
 0x3ad   : > { %v7056_v16 = vcvt.s32.f32 %v4801_v44  ;;  %v7058_v14 = vcvt.s32.f32 %v4803_v27  ;;  %v4804_v37 = vand.u32 15, %v4292_v56  ;;  %v4290_v11 = vshrl.u32 %v3520_v24, %v8871_v2  ;;  %11360 = vst [vmem:[#allocation32_spill] sm:$0xff] %v10726_v22 }
 0x3ae   : > { %v7060_v29 = vcvt.s32.f32 %v4805_v3  ;;  %v7062_v59 = vcvt.s32.f32 %v4807_v4  ;;  %v7055_v43 = vcvt.s32.f32 %v4800_v49  ;;  %v4294_v19 = vshrl.u32 %v3536_v38, %v8871_v2  ;;  %v10728_v44 = vpop.f32.mrf.mxu1  ;;  %v10737_v50 = vpop.f32.mrf.mxu0 }
 0x3af   : > { %v7059_v0 = vcvt.s32.f32 %v4804_v37  ;;  %v4802_v61 = vand.u32 15, %v4290_v11  ;;  %v3484_v7 = vrot.slane %v10622_v15, %v8855_v55  ;;  %v3500_v40 = vrot.slane %v10625_v20, %v8855_v55  ;;  %11361 = vst [vmem:[#allocation33_spill] sm:$0xff] %v10728_v44  ;;  %11362 = vst [vmem:[#allocation34_spill] sm:$0xff] %v10737_v50 }
 0x3b0   : > { %v7084_v32 = vpack.c.bf16 %v7060_v29, %v7056_v16  ;;  %v7086_v45 = vpack.c.bf16 %v7062_v59, %v7058_v14  ;;  %v4806_v63 = vand.u32 15, %v4294_v19  ;;  %v3492_v13 = vrot.slane %v10622_v15, %v8860_v58  ;;  %v10739_v16 = vpop.f32.mrf.mxu1  ;;  %v8110_v59 = vld [vmem:[%s8773_s19 + $0x1d4] ss:$8 sps:$4 sm:$0xff]  }
 0x3b1   : > { %v7083_v27 = vpack.c.bf16 %v7059_v0, %v7055_v43  ;;  %v7057_v56 = vcvt.s32.f32 %v4802_v61  ;;  %v4281_v24 = vshrl.u32 %v3484_v7, %v8871_v2  ;;  %v4285_v3 = vshrl.u32 %v3500_v40, %v8871_v2  ;;  %11363 = vst [vmem:[#allocation35_spill] sm:$0xff] %v10739_v16  ;;  %v5977_v0 = vpop.f32.mrf.mxu0 }
 0x3b2   : > { %7115 = vmatprep.subr.bf16.mxu0 %v7084_v32  ;;  %7156 = vmatprep.subr.bf16.mxu1 %v7086_v45  ;;  %v7061_v4 = vcvt.s32.f32 %v4806_v63  ;;  %v3508_v49 = vrot.slane %v10625_v20, %v8860_v58  ;;  %v4283_v38 = vshrl.u32 %v3492_v13, %v8871_v2  ;;  %v3480_v42 = vrot.slane %v10622_v15, %v8853_v54  ;;  %v6018_v61 = vpop.f32.mrf.mxu1 }
 0x3b3   : > { %7116 = vmatpush1.bf16.msra.mxu0 %v7083_v27  ;;  %v4793_v14 = vand.u32 15, %v4281_v24  ;;  %v4797_v37 = vand.u32 15, %v4285_v3  ;;  %v3496_v11 = vrot.slane %v10625_v20, %v8853_v54  ;;  %v3488_v29 = vrot.slane %v10622_v15, %v8858_v57 }
 0x3b4   : > { %v7085_v43 = vpack.c.bf16 %v7061_v4, %v7057_v56  ;;  %v4287_v19 = vshrl.u32 %v3508_v49, %v8871_v2  ;;  %v4795_v18 = vand.u32 15, %v4283_v38  ;;  %v4280_v31 = vshrl.u32 %v3480_v42, %v8871_v2  ;;  %v5978_v56 = vpop.f32.mrf.mxu0  ;;  %v6019_v24 = vpop.f32.mrf.mxu1 }
 0x3b5   : > { %v7048_v7 = vcvt.s32.f32 %v4793_v14  ;;  %v7052_v40 = vcvt.s32.f32 %v4797_v37  ;;  %v4284_v32 = vshrl.u32 %v3496_v11, %v8871_v2  ;;  %v3504_v45 = vrot.slane %v10625_v20, %v8858_v57 }
 0x3b6   : > { %7157 = vmatpush1.bf16.msra.mxu1 %v7085_v43  ;;  %v4799_v63 = vand.u32 15, %v4287_v19  ;;  %v7050_v13 = vcvt.s32.f32 %v4795_v18  ;;  %v4792_v15 = vand.u32 15, %v4280_v31  ;;  %v4282_v27 = vshrl.u32 %v3488_v29, %v8871_v2  ;;  %v10754_v11 = vpop.f32.mrf.mxu0  ;;  %v10756_v20 = vpop.f32.mrf.mxu1 }
 0x3b7   : > { %v7080_v3 = vpack.c.bf16 %v7052_v40, %v7048_v7  ;;  %v4796_v4 = vand.u32 15, %v4284_v32  ;;  %v4286_v49 = vshrl.u32 %v3504_v45, %v8871_v2  ;;  %v1708_v38 = vrot.slane %v8110_v59, %v8851_v53  ;;  %11364 = vst [vmem:[#allocation36_spill] sm:$0xff] %v10754_v11  ;;  %11365 = vst [vmem:[#allocation37_spill] sm:$0xff] %v10756_v20 }
 0x3b8   : > { %v7054_v42 = vcvt.s32.f32 %v4799_v63  ;;  %v7047_v14 = vcvt.s32.f32 %v4792_v15  ;;  %v4794_v37 = vand.u32 15, %v4282_v27  ;;  %v10760_v61 = vpop.f32.mrf.mxu0  ;;  %v10762_v7 = vpop.f32.mrf.mxu1 }
 0x3b9   : > { %7117 = vmatprep.subr.bf16.mxu0 %v7080_v3  ;;  %v7051_v43 = vcvt.s32.f32 %v4796_v4  ;;  %v4798_v19 = vand.u32 15, %v4286_v49  ;;  %v1711_v29 = vcombine.low %v10619_v21, %v1708_v38  ;;  %v1712_v18 = vcombine.high %v10619_v21, %v1708_v38  ;;  %11366 = vst [vmem:[#allocation38_spill] sm:$0xff] %v10760_v61  ;;  %11367 = vst [vmem:[#allocation39_spill] sm:$0xff] %v10762_v7  ;;  %v7099_v21 = vpop.permute.xlu0 %7098 }
 0x3ba   : > { %v7082_v31 = vpack.c.bf16 %v7054_v42, %v7050_v13  ;;  %v7049_v0 = vcvt.s32.f32 %v4794_v37  ;;  %v6143_v63 = vpop.f32.mrf.mxu0  ;;  %v6184_v15 = vpop.f32.mrf.mxu1 }
 0x3bb   : > { %v7079_v59 = vpack.c.bf16 %v7051_v43, %v7047_v14  ;;  %v7053_v40 = vcvt.s32.f32 %v4798_v19  ;;  %v10765_v32 = vrot.slane %v1711_v29, %v8851_v53  ;;  %v10768_v45 = vrot.slane %v1712_v18, %v8851_v53 }
 0x3bc   : > { %7158 = vmatprep.subr.bf16.mxu1 %v7082_v31  ;;  %v6144_v4 = vpop.f32.mrf.mxu0  ;;  %v6185_v49 = vpop.f32.mrf.mxu1 }
 0x3bd   : > { %7118 = vmatpush1.bf16.msra.mxu0 %v7079_v59  ;;  %v7081_v27 = vpack.c.bf16 %v7053_v40, %v7049_v0  ;;  %v1742_v13 = vcombine.high %v10765_v32, %v10765_v32  ;;  %v1744_v56 = vcombine.high %v10768_v45, %v10768_v45  ;;  %v3676_v24 = vrot.slane %v10765_v32, %v8855_v55 }
 0x3be   : > { %v3692_v3 = vrot.slane %v10768_v45, %v8855_v55  ;;  %v10787_v31 = vpop.f32.mrf.mxu0  ;;  %v10789_v0 = vpop.f32.mrf.mxu1 }
 0x3bf   : > { %7159 = vmatpush1.bf16.msra.mxu1 %v7081_v27  ;;  %v3708_v38 = vrot.slane %v1742_v13, %v8855_v55  ;;  %v3724_v42 = vrot.slane %v1744_v56, %v8855_v55  ;;  %v3716_v14 = vrot.slane %v1742_v13, %v8860_v58  ;;  %v3732_v37 = vrot.slane %v1744_v56, %v8860_v58 }
 0x3c0   : > { %7834 = vmatmul.mubr.msk.bf16.vlgmr.msra.gmra.mxu0 %vm4940_vm1, %v7099_v21  ;;  %v3704_v43 = vrot.slane %v1742_v13, %v8853_v54  ;;  %v3720_v19 = vrot.slane %v1744_v56, %v8853_v54  ;;  %v3712_v29 = vrot.slane %v1742_v13, %v8858_v57  ;;  %v3728_v18 = vrot.slane %v1744_v56, %v8858_v57  ;;  %v10801_v49 = vpop.f32.mrf.mxu0 }
 0x3c1   : > { %11368 = vst [vmem:[#allocation40_spill] sm:$0xff] %v10787_v31  ;;  %11369 = vst [vmem:[#allocation41_spill] sm:$0xff] %v10789_v0  ;;  %v4337_v59 = vshrl.u32 %v3708_v38, %v8871_v2  ;;  %v4341_v40 = vshrl.u32 %v3724_v42, %v8871_v2  ;;  %v4339_v63 = vshrl.u32 %v3716_v14, %v8871_v2  ;;  %7301 = vmatprep.mubr.bf16.mxu0 %v11307_v51  ;;  %v10803_v38 = vpop.f32.mrf.mxu1  ;;  %v10807_v31 = vld [vmem:[%s8779_s8] sm:$0xf] }
 0x3c2   : > { %v4343_v15 = vshrl.u32 %v3732_v37, %v8871_v2  ;;  %7835 = vmatmul.mubr.msk.bf16.vlgmr.msra.gmra.mxu1 %vm4940_vm1, %v7099_v21  ;;  %v4336_v27 = vshrl.u32 %v3704_v43, %v8871_v2  ;;  %v4340_v13 = vshrl.u32 %v3720_v19, %v8871_v2  ;;  %v4338_v56 = vshrl.u32 %v3712_v29, %v8871_v2  ;;  %v6307_v20 = vpop.f32.mrf.mxu0 }
 0x3c3   : > { %v4342_v4 = vshrl.u32 %v3728_v18, %v8871_v2  ;;  %11370 = vst [vmem:[#allocation42_spill] sm:$0xff] %v10801_v49  ;;  %11371 = vst [vmem:[#allocation43_spill] sm:$0xff] %v10803_v38  ;;  %v4849_v42 = vand.u32 15, %v4337_v59  ;;  %v4853_v14 = vand.u32 15, %v4341_v40  ;;  %v4851_v0 = vand.u32 15, %v4339_v63  ;;  %7342 = vmatprep.mubr.bf16.mxu1 %v11307_v51  ;;  %v6348_v29 = vpop.f32.mrf.mxu1 }
 0x3c4   : > { %v4855_v37 = vand.u32 15, %v4343_v15  ;;  %v4848_v21 = vand.u32 15, %v4336_v27  ;;  %v4852_v43 = vand.u32 15, %v4340_v13  ;;  %v4850_v61 = vand.u32 15, %v4338_v56  ;;  %v6308_v63 = vpop.f32.mrf.mxu0  ;;  %v8113_v29 = vld [vmem:[%s8773_s19 + $0x1d0] ss:$8 sps:$4 sm:$0xff]  }
 0x3c5   : > { %v4854_v19 = vand.u32 15, %v4342_v4  ;;  %v7241_v11 = vcvt.s32.f32 %v4849_v42  ;;  %v7245_v18 = vcvt.s32.f32 %v4853_v14  ;;  %v7243_v50 = vcvt.s32.f32 %v4851_v0  ;;  %v6349_v15 = vpop.f32.mrf.mxu1  ;;  %v8114_v63 = vld [vmem:[%s8773_s19 + $0x1e4] ss:$8 sps:$4 sm:$0xff]  }
 0x3c6   : > { %v7247_v49 = vcvt.s32.f32 %v4855_v37  ;;  %v7240_v44 = vcvt.s32.f32 %v4848_v21  ;;  %v7244_v38 = vcvt.s32.f32 %v4852_v43  ;;  %v7242_v59 = vcvt.s32.f32 %v4850_v61 }
 0x3c7   : > { %v7246_v40 = vcvt.s32.f32 %v4854_v19  ;;  %v5031_v51 = vrot.slane %v10807_v31, %v8853_v54  ;;  %v7261_v22 = vpack.c.bf16 %v7245_v18, %v7241_v11  ;;  %v4329_v20 = vshrl.u32 %v3676_v24, %v8871_v2  ;;  %v8112_v24 = vld [vmem:[%s8773_s19 + $0x1c0] ss:$8 sps:$4 sm:$0xff]  }
 0x3c8   : > { %v7263_v27 = vpack.c.bf16 %v7247_v49, %v7243_v50  ;;  %v7260_v13 = vpack.c.bf16 %v7244_v38, %v7240_v44  ;;  %v4333_v4 = vshrl.u32 %v3692_v3, %v8871_v2  ;;  %v3684_v61 = vrot.slane %v10765_v32, %v8860_v58 }
 0x3c9   : > { %v7262_v56 = vpack.c.bf16 %v7246_v40, %v7242_v59  ;;  %7277 = vmatprep.subr.bf16.mxu0 %v7261_v22  ;;  %v3700_v0 = vrot.slane %v10768_v45, %v8860_v58  ;;  %v3672_v42 = vrot.slane %v10765_v32, %v8853_v54  ;;  %v4841_v44 = vand.u32 15, %v4329_v20 }
 0x3ca   : > { %7318 = vmatprep.subr.bf16.mxu1 %v7263_v27  ;;  %7278 = vmatpush1.bf16.msra.mxu0 %v7260_v13  ;;  %v4845_v50 = vand.u32 15, %v4333_v4  ;;  %v3688_v11 = vrot.slane %v10768_v45, %v8853_v54  ;;  %v3680_v22 = vrot.slane %v10765_v32, %v8858_v57  ;;  %v4331_v3 = vshrl.u32 %v3684_v61, %v8871_v2 }
 0x3cb   : > { %7319 = vmatpush1.bf16.msra.mxu1 %v7262_v56  ;;  %v4335_v49 = vshrl.u32 %v3700_v0, %v8871_v2  ;;  %v4328_v38 = vshrl.u32 %v3672_v42, %v8871_v2  ;;  %v3696_v14 = vrot.slane %v10768_v45, %v8858_v57  ;;  %v7233_v37 = vcvt.s32.f32 %v4841_v44  ;;  %v8116_v0 = vld [vmem:[%s8773_s19 + $0x1f4] ss:$8 sps:$4 sm:$0xff]  }
 0x3cc   : > { %v7237_v21 = vcvt.s32.f32 %v4845_v50  ;;  %v4332_v43 = vshrl.u32 %v3688_v11, %v8871_v2  ;;  %v4330_v19 = vshrl.u32 %v3680_v22, %v8871_v2  ;;  %v4843_v18 = vand.u32 15, %v4331_v3 }
 0x3cd   : > { %v4847_v32 = vand.u32 15, %v4335_v49  ;;  %v4840_v59 = vand.u32 15, %v4328_v38  ;;  %v4334_v40 = vshrl.u32 %v3696_v14, %v8871_v2  ;;  %v1687_v56 = vrot.slane %v8112_v24, %v8851_v53 }
 0x3ce   : > { %v7257_v15 = vpack.c.bf16 %v7237_v21, %v7233_v37  ;;  %v4844_v27 = vand.u32 15, %v4332_v43  ;;  %v4842_v13 = vand.u32 15, %v4330_v19  ;;  %v7235_v45 = vcvt.s32.f32 %v4843_v18 }
 0x3cf   : > { %v7239_v20 = vcvt.s32.f32 %v4847_v32  ;;  %v7232_v4 = vcvt.s32.f32 %v4840_v59  ;;  %v4846_v61 = vand.u32 15, %v4334_v40  ;;  %v5039_v42 = vrot.slane %v10807_v31, %v8858_v57 }
 0x3d0   : > { %7279 = vmatprep.subr.bf16.mxu0 %v7257_v15  ;;  %v7236_v44 = vcvt.s32.f32 %v4844_v27  ;;  %v7234_v50 = vcvt.s32.f32 %v4842_v13  ;;  %v1701_v11 = vrot.slane %v8113_v29, %v8851_v53  ;;  %v10840_v49 = vrot.slane %v8114_v63, %v8851_v53 }
 0x3d1   : > { %v7259_v22 = vpack.c.bf16 %v7239_v20, %v7235_v45  ;;  %v7238_v3 = vcvt.s32.f32 %v4846_v61  ;;  %v10843_v21 = vrot.slane %v8116_v0, %v8851_v53  ;;  %v10846_v43 = vmul.f32 %v5031_v51, %v10195_v23 }
 0x3d2   : > { %v7256_v38 = vpack.c.bf16 %v7236_v44, %v7232_v4  ;;  %v1709_v24 = vcombine.low %v1687_v56, %v1701_v11  ;;  %v1710_v14 = vcombine.high %v1687_v56, %v1701_v11  ;;  %v10849_v19 = vmul.f32 %v5039_v42, %v10197_v25 }
 0x3d3   : > { %7320 = vmatprep.subr.bf16.mxu1 %v7259_v22  ;;  %v7258_v37 = vpack.c.bf16 %v7238_v3, %v7234_v50 }
 0x3d4   : > { %7280 = vmatpush1.bf16.msra.mxu0 %v7256_v38  ;;  %v10852_v29 = vrot.slane %v1709_v24, %v8851_v53  ;;  %v10855_v18 = vrot.slane %v1710_v14, %v8851_v53 }
 0x3d5   : > { %7321 = vmatpush1.bf16.msra.mxu1 %v7258_v37 }
 0x3d6   : > { %v1741_v25 = vcombine.high %v10852_v29, %v10852_v29  ;;  %v1743_v40 = vcombine.high %v10855_v18, %v10855_v18  ;;  %v3612_v63 = vrot.slane %v10852_v29, %v8855_v55  ;;  %v3628_v15 = vrot.slane %v10855_v18, %v8855_v55 }
 0x3d7   : > { %v3620_v27 = vrot.slane %v10852_v29, %v8860_v58  ;;  %v3636_v13 = vrot.slane %v10855_v18, %v8860_v58  ;;  %v3608_v56 = vrot.slane %v10852_v29, %v8853_v54  ;;  %v3624_v45 = vrot.slane %v10855_v18, %v8853_v54 }
 0x3d8   : > { %v3644_v20 = vrot.slane %v1741_v25, %v8855_v55  ;;  %v3660_v4 = vrot.slane %v1743_v40, %v8855_v55  ;;  %v3652_v61 = vrot.slane %v1741_v25, %v8860_v58  ;;  %v3668_v0 = vrot.slane %v1743_v40, %v8860_v58 }
 0x3d9   : > { %v3640_v42 = vrot.slane %v1741_v25, %v8853_v54  ;;  %v3656_v44 = vrot.slane %v1743_v40, %v8853_v54  ;;  %v3648_v50 = vrot.slane %v1741_v25, %v8858_v57  ;;  %v3664_v11 = vrot.slane %v1743_v40, %v8858_v57 }
 0x3da   : > { %v4321_v22 = vshrl.u32 %v3644_v20, %v8871_v2  ;;  %v4325_v3 = vshrl.u32 %v3660_v4, %v8871_v2  ;;  %v4323_v38 = vshrl.u32 %v3652_v61, %v8871_v2  ;;  %v4327_v24 = vshrl.u32 %v3668_v0, %v8871_v2 }
 0x3db   : > { %v4320_v14 = vshrl.u32 %v3640_v42, %v8871_v2  ;;  %v4324_v37 = vshrl.u32 %v3656_v44, %v8871_v2  ;;  %v4322_v59 = vshrl.u32 %v3648_v50, %v8871_v2  ;;  %v4326_v32 = vshrl.u32 %v3664_v11, %v8871_v2 }
 0x3dc   : > { %v4833_v23 = vand.u32 15, %v4321_v22  ;;  %v4837_v25 = vand.u32 15, %v4325_v3  ;;  %v4835_v51 = vand.u32 15, %v4323_v38  ;;  %v4839_v40 = vand.u32 15, %v4327_v24 }
 0x3dd   : > { %v4832_v7 = vand.u32 15, %v4320_v14  ;;  %v4836_v20 = vand.u32 15, %v4324_v37  ;;  %v4834_v26 = vand.u32 15, %v4322_v59  ;;  %v4838_v4 = vand.u32 15, %v4326_v32 }
 0x3de   : > { %v7225_v12 = vcvt.s32.f32 %v4833_v23  ;;  %v7229_v61 = vcvt.s32.f32 %v4837_v25  ;;  %v7227_v16 = vcvt.s32.f32 %v4835_v51  ;;  %v7231_v0 = vcvt.s32.f32 %v4839_v40 }
 0x3df   : > { %v10897_v52 = vpop.f32.mrf.mxu0  ;;  %v7224_v42 = vcvt.s32.f32 %v4832_v7  ;;  %v7228_v44 = vcvt.s32.f32 %v4836_v20  ;;  %v7226_v8 = vcvt.s32.f32 %v4834_v26  ;;  %v7230_v50 = vcvt.s32.f32 %v4838_v4 }
 0x3e0   : > { %v7253_v5 = vpack.c.bf16 %v7229_v61, %v7225_v12  ;;  %v7255_v11 = vpack.c.bf16 %v7231_v0, %v7227_v16  ;;  %v4313_v22 = vshrl.u32 %v3612_v63, %v8871_v2  ;;  %v4317_v3 = vshrl.u32 %v3628_v15, %v8871_v2 }
 0x3e1   : > { %v10901_v38 = vpop.f32.mrf.mxu1  ;;  %v10903_v59 = vpop.f32.mrf.mxu0  ;;  %v7252_v32 = vpack.c.bf16 %v7228_v44, %v7224_v42  ;;  %v7254_v23 = vpack.c.bf16 %v7230_v50, %v7226_v8  ;;  %v4315_v51 = vshrl.u32 %v3620_v27, %v8871_v2  ;;  %v4319_v24 = vshrl.u32 %v3636_v13, %v8871_v2 }
 0x3e2   : > { %7281 = vmatprep.subr.bf16.mxu0 %v7253_v5  ;;  %7322 = vmatprep.subr.bf16.mxu1 %v7255_v11  ;;  %v4825_v26 = vand.u32 15, %v4313_v22  ;;  %v4829_v7 = vand.u32 15, %v4317_v3  ;;  %v4312_v12 = vshrl.u32 %v3608_v56, %v8871_v2  ;;  %v4316_v16 = vshrl.u32 %v3624_v45, %v8871_v2  ;;  %v10916_v45 = vld [vmem:[%s8779_s8 + $0x4] sm:$0xf] }
 0x3e3   : > { %v10909_v63 = vpop.f32.mrf.mxu1  ;;  %v6476_v15 = vpop.f32.mrf.mxu0  ;;  %7282 = vmatpush1.bf16.msra.mxu0 %v7252_v32  ;;  %7323 = vmatpush1.bf16.msra.mxu1 %v7254_v23  ;;  %v4827_v14 = vand.u32 15, %v4315_v51  ;;  %v4831_v8 = vand.u32 15, %v4319_v24  ;;  %v3616_v27 = vrot.slane %v10852_v29, %v8858_v57  ;;  %v3632_v5 = vrot.slane %v10855_v18, %v8858_v57 }
 0x3e4   : > { %v7217_v13 = vcvt.s32.f32 %v4825_v26  ;;  %v7221_v37 = vcvt.s32.f32 %v4829_v7  ;;  %v4824_v25 = vand.u32 15, %v4312_v12  ;;  %v4828_v56 = vand.u32 15, %v4316_v16 }
 0x3e5   : > { %v6517_v40 = vpop.f32.mrf.mxu1  ;;  %v6477_v20 = vpop.f32.mrf.mxu0  ;;  %v7219_v4 = vcvt.s32.f32 %v4827_v14  ;;  %v7223_v61 = vcvt.s32.f32 %v4831_v8  ;;  %v4314_v0 = vshrl.u32 %v3616_v27, %v8871_v2  ;;  %v4318_v42 = vshrl.u32 %v3632_v5, %v8871_v2 }
 0x3e6   : > { %v7249_v44 = vpack.c.bf16 %v7221_v37, %v7217_v13  ;;  %v7216_v50 = vcvt.s32.f32 %v4824_v25  ;;  %v7220_v29 = vcvt.s32.f32 %v4828_v56  ;;  %v11372_v18 = vcombine.low %v10840_v49, %v10843_v21 }
 0x3e7   : > { %v6518_v22 = vpop.f32.mrf.mxu1  ;;  %v7251_v3 = vpack.c.bf16 %v7223_v61, %v7219_v4  ;;  %v4826_v32 = vand.u32 15, %v4314_v0  ;;  %v4830_v23 = vand.u32 15, %v4318_v42  ;;  %v11373_v51 = vcombine.high %v10840_v49, %v10843_v21 }
 0x3e8   : > { %v10924_v11 = vrot.slane %v11372_v18, %v8851_v53  ;;  %v5196_v26 = vrot.slane %v10916_v45, %v8853_v54  ;;  %v5204_v7 = vrot.slane %v10916_v45, %v8858_v57  ;;  %7283 = vmatprep.subr.bf16.mxu0 %v7249_v44  ;;  %v7248_v12 = vpack.c.bf16 %v7220_v29, %v7216_v50 }
 0x3e9   : > { %v10930_v24 = vrot.slane %v11373_v51, %v8851_v53  ;;  %7324 = vmatprep.subr.bf16.mxu1 %v7251_v3  ;;  %v7218_v15 = vcvt.s32.f32 %v4826_v32  ;;  %v7222_v14 = vcvt.s32.f32 %v4830_v23  ;;  %v11374_v32 = vmov 0  }
 0x3ea   : > { %v1810_v16 = vcombine.high %v10924_v11, %v10924_v11  ;;  %v3804_v49 = vrot.slane %v10924_v11, %v8855_v55  ;;  %7284 = vmatpush1.bf16.msra.mxu0 %v7248_v12 }
 0x3eb   : > { %v1812_v8 = vcombine.high %v10930_v24, %v10930_v24  ;;  %v7250_v37 = vpack.c.bf16 %v7222_v14, %v7218_v15 }
 0x3ec   : > { %v3836_v21 = vrot.slane %v1810_v16, %v8855_v55  ;;  %v3844_v27 = vrot.slane %v1810_v16, %v8860_v58  ;;  %v3832_v5 = vrot.slane %v1810_v16, %v8853_v54  ;;  %v3840_v13 = vrot.slane %v1810_v16, %v8858_v57 }
 0x3ed   : > { %v3852_v25 = vrot.slane %v1812_v8, %v8855_v55  ;;  %v3860_v56 = vrot.slane %v1812_v8, %v8860_v58  ;;  %v3848_v40 = vrot.slane %v1812_v8, %v8853_v54  ;;  %v3856_v0 = vrot.slane %v1812_v8, %v8858_v57  ;;  %7325 = vmatpush1.bf16.msra.mxu1 %v7250_v37 }
 0x3ee   : > { %v4369_v20 = vshrl.u32 %v3836_v21, %v8871_v2  ;;  %v4371_v4 = vshrl.u32 %v3844_v27, %v8871_v2  ;;  %v4368_v61 = vshrl.u32 %v3832_v5, %v8871_v2  ;;  %7838 = vmatmul.mubr.msk.bf16.vlgmr.msra.gmra.mxu0 %vm4940_vm1, %v10016_v62  ;;  %v4370_v3 = vshrl.u32 %v3840_v13, %v8871_v2 }
 0x3ef   : > { %v4373_v42 = vshrl.u32 %v3852_v25, %v8871_v2  ;;  %v4375_v44 = vshrl.u32 %v3860_v56, %v8871_v2  ;;  %v4372_v50 = vshrl.u32 %v3848_v40, %v8871_v2  ;;  %7467 = vmatprep.mubr.bf16.mxu0 %v11374_v32  ;;  %v4374_v16 = vshrl.u32 %v3856_v0, %v8871_v2 }
 0x3f0   : > { %v4881_v29 = vand.u32 15, %v4369_v20  ;;  %v4883_v18 = vand.u32 15, %v4371_v4  ;;  %v4880_v22 = vand.u32 15, %v4368_v61  ;;  %7839 = vmatmul.mubr.msk.bf16.vlgmr.msra.gmra.mxu1 %vm4940_vm1, %v10016_v62  ;;  %v4882_v21 = vand.u32 15, %v4370_v3 }
 0x3f1   : > { %v4885_v23 = vand.u32 15, %v4373_v42  ;;  %v4887_v51 = vand.u32 15, %v4375_v44  ;;  %v4884_v12 = vand.u32 15, %v4372_v50  ;;  %v4886_v25 = vand.u32 15, %v4374_v16  ;;  %7508 = vmatprep.mubr.bf16.mxu1 %v11374_v32  ;;  %v8119_v16 = vld [vmem:[%s8773_s19 + $0x1f0] ss:$8 sps:$4 sm:$0xff]  }
 0x3f2   : > { %v7407_v15 = vcvt.s32.f32 %v4881_v29  ;;  %v7409_v14 = vcvt.s32.f32 %v4883_v18  ;;  %v7406_v8 = vcvt.s32.f32 %v4880_v22  ;;  %v5200_v13 = vrot.slane %v10916_v45, %v8855_v55  ;;  %v8118_v18 = vld [vmem:[%s8773_s19 + $0x1e0] ss:$8 sps:$4 sm:$0xff]   ;;  %s7853_s19 = sshll.u32 %s11399_s13, 9 }
 0x3f3   : > { %v7411_v27 = vcvt.s32.f32 %v4885_v23  ;;  %v7413_v5 = vcvt.s32.f32 %v4887_v51  ;;  %v7410_v37 = vcvt.s32.f32 %v4884_v12  ;;  %v7408_v56 = vcvt.s32.f32 %v4882_v21  ;;  %s7575_s6 = scalar_lea.hbm %s11400_s5, %s7853_s19 }
 0x3f4   : > { %v3820_v40 = vrot.slane %v10930_v24, %v8855_v55  ;;  %v4361_v62 = vshrl.u32 %v3804_v49, %v8871_v2  ;;  %v7412_v0 = vcvt.s32.f32 %v4886_v25  ;;  %v3812_v50 = vrot.slane %v10924_v11, %v8860_v58 }
 0x3f5   : > { %v7427_v20 = vpack.c.bf16 %v7411_v27, %v7407_v15  ;;  %v7429_v4 = vpack.c.bf16 %v7413_v5, %v7409_v14  ;;  %v7426_v61 = vpack.c.bf16 %v7410_v37, %v7406_v8  ;;  %v3828_v29 = vrot.slane %v10930_v24, %v8860_v58 }
 0x3f6   : > { %v4365_v42 = vshrl.u32 %v3820_v40, %v8871_v2  ;;  %v4873_v44 = vand.u32 15, %v4361_v62  ;;  %v7428_v22 = vpack.c.bf16 %v7412_v0, %v7408_v56  ;;  %v3800_v49 = vrot.slane %v10924_v11, %v8853_v54 }
 0x3f7   : > { %7443 = vmatprep.subr.bf16.mxu0 %v7427_v20  ;;  %7484 = vmatprep.subr.bf16.mxu1 %v7429_v4  ;;  %v3816_v3 = vrot.slane %v10930_v24, %v8853_v54  ;;  %v4363_v51 = vshrl.u32 %v3812_v50, %v8871_v2  ;;  %v4367_v12 = vshrl.u32 %v3828_v29, %v8871_v2 }
 0x3f8   : > { %7444 = vmatpush1.bf16.msra.mxu0 %v7426_v61  ;;  %v4877_v32 = vand.u32 15, %v4365_v42  ;;  %v7399_v23 = vcvt.s32.f32 %v4873_v44  ;;  %7485 = vmatpush1.bf16.msra.mxu1 %v7428_v22  ;;  %v4360_v15 = vshrl.u32 %v3800_v49, %v8871_v2  ;;  %v3808_v8 = vrot.slane %v10924_v11, %v8858_v57  ;;  %v10999_v22 = vld [vmem:[%s8779_s8 + $0x8] sm:$0xf] }
 0x3f9   : > { %v4364_v14 = vshrl.u32 %v3816_v3, %v8871_v2  ;;  %v3824_v21 = vrot.slane %v10930_v24, %v8858_v57  ;;  %v4875_v5 = vand.u32 15, %v4363_v51  ;;  %v4879_v37 = vand.u32 15, %v4367_v12 }
 0x3fa   : > { %v7403_v27 = vcvt.s32.f32 %v4877_v32  ;;  %v1755_v25 = vrot.slane %v8118_v18, %v8851_v53  ;;  %v4872_v56 = vand.u32 15, %v4360_v15  ;;  %v4362_v62 = vshrl.u32 %v3808_v8, %v8871_v2 }
 0x3fb   : > { %v4876_v40 = vand.u32 15, %v4364_v14  ;;  %v4366_v20 = vshrl.u32 %v3824_v21, %v8871_v2  ;;  %v7401_v61 = vcvt.s32.f32 %v4875_v5  ;;  %v7405_v0 = vcvt.s32.f32 %v4879_v37 }
 0x3fc   : > { %v7423_v4 = vpack.c.bf16 %v7403_v27, %v7399_v23  ;;  %v1769_v11 = vrot.slane %v8119_v16, %v8851_v53  ;;  %v7398_v42 = vcvt.s32.f32 %v4872_v56  ;;  %v4874_v24 = vand.u32 15, %v4362_v62 }
 0x3fd   : > { %v7402_v44 = vcvt.s32.f32 %v4876_v40  ;;  %v4878_v50 = vand.u32 15, %v4366_v20  ;;  %v11375_v29 = vrot.slane %v10807_v31, %v8855_v55  ;;  %v7425_v49 = vpack.c.bf16 %v7405_v0, %v7401_v61 }
 0x3fe   : > { %7445 = vmatprep.subr.bf16.mxu0 %v7423_v4  ;;  %v1777_v3 = vcombine.low %v1755_v25, %v1769_v11  ;;  %v1778_v32 = vcombine.high %v1755_v25, %v1769_v11  ;;  %v11005_v23 = vmul.f32 %v5196_v26, %v10393_v41  ;;  %v7400_v12 = vcvt.s32.f32 %v4874_v24 }
 0x3ff   : > { %v10996_v18 = vmul.f32 %v11375_v29, %v10206_v28  ;;  %v7422_v51 = vpack.c.bf16 %v7402_v44, %v7398_v42  ;;  %v7404_v16 = vcvt.s32.f32 %v4878_v50  ;;  %v11011_v28 = vmul.f32 %v5204_v7, %v10395_v10  ;;  %7486 = vmatprep.subr.bf16.mxu1 %v7425_v49 }
 0x400   : > { %v11016_v14 = vrot.slane %v1777_v3, %v8851_v53  ;;  %v11019_v8 = vrot.slane %v1778_v32, %v8851_v53  ;;  %v11022_v41 = vmul.f32 %v5200_v13, %v10399_v60 }
 0x401   : > { %7446 = vmatpush1.bf16.msra.mxu0 %v7422_v51  ;;  %v7424_v7 = vpack.c.bf16 %v7404_v16, %v7400_v12 }
 0x402   : > { %v1809_v21 = vcombine.high %v11016_v14, %v11016_v14  ;;  %v1811_v27 = vcombine.high %v11019_v8, %v11019_v8  ;;  %v3740_v53 = vrot.slane %v11016_v14, %v8855_v55  ;;  %v3756_v60 = vrot.slane %v11019_v8, %v8855_v55 }
 0x403   : > { %7487 = vmatpush1.bf16.msra.mxu1 %v7424_v7  ;;  %v3748_v13 = vrot.slane %v11016_v14, %v8860_v58  ;;  %v3764_v5 = vrot.slane %v11019_v8, %v8860_v58  ;;  %v3736_v37 = vrot.slane %v11016_v14, %v8853_v54  ;;  %v3752_v25 = vrot.slane %v11019_v8, %v8853_v54 }
 0x404   : > { %v3772_v56 = vrot.slane %v1809_v21, %v8855_v55  ;;  %v3788_v40 = vrot.slane %v1811_v27, %v8855_v55  ;;  %v3780_v62 = vrot.slane %v1809_v21, %v8860_v58  ;;  %v3796_v20 = vrot.slane %v1811_v27, %v8860_v58 }
 0x405   : > { %v3768_v4 = vrot.slane %v1809_v21, %v8853_v54  ;;  %v3784_v61 = vrot.slane %v1811_v27, %v8853_v54  ;;  %v3776_v0 = vrot.slane %v1809_v21, %v8858_v57  ;;  %v3792_v11 = vrot.slane %v1811_v27, %v8858_v57 }
 0x406   : > { %v4353_v42 = vshrl.u32 %v3772_v56, %v8871_v2  ;;  %v4357_v44 = vshrl.u32 %v3788_v40, %v8871_v2  ;;  %v4355_v24 = vshrl.u32 %v3780_v62, %v8871_v2  ;;  %v4359_v50 = vshrl.u32 %v3796_v20, %v8871_v2 }
 0x407   : > { %v4352_v29 = vshrl.u32 %v3768_v4, %v8871_v2  ;;  %v4356_v49 = vshrl.u32 %v3784_v61, %v8871_v2  ;;  %v4354_v3 = vshrl.u32 %v3776_v0, %v8871_v2  ;;  %v4358_v32 = vshrl.u32 %v3792_v11, %v8871_v2  ;;  %v11060_v21 = vpop.f32.mrf.mxu0 }
 0x408   : > { %v4865_v51 = vand.u32 15, %v4353_v42  ;;  %v4869_v12 = vand.u32 15, %v4357_v44  ;;  %v4867_v16 = vand.u32 15, %v4355_v24  ;;  %v4871_v7 = vand.u32 15, %v4359_v50  ;;  %11376 = vst [vmem:[#allocation44_spill] sm:$0xff] %v11060_v21  ;;  %v11062_v10 = vpop.f32.mrf.mxu1 }
 0x409   : > { %v4864_v27 = vand.u32 15, %v4352_v29  ;;  %v4868_v56 = vand.u32 15, %v4356_v49  ;;  %v4866_v40 = vand.u32 15, %v4354_v3  ;;  %v4870_v62 = vand.u32 15, %v4358_v32  ;;  %v11064_v15 = vpop.f32.mrf.mxu0 }
 0x40a   : > { %v7391_v20 = vcvt.s32.f32 %v4865_v51  ;;  %v7395_v4 = vcvt.s32.f32 %v4869_v12  ;;  %v7393_v26 = vcvt.s32.f32 %v4867_v16  ;;  %v7397_v61 = vcvt.s32.f32 %v4871_v7  ;;  %v11066_v24 = vpop.f32.mrf.mxu1 }
 0x40b   : > { %v7390_v0 = vcvt.s32.f32 %v4864_v27  ;;  %v7394_v11 = vcvt.s32.f32 %v4868_v56  ;;  %v7392_v42 = vcvt.s32.f32 %v4866_v40  ;;  %v7396_v44 = vcvt.s32.f32 %v4870_v62  ;;  %v6642_v3 = vpop.f32.mrf.mxu0 }
 0x40c   : > { %v7419_v50 = vpack.c.bf16 %v7395_v4, %v7391_v20  ;;  %v7421_v21 = vpack.c.bf16 %v7397_v61, %v7393_v26  ;;  %v4345_v29 = vshrl.u32 %v3740_v53, %v8871_v2  ;;  %v4349_v49 = vshrl.u32 %v3756_v60, %v8871_v2  ;;  %v6683_v7 = vpop.f32.mrf.mxu1 }
 0x40d   : > { %v7418_v32 = vpack.c.bf16 %v7394_v11, %v7390_v0  ;;  %v7420_v51 = vpack.c.bf16 %v7396_v44, %v7392_v42  ;;  %v4347_v12 = vshrl.u32 %v3748_v13, %v8871_v2  ;;  %v4351_v16 = vshrl.u32 %v3764_v5, %v8871_v2  ;;  %v6643_v62 = vpop.f32.mrf.mxu0  ;;  %v7801_v44 = vld [vmem:[%s8779_s8 + $0xc] sm:$0xf] }
 0x40e   : > { %7447 = vmatprep.subr.bf16.mxu0 %v7419_v50  ;;  %7488 = vmatprep.subr.bf16.mxu1 %v7421_v21  ;;  %v4857_v27 = vand.u32 15, %v4345_v29  ;;  %v4861_v56 = vand.u32 15, %v4349_v49  ;;  %v4344_v40 = vshrl.u32 %v3736_v37, %v8871_v2  ;;  %v4348_v26 = vshrl.u32 %v3752_v25, %v8871_v2  ;;  %v6684_v20 = vpop.f32.mrf.mxu1 }
 0x40f   : > { %7448 = vmatpush1.bf16.msra.mxu0 %v7418_v32  ;;  %7489 = vmatpush1.bf16.msra.mxu1 %v7420_v51  ;;  %v4859_v53 = vand.u32 15, %v4347_v12  ;;  %v4863_v60 = vand.u32 15, %v4351_v16  ;;  %v3744_v13 = vrot.slane %v11016_v14, %v8858_v57  ;;  %v3760_v5 = vrot.slane %v11019_v8, %v8858_v57 }
 0x410   : > { %v7383_v21 = vcvt.s32.f32 %v4857_v27  ;;  %v7387_v4 = vcvt.s32.f32 %v4861_v56  ;;  %v4856_v61 = vand.u32 15, %v4344_v40  ;;  %v4860_v0 = vand.u32 15, %v4348_v26 }
 0x411   : > { %v7385_v37 = vcvt.s32.f32 %v4859_v53  ;;  %v7389_v11 = vcvt.s32.f32 %v4863_v60  ;;  %v4346_v25 = vshrl.u32 %v3744_v13, %v8871_v2  ;;  %v4350_v42 = vshrl.u32 %v3760_v5, %v8871_v2  ;;  %v7431_v60 = vpop.permute.xlu1 %7430  ;;  %v7804_v13 = vld [vmem:[%s8779_s8 + $0x10] sm:$0xf] }
 0x412   : > { %v5366_v50 = vrot.slane %v10999_v22, %v8855_v55  ;;  %v7415_v29 = vpack.c.bf16 %v7387_v4, %v7383_v21  ;;  %v7382_v14 = vcvt.s32.f32 %v4856_v61  ;;  %v7386_v49 = vcvt.s32.f32 %v4860_v0  ;;  %v7808_v4 = vld [vmem:[%s8779_s8 + $0x14] sm:$0xf] }
 0x413   : > { %v5374_v8 = vrot.slane %v10999_v22, %v8860_v58  ;;  %v7417_v3 = vpack.c.bf16 %v7389_v11, %v7385_v37  ;;  %v4858_v32 = vand.u32 15, %v4346_v25  ;;  %v4862_v51 = vand.u32 15, %v4350_v42 }
 0x414   : > { %v11377_v12 = vrot.slane %v10807_v31, %v8860_v58  ;;  %v11378_v2 = vrot.slane %v10916_v45, %v8860_v58  ;;  %7449 = vmatprep.subr.bf16.mxu0 %v7415_v29  ;;  %v7414_v27 = vpack.c.bf16 %v7386_v49, %v7382_v14  ;;  %v5528_v56 = vrot.slane %v7801_v44, %v8853_v54 }
 0x415   : > { %v5217_v40 = vadd.f32 %v11005_v23, %v10846_v43  ;;  %v11379_v26 = vrot.slane %v10999_v22, %v8853_v54  ;;  %7490 = vmatprep.subr.bf16.mxu1 %v7417_v3  ;;  %v7388_v31 = vcvt.s32.f32 %v4862_v51  ;;  %v5219_v45 = vadd.f32 %v11011_v28, %v10849_v19 }
 0x416   : > { %v5051_v16 = vmul.f32 %v11377_v12, %v10208_v30  ;;  %v5216_v7 = vmul.f32 %v11378_v2, %v10401_v39  ;;  %v7384_v30 = vcvt.s32.f32 %v4858_v32  ;;  %v11380_v39 = vrot.slane %v10999_v22, %v8858_v57  ;;  %7450 = vmatpush1.bf16.msra.mxu0 %v7414_v27  ;;  %v7815_v32 = vld [vmem:[%s8779_s8 + $0x1c] sm:$0xf]  ;;  %v11383_v27 = vld [vmem:[#allocation28_spill] sm:$0xff] }
 0x417   : > { %v5379_v62 = vmul.f32 %v11379_v26, %v10527_v47  ;;  %v5536_v43 = vrot.slane %v7801_v44, %v8858_v57  ;;  %v5540_v23 = vrot.slane %v7801_v44, %v8860_v58  ;;  %v5218_v47 = vadd.f32 %v11022_v41, %v10996_v18 }
 0x418   : > { %v5381_v53 = vmul.f32 %v11380_v39, %v10529_v46  ;;  %v5380_v5 = vmul.f32 %v5366_v50, %v10541_v17  ;;  %v5382_v20 = vmul.f32 %v5374_v8, %v10543_v48  ;;  %v7416_v19 = vpack.c.bf16 %v7388_v31, %v7384_v30  ;;  %v11385_v39 = vld [vmem:[#allocation29_spill] sm:$0xff] }
 0x419   : > { %v5220_v28 = vadd.f32 %v5216_v7, %v5051_v16  ;;  %v5545_v21 = vmul.f32 %v5528_v56, %v10645_v35  ;;  %v5532_v46 = vrot.slane %v7801_v44, %v8855_v55  ;;  %v5704_v22 = vrot.slane %v7804_v13, %v8860_v58  ;;  %7841 = vmatmul.mubr.msk.bf16.vlgmr.msra.gmra.mxu0 %vm4940_vm1, %v7431_v60  ;;  %v7812_v44 = vld [vmem:[%s8779_s8 + $0x18] sm:$0xf]  ;;  %v11381_v16 = vld [vmem:[#allocation31_spill] sm:$0xff] }
 0x41a   : > { %v5383_v61 = vadd.f32 %v5379_v62, %v5217_v40  ;;  %7491 = vmatpush1.bf16.msra.mxu1 %v7416_v19  ;;  %v5692_v18 = vrot.slane %v7804_v13, %v8853_v54  ;;  %v5700_v17 = vrot.slane %v7804_v13, %v8858_v57  ;;  %v5385_v41 = vadd.f32 %v5381_v53, %v5219_v45  ;;  %v11382_v7 = vld [vmem:[#allocation27_spill] sm:$0xff] }
 0x41b   : > { %v5547_v48 = vmul.f32 %v5536_v43, %v10651_v6  ;;  %v5548_v0 = vmul.f32 %v5540_v23, %v10666_v1  ;;  %v5873_v35 = vrot.slane %v7808_v4, %v8860_v58  ;;  %v5384_v37 = vadd.f32 %v5380_v5, %v5218_v47  ;;  %v11384_v62 = vld [vmem:[#allocation35_spill] sm:$0xff]  ;;  %v7818_v23 = vld [vmem:[%s8779_s8 + $0x20] sm:$0xf] }
 0x41c   : > { %v5386_v11 = vadd.f32 %v5382_v20, %v5220_v28  ;;  %v5696_v25 = vrot.slane %v7804_v13, %v8855_v55  ;;  %v5861_v42 = vrot.slane %v7808_v4, %v8853_v54  ;;  %v5549_v50 = vadd.f32 %v5545_v21, %v5383_v61  ;;  %v11387_v5 = vld [vmem:[#allocation39_spill] sm:$0xff] }
 0x41d   : > { %7842 = vmatmul.mubr.msk.bf16.vlgmr.msra.gmra.mxu1 %vm4940_vm1, %v7431_v60  ;;  %v5546_v29 = vmul.f32 %v5532_v46, %v10664_v34  ;;  %v5712_v14 = vmul.f32 %v5704_v22, %v10687_v36  ;;  %v6039_v6 = vrot.slane %v7812_v44, %v8860_v58  ;;  %v5709_v1 = vmul.f32 %v5692_v18, %v10674_v9  ;;  %v11386_v60 = vld [vmem:[#allocation30_spill] sm:$0xff]  ;;  %v11388_v46 = vld [vmem:[#allocation32_spill] sm:$0xff] }
 0x41e   : > { %v5711_v49 = vmul.f32 %v5700_v17, %v10676_v33  ;;  %v5869_v8 = vrot.slane %v7808_v4, %v8858_v57  ;;  %v5865_v3 = vrot.slane %v7808_v4, %v8855_v55  ;;  %v5551_v51 = vadd.f32 %v5547_v48, %v5385_v41  ;;  %v11389_v4 = vld [vmem:[#allocation33_spill] sm:$0xff]  ;;  %v7822_v18 = vld [vmem:[%s8779_s8 + $0x24] sm:$0xf]  ;;  %v11390_v48 = vld [vmem:[#allocation43_spill] sm:$0xff] }
 0x41f   : > { %v5552_v12 = vadd.f32 %v5548_v0, %v5386_v11  ;;  %v5881_v2 = vmul.f32 %v5873_v35, %v11381_v16  ;;  %v6205_v34 = vrot.slane %v7815_v32, %v8860_v58  ;;  %v5710_v36 = vmul.f32 %v5696_v25, %v11382_v7  ;;  %v11393_v7 = vld [vmem:[#allocation37_spill] sm:$0xff] }
 0x420   : > { %v5878_v56 = vmul.f32 %v5861_v42, %v11383_v27  ;;  %v6027_v9 = vrot.slane %v7812_v44, %v8853_v54  ;;  %v6035_v33 = vrot.slane %v7812_v44, %v8858_v57  ;;  %v5550_v40 = vadd.f32 %v5546_v29, %v5384_v37  ;;  %v11394_v27 = vld [vmem:[#allocation38_spill] sm:$0xff] }
 0x421   : > { %v5716_v26 = vadd.f32 %v5712_v14, %v5552_v12  ;;  %v6047_v30 = vmul.f32 %v6039_v6, %v11384_v62  ;;  %v5713_v31 = vadd.f32 %v5709_v1, %v5549_v50  ;;  %v5715_v45 = vadd.f32 %v5711_v49, %v5551_v51  ;;  %v11391_v50 = vld [vmem:[#allocation34_spill] sm:$0xff]  ;;  %v7826_v51 = vld [vmem:[%s8779_s8 + $0x28] sm:$0xf]  ;;  %v11392_v12 = vld [vmem:[#allocation36_spill] sm:$0xff] }
 0x422   : > { %v5880_v53 = vmul.f32 %v5869_v8, %v11385_v39  ;;  %v5879_v43 = vmul.f32 %v5865_v3, %v11386_v60  ;;  %v6031_v47 = vrot.slane %v7812_v44, %v8855_v55  ;;  %v6213_v20 = vmul.f32 %v6205_v34, %v11387_v5 }
 0x423   : > { %v5885_v13 = vadd.f32 %v5881_v2, %v5716_v26  ;;  %v6369_v19 = vrot.slane %v7818_v23, %v8860_v58  ;;  %v5714_v28 = vadd.f32 %v5710_v36, %v5550_v40  ;;  %v5882_v21 = vadd.f32 %v5878_v56, %v5713_v31 }
 0x424   : > { %v6044_v22 = vmul.f32 %v6027_v9, %v11388_v46  ;;  %v6046_v61 = vmul.f32 %v6035_v33, %v11389_v4  ;;  %v6193_v41 = vrot.slane %v7815_v32, %v8853_v54  ;;  %v6538_v35 = vrot.slane %v7822_v18, %v8860_v58 }
 0x425   : > { %v6051_v17 = vadd.f32 %v6047_v30, %v5885_v13  ;;  %v6377_v0 = vmul.f32 %v6369_v19, %v11390_v48  ;;  %v5884_v37 = vadd.f32 %v5880_v53, %v5715_v45  ;;  %v6201_v11 = vrot.slane %v7815_v32, %v8858_v57  ;;  %v11396_v45 = vld [vmem:[#allocation41_spill] sm:$0xff]  ;;  %v11397_v53 = vld [vmem:[#allocation42_spill] sm:$0xff] }
 0x426   : > { %v6197_v25 = vrot.slane %v7815_v32, %v8855_v55  ;;  %v6357_v42 = vrot.slane %v7818_v23, %v8853_v54  ;;  %v5883_v44 = vadd.f32 %v5879_v43, %v5714_v28  ;;  %v6045_v29 = vmul.f32 %v6031_v47, %v11391_v50 }
 0x427   : > { %v6217_v14 = vadd.f32 %v6213_v20, %v6051_v17  ;;  %v6546_v6 = vmul.f32 %v6538_v35, %v10909_v63  ;;  %v6048_v1 = vadd.f32 %v6044_v22, %v5882_v21  ;;  %v6050_v49 = vadd.f32 %v6046_v61, %v5884_v37  ;;  %v11395_v63 = vld [vmem:[#allocation40_spill] sm:$0xff] }
 0x428   : > { %v6365_v8 = vrot.slane %v7818_v23, %v8858_v57  ;;  %v6361_v3 = vrot.slane %v7818_v23, %v8855_v55  ;;  %v6210_v16 = vmul.f32 %v6193_v41, %v11392_v12  ;;  %v6526_v32 = vrot.slane %v7822_v18, %v8853_v54  ;;  %v7829_v23 = vld [vmem:[%s8779_s8 + $0x2c] sm:$0xf]  ;;  %v11398_v22 = vld [vmem:[#allocation44_spill] sm:$0xff] }
 0x429   : > { %v6381_v2 = vadd.f32 %v6377_v0, %v6217_v14  ;;  %v6704_v34 = vrot.slane %v7826_v51, %v8860_v58  ;;  %v6212_v36 = vmul.f32 %v6201_v11, %v11393_v7  ;;  %v6211_v56 = vmul.f32 %v6197_v25, %v11394_v27 }
 0x42a   : > { %v6374_v9 = vmul.f32 %v6357_v42, %v11395_v63  ;;  %v6534_v33 = vrot.slane %v7822_v18, %v8858_v57  ;;  %v6530_v40 = vrot.slane %v7822_v18, %v8855_v55  ;;  %v6692_v62 = vrot.slane %v7826_v51, %v8853_v54 }
 0x42b   : > { %v6550_v26 = vadd.f32 %v6546_v6, %v6381_v2  ;;  %v6712_v30 = vmul.f32 %v6704_v34, %v11066_v24  ;;  %v6049_v31 = vadd.f32 %v6045_v29, %v5883_v44  ;;  %v6376_v39 = vmul.f32 %v6365_v8, %v11396_v45  ;;  %v7832_v34 = vld [vmem:[%s8779_s8 + $0x30] sm:$0xf] }
 0x42c   : > { %v6375_v60 = vmul.f32 %v6361_v3, %v11397_v53  ;;  %v6700_v43 = vrot.slane %v7826_v51, %v8858_v57  ;;  %v6214_v13 = vadd.f32 %v6210_v16, %v6048_v1  ;;  %v6543_v47 = vmul.f32 %v6526_v32, %v10897_v52 }
 0x42d   : > { %v6696_v5 = vrot.slane %v7826_v51, %v8855_v55  ;;  %v6716_v20 = vadd.f32 %v6712_v30, %v6550_v26  ;;  %v6216_v19 = vadd.f32 %v6212_v36, %v6050_v49  ;;  %v6215_v28 = vadd.f32 %v6211_v56, %v6049_v31 }
 0x42e   : > { %v6545_v21 = vmul.f32 %v6534_v33, %v10901_v38  ;;  %v6378_v46 = vadd.f32 %v6374_v9, %v6214_v13  ;;  %v6544_v24 = vmul.f32 %v6530_v40, %v10903_v59  ;;  %v6709_v4 = vmul.f32 %v6692_v62, %v11398_v22 }
 0x42f   : > { %v6858_v61 = vrot.slane %v7829_v23, %v8853_v54  ;;  %v6380_v18 = vadd.f32 %v6376_v39, %v6216_v19  ;;  %v6379_v17 = vadd.f32 %v6375_v60, %v6215_v28  ;;  %v6711_v41 = vmul.f32 %v6700_v43, %v11062_v10 }
 0x430   : > { %v6547_v48 = vadd.f32 %v6543_v47, %v6378_v46  ;;  %v6710_v52 = vmul.f32 %v6696_v5, %v11064_v15  ;;  %v6866_v0 = vrot.slane %v7829_v23, %v8858_v57  ;;  %v6862_v35 = vrot.slane %v7829_v23, %v8855_v55  ;;  %v6804_v38 = vpop.f32.mrf.mxu0  ;;  %v7836_v5 = vld [vmem:[%s8779_s8 + $0x34] sm:$0xf] }
 0x431   : > { %v6549_v37 = vadd.f32 %v6545_v21, %v6380_v18  ;;  %v6548_v11 = vadd.f32 %v6544_v24, %v6379_v17  ;;  %v6875_v59 = vmul.f32 %v6858_v61, %v6804_v38  ;;  %v6870_v42 = vrot.slane %v7829_v23, %v8860_v58 }
 0x432   : > { %v6713_v25 = vadd.f32 %v6709_v4, %v6547_v48  ;;  %v6845_v50 = vpop.f32.mrf.mxu1  ;;  %v6806_v29 = vpop.f32.mrf.mxu0  ;;  %v7022_v7 = vrot.slane %v7832_v34, %v8853_v54  ;;  %v7030_v36 = vrot.slane %v7832_v34, %v8858_v57  ;;  %v7026_v27 = vrot.slane %v7832_v34, %v8855_v55 }
 0x433   : > { %v6715_v44 = vadd.f32 %v6711_v41, %v6549_v37  ;;  %v6714_v14 = vadd.f32 %v6710_v52, %v6548_v11  ;;  %v6877_v6 = vmul.f32 %v6866_v0, %v6845_v50  ;;  %v6876_v1 = vmul.f32 %v6862_v35, %v6806_v29 }
 0x434   : > { %v6879_v10 = vadd.f32 %v6875_v59, %v6713_v25  ;;  %v6847_v15 = vpop.f32.mrf.mxu1  ;;  %v6808_v49 = vpop.f32.mrf.mxu0  ;;  %v7034_v9 = vrot.slane %v7832_v34, %v8860_v58  ;;  %v7199_v19 = vrot.slane %v7836_v5, %v8858_v57  ;;  %v7195_v28 = vrot.slane %v7836_v5, %v8855_v55 }
 0x435   : > { %v6881_v8 = vadd.f32 %v6877_v6, %v6715_v44  ;;  %v6880_v3 = vadd.f32 %v6876_v1, %v6714_v14  ;;  %v6878_v51 = vmul.f32 %v6870_v42, %v6847_v15  ;;  %v7203_v24 = vrot.slane %v7836_v5, %v8860_v58  ;;  %v7840_v1 = vld [vmem:[%s8779_s8 + $0x38] sm:$0xf]  ;;  %v7843_v49 = vld [vmem:[%s8779_s8 + $0x3c] sm:$0xf] }
 0x436   : > { %v6849_v12 = vpop.f32.mrf.mxu1  ;;  %v6809_v16 = vpop.f32.mrf.mxu0  ;;  %v7357_v15 = vrot.slane %v7840_v1, %v8853_v54 }
 0x437   : > { %v6882_v2 = vadd.f32 %v6878_v51, %v6716_v20  ;;  %v7191_v20 = vrot.slane %v7836_v5, %v8853_v54  ;;  %v7523_v12 = vrot.slane %v7843_v49, %v8853_v54  ;;  %v7369_v16 = vrot.slane %v7840_v1, %v8860_v58 }
 0x438   : > { %v6850_v32 = vpop.f32.mrf.mxu1 }
 0x439   : > { %v7527_v32 = vrot.slane %v7843_v49, %v8855_v55 }
 0x459   : > { %v6968_v56 = vpop.f32.mrf.mxu0 }
 0x45a   : > { %v7039_v63 = vmul.f32 %v7022_v7, %v6968_v56 }
 0x45b   : > { %v7009_v33 = vpop.f32.mrf.mxu1  ;;  %v6970_v40 = vpop.f32.mrf.mxu0 }
 0x45c   : > { %v7043_v26 = vadd.f32 %v7039_v63, %v6879_v10  ;;  %v7041_v62 = vmul.f32 %v7030_v36, %v7009_v33  ;;  %v7040_v30 = vmul.f32 %v7026_v27, %v6970_v40  ;;  %v7531_v36 = vrot.slane %v7843_v49, %v8858_v57 }
 0x45d   : > { %v7011_v31 = vpop.f32.mrf.mxu1  ;;  %v6972_v45 = vpop.f32.mrf.mxu0  ;;  %v7535_v40 = vrot.slane %v7843_v49, %v8860_v58 }
 0x45e   : > { %v7045_v39 = vadd.f32 %v7041_v62, %v6881_v8  ;;  %v7044_v53 = vadd.f32 %v7040_v30, %v6880_v3  ;;  %v7042_v60 = vmul.f32 %v7034_v9, %v7011_v31  ;;  %v7361_v8 = vrot.slane %v7840_v1, %v8855_v55  ;;  %v7548_v9 = vld [vmem:[%s8803_s7] sm:$0xff]  ;;  %v7549_v45 = vld [vmem:[%s8803_s7 + $0x8] sm:$0xff] }
 0x45f   : > { %v7013_v43 = vpop.f32.mrf.mxu1  ;;  %v6973_v23 = vpop.f32.mrf.mxu0  ;;  %v7365_v3 = vrot.slane %v7840_v1, %v8858_v57 }
 0x460   : > { %v7046_v13 = vadd.f32 %v7042_v60, %v6882_v2 }
 0x461   : > { %v7014_v47 = vpop.f32.mrf.mxu1 }
 0x480   : > { %v7137_v21 = vpop.f32.mrf.mxu0 }
 0x481   : > { %v7208_v46 = vmul.f32 %v7191_v20, %v7137_v21  ;;  %v7551_v20 = vld [vmem:[%s8803_s7 + $0x18] sm:$0xff] }
 0x482   : > { %v7178_v22 = vpop.f32.mrf.mxu1  ;;  %v7139_v4 = vpop.f32.mrf.mxu0 }
 0x483   : > { %v7212_v61 = vadd.f32 %v7208_v46, %v7043_v26  ;;  %v7210_v18 = vmul.f32 %v7199_v19, %v7178_v22  ;;  %v7209_v17 = vmul.f32 %v7195_v28, %v7139_v4 }
 0x484   : > { %v7180_v41 = vpop.f32.mrf.mxu1  ;;  %v7141_v48 = vpop.f32.mrf.mxu0 }
 0x485   : > { %v7214_v52 = vadd.f32 %v7210_v18, %v7045_v39  ;;  %v7213_v0 = vadd.f32 %v7209_v17, %v7044_v53  ;;  %v7211_v35 = vmul.f32 %v7203_v24, %v7180_v41  ;;  %v7550_v53 = vld [vmem:[%s8803_s7 + $0x10] sm:$0xff] }
 0x486   : > { %v7182_v37 = vpop.f32.mrf.mxu1  ;;  %v7142_v38 = vpop.f32.mrf.mxu0 }
 0x487   : > { %v7215_v11 = vadd.f32 %v7211_v35, %v7046_v13 }
 0x488   : > { %v7183_v25 = vpop.f32.mrf.mxu1 }
 0x4ae   : > { %v7303_v59 = vpop.f32.mrf.mxu0 }
 0x4af   : > { %v7374_v51 = vmul.f32 %v7357_v15, %v7303_v59 }
 0x4b0   : > { %v7305_v42 = vpop.f32.mrf.mxu0  ;;  %v7344_v44 = vpop.f32.mrf.mxu1 }
 0x4b1   : > { %v7375_v2 = vmul.f32 %v7361_v8, %v7305_v42  ;;  %v7376_v34 = vmul.f32 %v7365_v3, %v7344_v44  ;;  %v7378_v27 = vadd.f32 %v7374_v51, %v7212_v61 }
 0x4b2   : > { %v7307_v50 = vpop.f32.mrf.mxu0  ;;  %v7346_v29 = vpop.f32.mrf.mxu1 }
 0x4b3   : > { %v7377_v63 = vmul.f32 %v7369_v16, %v7346_v29  ;;  %v7379_v26 = vadd.f32 %v7375_v2, %v7213_v0  ;;  %v7380_v55 = vadd.f32 %v7376_v34, %v7214_v52 }
 0x4b4   : > { %v7308_v14 = vpop.f32.mrf.mxu0  ;;  %v7348_v10 = vpop.f32.mrf.mxu1 }
 0x4b5   : > { %v7381_v23 = vadd.f32 %v7377_v63, %v7215_v11 }
 0x4b6   : > { %v7349_v6 = vpop.f32.mrf.mxu1 }
 0x4d9   : > { %v7469_v7 = vpop.f32.mrf.mxu0 }
 0x4da   : > { %v7540_v56 = vmul.f32 %v7523_v12, %v7469_v7 }
 0x4db   : > { %v7471_v33 = vpop.f32.mrf.mxu0 }
 0x4dc   : > { %v7544_v54 = vadd.f32 %v7540_v56, %v7378_v27  ;;  %v7541_v30 = vmul.f32 %v7527_v32, %v7471_v33 }
 0x4dd   : > { %v7510_v62 = vpop.f32.mrf.mxu1  ;;  %v7473_v57 = vpop.f32.mrf.mxu0 }
 0x4de   : > { %v7542_v31 = vmul.f32 %v7531_v36, %v7510_v62  ;;  %v7552_v39 = vadd.f32 %v7548_v9, %v7544_v54  ;;  %v7545_v60 = vadd.f32 %v7541_v30, %v7379_v26 }
 0x4df   : > { %v7512_v43 = vpop.f32.mrf.mxu1  ;;  %v7474_v47 = vpop.f32.mrf.mxu0 }
 0x4e0   : > { %v7546_v58 = vadd.f32 %v7542_v31, %v7380_v55  ;;  %v7543_v13 = vmul.f32 %v7535_v40, %v7512_v43  ;;  %7556 = vst [vmem:[%s8803_s7] sm:$0xff] %v7552_v39  ;;  %v7553_v5 = vadd.f32 %v7549_v45, %v7545_v60 }
 0x4e1   : > { %v7514_v19 = vpop.f32.mrf.mxu1 }
 0x4e2   : > { %v7554_v28 = vadd.f32 %v7550_v53, %v7546_v58  ;;  %v7547_v21 = vadd.f32 %v7543_v13, %v7381_v23  ;;  %7557 = vst [vmem:[%s8803_s7 + $0x8] sm:$0xff] %v7553_v5 }
 0x4e3   : > { %v7515_v46 = vpop.f32.mrf.mxu1 }
 0x4e4   : > { %7558 = vst [vmem:[%s8803_s7 + $0x10] sm:$0xff] %v7554_v28  ;;  %v7555_v24 = vadd.f32 %v7551_v20, %v7547_v21 }
 0x4e6   : > { %7559 = vst [vmem:[%s8803_s7 + $0x18] sm:$0xff] %v7555_v24 }
 0x4e7   : > { %8274 = shalt.err (!%p8271_p5)
}
 0x4e8   : > { %s8275_s15 = scalar_lea.hbm %s7575_s6, 512  ;;  %s8279_s11 = scalar_lea.hbm %s11400_s5, 1024 }
 0x4e9   : > { %p8276_p4 = scmp.ne.s32.totalorder %s7575_s6, %s8275_s15  ;;  %p8280_p9 = scmp.lt.s32.totalorder %s7575_s6, %s11400_s5 }
 0x4ea   : > { %p8281_p12 = scmp.lt.s32.totalorder %s8279_s11, %s8275_s15 }
 0x4eb   : > { %p8277_p3 = pnand %p8276_p4, %p11401_p1 }
 0x4ec   : > { %p8282_p8 = por %p8281_p12, %p8280_p9 }
 0x4ed   : > { %p8278_p2 = pneg %p8277_p3 }
 0x4ef   : > { %p8283_p6 = pnand %p8282_p8, %p8278_p2 }
 0x4f1   : > { %8286 = shalt.err (!%p8283_p6)
}
 0x4f2   : > { %7866 = dma.vmem_to_hbm [thread:$0]  (%p11401_p1), %s7578_s4, 512, %s7575_s6, %s7561_s14  }
 0x4f3 PF: > { %p7892_p7 = scmp.ge.s32.totalorder %s8417_s10, 2  ;;  %s7589_s29 = sand.u32 1, %s8365_s21  }
 0x4f4   : > { %p11402_p11 = scmp.ne.s32.totalorder %s11339_s12, 0  ;;  %s7590_s17 = scalar_lea.sflag [#allocation4], %s7589_s29 }
 0x4f6   : > { %p7886_p10 = pnand %p7892_p7, %p11402_p11 }
 0x4f8   : > { %p7887_p0 = pneg %p7886_p10 }
 0x4fa   : > { %8360 = dma.done.wait (%p7887_p0), %s7590_s17, 512  }
 0x4fb   : > { %8362 = vsyncadd (%p7887_p0), %s7590_s17, 4294966784  ;;  %s26_s10 = sadd.s32 1, %s8417_s10   ;;  %s11404_s27 = sld [smem:[#allocation25_spill]] }
 0x4fc   : > { %p11238_p13 = scmp.ge.s32.totalorder %s26_s10, 6   ;;  %s11405_s19 = sld [smem:[#allocation24_spill]] }
 0x4fd   : > { %s11406_s4 = sld [smem:[#allocation17_spill]]  ;;  %s11411_s21 = smov %s8369_s22 }
 0x4fe   : > { %s11407_s29 = sld [smem:[#allocation23_spill]]  ;;  %s11412_s22 = smov %s8373_s23 }
 0x4ff   : > { %s11408_s30 = sld [smem:[#allocation20_spill]]  ;;  %s11414_s24 = smov %s8381_s25 }
 0x500   : > { %s11409_s8 = sld [smem:[#allocation21_spill]]  ;;  %s11415_s25 = smov %s8385_s26 }
 0x501   : > { %s11410_s12 = sld [smem:[#allocation22_spill]]  ;;  %s11413_s23 = smov %s11404_s27 }
 0x502   : > { %s11416_s26 = smov %s11405_s19  ;;  %s11417_s27 = smov %s8393_s28 }
 0x503   : > { %s11418_s28 = smov %s11406_s4  ;;  %s11419_s7 = smov %s8413_s9 }
 0x504   :  { %25 = sbr.rel (!%p11238_p13) target bundleno = 20 (0x14), region = 151 }
 0x507   : > { %s11420_s9 = smov %s11410_s12 }
 0x509   :  { %7595 = vsyncpa [#allocation3], 1 }
 0x50a   :  { %7597 = vsyncpa [#allocation3 + $0x1], 1 }
 0x50b   :  { %7598 = vsyncpa [#allocation6], 1 }
 0x50c   :  { %7600 = vsyncpa [#allocation6 + $0x1], 1 }
 0x50d   :  { %7601 = vsyncpa [#allocation9], 1 }
 0x50e   :  { %7602 = vsyncpa [#allocation4], 1 }
 0x50f   :  { %7604 = vsyncpa [#allocation4 + $0x1], 1 }

</bundles_post_ra>
